<compile_context>
chip_gen: v5e
topology: v5e:2x2
jax: 0.10.0
libtpu: 0.0.40
codegen_flags: <defaults>
</compile_context>

<pallas_src>
import functools

import jax
import jax.numpy as jnp
from jax import lax
from jax.experimental import pallas as pl
from jax.experimental.pallas import tpu as pltpu


COMPUTE_DTYPE = jnp.bfloat16    # MXU input dtype (accumulation stays f32)


def _round_up(x, m):
    return (x + m - 1) // m * m


# ----------------------------------------------------------------------------
# Fused kernel: conv1(+ReLU) -> maxpool -> conv2(+ReLU), one batch element per
# grid step.
# ----------------------------------------------------------------------------
def _alexnet_part1_kernel(xs_ref, w1_ref, b1_ref, w2_ref, b2_ref, o_ref,
                          a1_ref, rm_ref, p2_ref, *,
                          H1, SW1, H2, W2, SW2):
    """Shapes (example sizes for a 63x63 input):

    xs_ref : (1, H1+2, XS_W, 48)   space-to-depth conv1 input (f32)
    w1_ref : (3, 3, 48, 64)        conv1 weights in s2d form (bf16)
    b1_ref : (1, 64)               conv1 bias (f32)
    w2_ref : (5, 5, 64, 192)       conv2 weights, HWIO (bf16)
    b2_ref : (1, 192)              conv2 bias (f32)
    o_ref  : (1, H2*SW2, 192)      conv2 output rows (col SW2-padded) (f32)
    a1_ref : (H1, SW1, 64)  f32    conv1+ReLU output (scratch)
    rm_ref : (H2, SW1, 64)  f32    row-pooled intermediate (scratch)
    p2_ref : (H2+4, P2W, 64) f32   zero-padded pool output (scratch)
    """
    f32 = jnp.float32
    cdt = COMPUTE_DTYPE

    # ---- conv1: 3x3 VALID conv over space-to-depth input (== 11x11/s4) ----
    M1 = H1 * SW1
    acc1 = jnp.zeros((M1, 64), f32)
    for kh in range(3):
        for kw in range(3):
            lhs = xs_ref[0, kh:kh + H1, kw:kw + SW1, :]        # (H1, SW1, 48)
            lhs = lhs.reshape(M1, 48).astype(cdt)              # aligned merge
            acc1 = acc1 + jnp.dot(lhs, w1_ref[kh, kw],
                                  preferred_element_type=f32)
    acc1 = acc1 + b1_ref[...].astype(f32)                      # bias (hoisted)
    a1_ref[...] = jnp.maximum(acc1, 0.0).reshape(H1, SW1, 64)  # single store

    # ---- maxpool 3x3 / stride 2 (VALID): (H1, W1) -> (H2, W2) ----
    r0 = a1_ref[pl.ds(0, H2, stride=2), :, :]
    r1 = a1_ref[pl.ds(1, H2, stride=2), :, :]
    r2 = a1_ref[pl.ds(2, H2, stride=2), :, :]
    rm_ref[...] = jnp.maximum(jnp.maximum(r0, r1), r2)         # (H2, SW1, 64)

    c0 = rm_ref[:, pl.ds(0, W2, stride=2), :]
    c1 = rm_ref[:, pl.ds(1, W2, stride=2), :]
    c2 = rm_ref[:, pl.ds(2, W2, stride=2), :]
    pooled = jnp.maximum(jnp.maximum(c0, c1), c2)              # (H2, W2, 64)

    # ---- conv2 input buffer: zero-padded (padding=2) ----
    p2_ref[...] = jnp.zeros_like(p2_ref)
    p2_ref[2:2 + H2, 2:2 + W2, :] = pooled

    # ---- conv2: 5x5 SAME conv + bias + ReLU ----
    M2 = H2 * SW2
    acc2 = jnp.zeros((M2, 192), f32)
    for kh in range(5):
        for kw in range(5):
            lhs = p2_ref[kh:kh + H2, kw:kw + SW2, :]           # (H2, SW2, 64)
            lhs = lhs.reshape(M2, 64).astype(cdt)
            acc2 = acc2 + jnp.dot(lhs, w2_ref[kh, kw],
                                  preferred_element_type=f32)
    acc2 = acc2 + b2_ref[...].astype(f32)
    o_ref[0] = jnp.maximum(acc2, 0.0).astype(o_ref.dtype)      # single store


# ----------------------------------------------------------------------------
# Wrapper
# ----------------------------------------------------------------------------
@jax.jit
def alexnet_part1_forward(x_nchw, params):
    """x_nchw: (N, 3, H, W) f32;  params in PyTorch layout (OIHW weights)."""
    N, Cin, H, W = x_nchw.shape
    assert Cin == 3

    # Layer geometry (matches PyTorch floor formulas).
    H1 = (H + 2 * 2 - 11) // 4 + 1          # conv1 output
    W1 = (W + 2 * 2 - 11) // 4 + 1
    H2 = (H1 - 3) // 2 + 1                  # pool output
    W2 = (W1 - 3) // 2 + 1

    SW1 = _round_up(W1, 8)                  # conv1 LHS slab width (garbage cols >= W1)
    SW2 = _round_up(W2, 8)                  # conv2 LHS slab width
    HS = H1 + 2                             # space-to-depth grid height
    WS = W1 + 2                             # space-to-depth width (real data)
    XS_W = _round_up(SW1 + 2, 8)            # padded s2d width
    P2H = H2 + 4
    P2W = _round_up(SW2 + 4, 8)

    # --- input: NCHW -> space-to-depth by 4, channels-last (absorbs pad+transpose)
    xp = jnp.pad(x_nchw, ((0, 0), (0, 0),
                          (2, 4 * HS - H - 2), (2, 4 * WS - W - 2)))
    xs = xp.reshape(N, 3, HS, 4, WS, 4)                # (n, c, hq, hr, wq, wr)
    xs = xs.transpose(0, 2, 4, 3, 5, 1)                # (n, hq, wq, hr, wr, c)
    xs = xs.reshape(N, HS, WS, 48)
    xs = jnp.pad(xs, ((0, 0), (0, 0), (0, XS_W - WS), (0, 0)))

    # --- conv1 weights OIHW (64,3,11,11) -> s2d form (3,3,48,64), bf16
    w1p = jnp.pad(params["w1"], ((0, 0), (0, 0), (0, 1), (0, 1)))   # 11 -> 12 taps
    w1s = w1p.reshape(64, 3, 3, 4, 3, 4).transpose(2, 4, 3, 5, 1, 0)
    w1s = w1s.reshape(3, 3, 48, 64).astype(COMPUTE_DTYPE)
    b1 = params["b1"].reshape(1, 64).astype(jnp.float32)

    # --- conv2 weights OIHW (192,64,5,5) -> HWIO (5,5,64,192), bf16
    w2 = params["w2"].transpose(2, 3, 1, 0).astype(COMPUTE_DTYPE)
    b2 = params["b2"].reshape(1, 192).astype(jnp.float32)

    kernel = functools.partial(_alexnet_part1_kernel,
                               H1=H1, SW1=SW1, H2=H2, W2=W2, SW2=SW2)

    y = pl.pallas_call(
        kernel,
        out_shape=jax.ShapeDtypeStruct((N, H2 * SW2, 192), jnp.float32),
        grid=(N,),
        in_specs=[
            pl.BlockSpec((1, HS, XS_W, 48), lambda n: (n, 0, 0, 0)),
            pl.BlockSpec((3, 3, 48, 64), lambda n: (0, 0, 0, 0)),
            pl.BlockSpec((1, 64), lambda n: (0, 0)),
            pl.BlockSpec((5, 5, 64, 192), lambda n: (0, 0, 0, 0)),
            pl.BlockSpec((1, 192), lambda n: (0, 0)),
        ],
        out_specs=pl.BlockSpec((1, H2 * SW2, 192), lambda n: (n, 0, 0)),
        scratch_shapes=[
            pltpu.VMEM((H1, SW1, 64), jnp.float32),   # conv1+ReLU output
            pltpu.VMEM((H2, SW1, 64), jnp.float32),   # row-pooled intermediate
            pltpu.VMEM((P2H, P2W, 64), jnp.float32),  # zero-padded pool output
        ],
        compiler_params=pltpu.CompilerParams(
            dimension_semantics=("parallel",)),       # v7x: 2 TCs split batch
    )(xs, w1s, b1, w2, b2)

    # Drop the SW2-padding garbage columns and return NCHW like PyTorch.
    y = y.reshape(N, H2, SW2, 192)[:, :, :W2, :]
    return jnp.transpose(y, (0, 3, 1, 2))


# ----------------------------------------------------------------------------
# Pure-JAX reference (correctness check only)
# ----------------------------------------------------------------------------
def reference_forward(x_nchw, params):
    dn = ("NCHW", "OIHW", "NCHW")
    y = lax.conv_general_dilated(x_nchw, params["w1"], (4, 4),
                                 ((2, 2), (2, 2)), dimension_numbers=dn)
    y = jax.nn.relu(y + params["b1"][None, :, None, None])
    y = lax.reduce_window(y, -jnp.inf, lax.max,
                          (1, 1, 3, 3), (1, 1, 2, 2), "VALID")
    y = lax.conv_general_dilated(y, params["w2"], (1, 1),
                                 ((2, 2), (2, 2)), dimension_numbers=dn)
    y = jax.nn.relu(y + params["b2"][None, :, None, None])
    return y


def init_params(key):
    """Deterministic synthetic weights, PyTorch layouts (OIHW / (C,))."""
    ks = jax.random.split(key, 4)
    w1 = jax.random.normal(ks[0], (64, 3, 11, 11), jnp.float32) / jnp.sqrt(3.0 * 121)
    b1 = 0.01 * jax.random.normal(ks[1], (64,), jnp.float32)
    w2 = jax.random.normal(ks[2], (192, 64, 5, 5), jnp.float32) / jnp.sqrt(64.0 * 25)
    b2 = 0.01 * jax.random.normal(ks[3], (192,), jnp.float32)
    return dict(w1=w1, b1=b1, w2=w2, b2=b2)


if __name__ == "__main__":
    key = jax.random.PRNGKey(0)
    k_x, k_p = jax.random.split(key)

    # Small input consistent with the module: (N=2, C=3, 63, 63)
    #   conv1 -> (2, 64, 15, 15), pool -> (2, 64, 7, 7), conv2 -> (2, 192, 7, 7)
    x = jax.random.normal(k_x, (2, 3, 63, 63), jnp.float32)
    params = init_params(k_p)

    out = jax.block_until_ready(alexnet_part1_forward(x, params))
    ref = jax.block_until_ready(reference_forward(x, params))

    assert out.shape == (2, 192, 7, 7), out.shape
    # bf16 MXU inputs (f32 accumulation) => small numerical difference vs f32 ref.
    max_err = float(jnp.max(jnp.abs(out - ref)))
    assert jnp.allclose(out, ref, rtol=5e-2, atol=5e-2), \
        f"mismatch vs reference (max abs err {max_err})"

    print("KERNEL_OK")
</pallas_src>

<mosaic_0001>
module attributes {stable_mosaic.version = 11 : i64} {
  func.func @_alexnet_part1_kernel(%arg0: i32, %arg1: memref<1x17x24x48xf32, #tpu.memory_space<vmem>>, %arg2: memref<3x3x48x64xbf16, #tpu.memory_space<vmem>>, %arg3: memref<1x64xf32, #tpu.memory_space<vmem>>, %arg4: memref<5x5x64x192xbf16, #tpu.memory_space<vmem>>, %arg5: memref<1x192xf32, #tpu.memory_space<vmem>>, %arg6: memref<1x56x192xf32, #tpu.memory_space<vmem>>, %arg7: memref<15x16x64xf32, #tpu.memory_space<vmem>>, %arg8: memref<7x16x64xf32, #tpu.memory_space<vmem>>, %arg9: memref<11x16x64xf32, #tpu.memory_space<vmem>>) attributes {dimension_semantics = [#tpu.dimension_semantics<parallel>], iteration_bounds = array<i64: 2>, scalar_prefetch = 0 : i64, scratch_operands = 3 : i64, tpu.core_type = #tpu.core_type<tc>, window_params = [{transform_indices = @transform_0, window_bounds = array<i64: 1, 17, 24, 48>}, {pipeline_mode = #tpu.pipeline_mode<synchronous>, transform_indices = @transform_1, window_bounds = array<i64: 3, 3, 48, 64>}, {pipeline_mode = #tpu.pipeline_mode<synchronous>, transform_indices = @transform_2, window_bounds = array<i64: 1, 64>}, {pipeline_mode = #tpu.pipeline_mode<synchronous>, transform_indices = @transform_3, window_bounds = array<i64: 5, 5, 64, 192>}, {pipeline_mode = #tpu.pipeline_mode<synchronous>, transform_indices = @transform_4, window_bounds = array<i64: 1, 192>}, {transform_indices = @transform_5, window_bounds = array<i64: 1, 56, 192>}]} {
    %cst = arith.constant 0.000000e+00 : f32
    %0 = vector.broadcast %cst : f32 to vector<240x64xf32>
    %c0 = arith.constant 0 : index
    %c0_0 = arith.constant 0 : index
    %c0_1 = arith.constant 0 : index
    %c0_2 = arith.constant 0 : index
    %1 = vector.load %arg1[%c0, %c0_0, %c0_1, %c0_2] : memref<1x17x24x48xf32, #tpu.memory_space<vmem>>, vector<1x15x16x48xf32>
    %2 = vector.shape_cast %1 : vector<1x15x16x48xf32> to vector<15x16x48xf32>
    %3 = vector.shape_cast %2 : vector<15x16x48xf32> to vector<240x48xf32>
    %4 = arith.truncf %3 : vector<240x48xf32> to vector<240x48xbf16>
    %c0_3 = arith.constant 0 : index
    %c0_4 = arith.constant 0 : index
    %c0_5 = arith.constant 0 : index
    %c0_6 = arith.constant 0 : index
    %5 = vector.load %arg2[%c0_3, %c0_4, %c0_5, %c0_6] : memref<3x3x48x64xbf16, #tpu.memory_space<vmem>>, vector<1x1x48x64xbf16>
    %6 = vector.shape_cast %5 : vector<1x1x48x64xbf16> to vector<48x64xbf16>
    %cst_7 = arith.constant dense<0.000000e+00> : vector<240x64xf32>
    %7 = tpu.matmul %4, %6, %cst_7 {dimension_numbers = #tpu.dot_dimension_numbers<[1], [0], [0], [1], [0, 0, 1, 1], [], []>} : vector<240x48xbf16>, vector<48x64xbf16>, vector<240x64xf32> -> vector<240x64xf32>
    %8 = arith.addf %0, %7 : vector<240x64xf32>
    %c0_8 = arith.constant 0 : index
    %c0_9 = arith.constant 0 : index
    %c1 = arith.constant 1 : index
    %c0_10 = arith.constant 0 : index
    %9 = vector.load %arg1[%c0_8, %c0_9, %c1, %c0_10] : memref<1x17x24x48xf32, #tpu.memory_space<vmem>>, vector<1x15x16x48xf32>
    %10 = vector.shape_cast %9 : vector<1x15x16x48xf32> to vector<15x16x48xf32>
    %11 = vector.shape_cast %10 : vector<15x16x48xf32> to vector<240x48xf32>
    %12 = arith.truncf %11 : vector<240x48xf32> to vector<240x48xbf16>
    %c0_11 = arith.constant 0 : index
    %c1_12 = arith.constant 1 : index
    %c0_13 = arith.constant 0 : index
    %c0_14 = arith.constant 0 : index
    %13 = vector.load %arg2[%c0_11, %c1_12, %c0_13, %c0_14] : memref<3x3x48x64xbf16, #tpu.memory_space<vmem>>, vector<1x1x48x64xbf16>
    %14 = vector.shape_cast %13 : vector<1x1x48x64xbf16> to vector<48x64xbf16>
    %cst_15 = arith.constant dense<0.000000e+00> : vector<240x64xf32>
    %15 = tpu.matmul %12, %14, %cst_15 {dimension_numbers = #tpu.dot_dimension_numbers<[1], [0], [0], [1], [0, 0, 1, 1], [], []>} : vector<240x48xbf16>, vector<48x64xbf16>, vector<240x64xf32> -> vector<240x64xf32>
    %16 = arith.addf %8, %15 : vector<240x64xf32>
    %c0_16 = arith.constant 0 : index
    %c0_17 = arith.constant 0 : index
    %c2 = arith.constant 2 : index
    %c0_18 = arith.constant 0 : index
    %17 = vector.load %arg1[%c0_16, %c0_17, %c2, %c0_18] : memref<1x17x24x48xf32, #tpu.memory_space<vmem>>, vector<1x15x16x48xf32>
    %18 = vector.shape_cast %17 : vector<1x15x16x48xf32> to vector<15x16x48xf32>
    %19 = vector.shape_cast %18 : vector<15x16x48xf32> to vector<240x48xf32>
    %20 = arith.truncf %19 : vector<240x48xf32> to vector<240x48xbf16>
    %c0_19 = arith.constant 0 : index
    %c2_20 = arith.constant 2 : index
    %c0_21 = arith.constant 0 : index
    %c0_22 = arith.constant 0 : index
    %21 = vector.load %arg2[%c0_19, %c2_20, %c0_21, %c0_22] : memref<3x3x48x64xbf16, #tpu.memory_space<vmem>>, vector<1x1x48x64xbf16>
    %22 = vector.shape_cast %21 : vector<1x1x48x64xbf16> to vector<48x64xbf16>
    %cst_23 = arith.constant dense<0.000000e+00> : vector<240x64xf32>
    %23 = tpu.matmul %20, %22, %cst_23 {dimension_numbers = #tpu.dot_dimension_numbers<[1], [0], [0], [1], [0, 0, 1, 1], [], []>} : vector<240x48xbf16>, vector<48x64xbf16>, vector<240x64xf32> -> vector<240x64xf32>
    %24 = arith.addf %16, %23 : vector<240x64xf32>
    %c0_24 = arith.constant 0 : index
    %c1_25 = arith.constant 1 : index
    %c0_26 = arith.constant 0 : index
    %c0_27 = arith.constant 0 : index
    %25 = vector.load %arg1[%c0_24, %c1_25, %c0_26, %c0_27] : memref<1x17x24x48xf32, #tpu.memory_space<vmem>>, vector<1x15x16x48xf32>
    %26 = vector.shape_cast %25 : vector<1x15x16x48xf32> to vector<15x16x48xf32>
    %27 = vector.shape_cast %26 : vector<15x16x48xf32> to vector<240x48xf32>
    %28 = arith.truncf %27 : vector<240x48xf32> to vector<240x48xbf16>
    %c1_28 = arith.constant 1 : index
    %c0_29 = arith.constant 0 : index
    %c0_30 = arith.constant 0 : index
    %c0_31 = arith.constant 0 : index
    %29 = vector.load %arg2[%c1_28, %c0_29, %c0_30, %c0_31] : memref<3x3x48x64xbf16, #tpu.memory_space<vmem>>, vector<1x1x48x64xbf16>
    %30 = vector.shape_cast %29 : vector<1x1x48x64xbf16> to vector<48x64xbf16>
    %cst_32 = arith.constant dense<0.000000e+00> : vector<240x64xf32>
    %31 = tpu.matmul %28, %30, %cst_32 {dimension_numbers = #tpu.dot_dimension_numbers<[1], [0], [0], [1], [0, 0, 1, 1], [], []>} : vector<240x48xbf16>, vector<48x64xbf16>, vector<240x64xf32> -> vector<240x64xf32>
    %32 = arith.addf %24, %31 : vector<240x64xf32>
    %c0_33 = arith.constant 0 : index
    %c1_34 = arith.constant 1 : index
    %c1_35 = arith.constant 1 : index
    %c0_36 = arith.constant 0 : index
    %33 = vector.load %arg1[%c0_33, %c1_34, %c1_35, %c0_36] : memref<1x17x24x48xf32, #tpu.memory_space<vmem>>, vector<1x15x16x48xf32>
    %34 = vector.shape_cast %33 : vector<1x15x16x48xf32> to vector<15x16x48xf32>
    %35 = vector.shape_cast %34 : vector<15x16x48xf32> to vector<240x48xf32>
    %36 = arith.truncf %35 : vector<240x48xf32> to vector<240x48xbf16>
    %c1_37 = arith.constant 1 : index
    %c1_38 = arith.constant 1 : index
    %c0_39 = arith.constant 0 : index
    %c0_40 = arith.constant 0 : index
    %37 = vector.load %arg2[%c1_37, %c1_38, %c0_39, %c0_40] : memref<3x3x48x64xbf16, #tpu.memory_space<vmem>>, vector<1x1x48x64xbf16>
    %38 = vector.shape_cast %37 : vector<1x1x48x64xbf16> to vector<48x64xbf16>
    %cst_41 = arith.constant dense<0.000000e+00> : vector<240x64xf32>
    %39 = tpu.matmul %36, %38, %cst_41 {dimension_numbers = #tpu.dot_dimension_numbers<[1], [0], [0], [1], [0, 0, 1, 1], [], []>} : vector<240x48xbf16>, vector<48x64xbf16>, vector<240x64xf32> -> vector<240x64xf32>
    %40 = arith.addf %32, %39 : vector<240x64xf32>
    %c0_42 = arith.constant 0 : index
    %c1_43 = arith.constant 1 : index
    %c2_44 = arith.constant 2 : index
    %c0_45 = arith.constant 0 : index
    %41 = vector.load %arg1[%c0_42, %c1_43, %c2_44, %c0_45] : memref<1x17x24x48xf32, #tpu.memory_space<vmem>>, vector<1x15x16x48xf32>
    %42 = vector.shape_cast %41 : vector<1x15x16x48xf32> to vector<15x16x48xf32>
    %43 = vector.shape_cast %42 : vector<15x16x48xf32> to vector<240x48xf32>
    %44 = arith.truncf %43 : vector<240x48xf32> to vector<240x48xbf16>
    %c1_46 = arith.constant 1 : index
    %c2_47 = arith.constant 2 : index
    %c0_48 = arith.constant 0 : index
    %c0_49 = arith.constant 0 : index
    %45 = vector.load %arg2[%c1_46, %c2_47, %c0_48, %c0_49] : memref<3x3x48x64xbf16, #tpu.memory_space<vmem>>, vector<1x1x48x64xbf16>
    %46 = vector.shape_cast %45 : vector<1x1x48x64xbf16> to vector<48x64xbf16>
    %cst_50 = arith.constant dense<0.000000e+00> : vector<240x64xf32>
    %47 = tpu.matmul %44, %46, %cst_50 {dimension_numbers = #tpu.dot_dimension_numbers<[1], [0], [0], [1], [0, 0, 1, 1], [], []>} : vector<240x48xbf16>, vector<48x64xbf16>, vector<240x64xf32> -> vector<240x64xf32>
    %48 = arith.addf %40, %47 : vector<240x64xf32>
    %c0_51 = arith.constant 0 : index
    %c2_52 = arith.constant 2 : index
    %c0_53 = arith.constant 0 : index
    %c0_54 = arith.constant 0 : index
    %49 = vector.load %arg1[%c0_51, %c2_52, %c0_53, %c0_54] : memref<1x17x24x48xf32, #tpu.memory_space<vmem>>, vector<1x15x16x48xf32>
    %50 = vector.shape_cast %49 : vector<1x15x16x48xf32> to vector<15x16x48xf32>
    %51 = vector.shape_cast %50 : vector<15x16x48xf32> to vector<240x48xf32>
    %52 = arith.truncf %51 : vector<240x48xf32> to vector<240x48xbf16>
    %c2_55 = arith.constant 2 : index
    %c0_56 = arith.constant 0 : index
    %c0_57 = arith.constant 0 : index
    %c0_58 = arith.constant 0 : index
    %53 = vector.load %arg2[%c2_55, %c0_56, %c0_57, %c0_58] : memref<3x3x48x64xbf16, #tpu.memory_space<vmem>>, vector<1x1x48x64xbf16>
    %54 = vector.shape_cast %53 : vector<1x1x48x64xbf16> to vector<48x64xbf16>
    %cst_59 = arith.constant dense<0.000000e+00> : vector<240x64xf32>
    %55 = tpu.matmul %52, %54, %cst_59 {dimension_numbers = #tpu.dot_dimension_numbers<[1], [0], [0], [1], [0, 0, 1, 1], [], []>} : vector<240x48xbf16>, vector<48x64xbf16>, vector<240x64xf32> -> vector<240x64xf32>
    %56 = arith.addf %48, %55 : vector<240x64xf32>
    %c0_60 = arith.constant 0 : index
    %c2_61 = arith.constant 2 : index
    %c1_62 = arith.constant 1 : index
    %c0_63 = arith.constant 0 : index
    %57 = vector.load %arg1[%c0_60, %c2_61, %c1_62, %c0_63] : memref<1x17x24x48xf32, #tpu.memory_space<vmem>>, vector<1x15x16x48xf32>
    %58 = vector.shape_cast %57 : vector<1x15x16x48xf32> to vector<15x16x48xf32>
    %59 = vector.shape_cast %58 : vector<15x16x48xf32> to vector<240x48xf32>
    %60 = arith.truncf %59 : vector<240x48xf32> to vector<240x48xbf16>
    %c2_64 = arith.constant 2 : index
    %c1_65 = arith.constant 1 : index
    %c0_66 = arith.constant 0 : index
    %c0_67 = arith.constant 0 : index
    %61 = vector.load %arg2[%c2_64, %c1_65, %c0_66, %c0_67] : memref<3x3x48x64xbf16, #tpu.memory_space<vmem>>, vector<1x1x48x64xbf16>
    %62 = vector.shape_cast %61 : vector<1x1x48x64xbf16> to vector<48x64xbf16>
    %cst_68 = arith.constant dense<0.000000e+00> : vector<240x64xf32>
    %63 = tpu.matmul %60, %62, %cst_68 {dimension_numbers = #tpu.dot_dimension_numbers<[1], [0], [0], [1], [0, 0, 1, 1], [], []>} : vector<240x48xbf16>, vector<48x64xbf16>, vector<240x64xf32> -> vector<240x64xf32>
    %64 = arith.addf %56, %63 : vector<240x64xf32>
    %c0_69 = arith.constant 0 : index
    %c2_70 = arith.constant 2 : index
    %c2_71 = arith.constant 2 : index
    %c0_72 = arith.constant 0 : index
    %65 = vector.load %arg1[%c0_69, %c2_70, %c2_71, %c0_72] : memref<1x17x24x48xf32, #tpu.memory_space<vmem>>, vector<1x15x16x48xf32>
    %66 = vector.shape_cast %65 : vector<1x15x16x48xf32> to vector<15x16x48xf32>
    %67 = vector.shape_cast %66 : vector<15x16x48xf32> to vector<240x48xf32>
    %68 = arith.truncf %67 : vector<240x48xf32> to vector<240x48xbf16>
    %c2_73 = arith.constant 2 : index
    %c2_74 = arith.constant 2 : index
    %c0_75 = arith.constant 0 : index
    %c0_76 = arith.constant 0 : index
    %69 = vector.load %arg2[%c2_73, %c2_74, %c0_75, %c0_76] : memref<3x3x48x64xbf16, #tpu.memory_space<vmem>>, vector<1x1x48x64xbf16>
    %70 = vector.shape_cast %69 : vector<1x1x48x64xbf16> to vector<48x64xbf16>
    %cst_77 = arith.constant dense<0.000000e+00> : vector<240x64xf32>
    %71 = tpu.matmul %68, %70, %cst_77 {dimension_numbers = #tpu.dot_dimension_numbers<[1], [0], [0], [1], [0, 0, 1, 1], [], []>} : vector<240x48xbf16>, vector<48x64xbf16>, vector<240x64xf32> -> vector<240x64xf32>
    %72 = arith.addf %64, %71 : vector<240x64xf32>
    %c0_78 = arith.constant 0 : index
    %c0_79 = arith.constant 0 : index
    %73 = vector.load %arg3[%c0_78, %c0_79] : memref<1x64xf32, #tpu.memory_space<vmem>>, vector<1x64xf32>
    %74 = vector.broadcast %73 : vector<1x64xf32> to vector<240x64xf32>
    %75 = arith.addf %72, %74 : vector<240x64xf32>
    %cst_80 = arith.constant 0.000000e+00 : f32
    %76 = vector.broadcast %cst_80 : f32 to vector<240x64xf32>
    %77 = arith.maximumf %75, %76 : vector<240x64xf32>
    %78 = vector.shape_cast %77 : vector<240x64xf32> to vector<15x16x64xf32>
    %c0_81 = arith.constant 0 : index
    %c0_82 = arith.constant 0 : index
    %c0_83 = arith.constant 0 : index
    %79 = vector.load %arg7[%c0_81, %c0_82, %c0_83] : memref<15x16x64xf32, #tpu.memory_space<vmem>>, vector<15x16x64xf32>
    tpu.vector_store %arg7[%c0_81, %c0_82, %c0_83], %78 {strides = array<i32>} : memref<15x16x64xf32, #tpu.memory_space<vmem>>, vector<15x16x64xf32>,
    %c0_84 = arith.constant 0 : index
    %c0_85 = arith.constant 0 : index
    %c0_86 = arith.constant 0 : index
    %80 = tpu.strided_load %arg7[%c0_84, %c0_85, %c0_86] {strides = array<i32: 2, 1, 1>} : memref<15x16x64xf32, #tpu.memory_space<vmem>>, vector<7x16x64xf32>
    %c1_87 = arith.constant 1 : index
    %c0_88 = arith.constant 0 : index
    %c0_89 = arith.constant 0 : index
    %81 = tpu.strided_load %arg7[%c1_87, %c0_88, %c0_89] {strides = array<i32: 2, 1, 1>} : memref<15x16x64xf32, #tpu.memory_space<vmem>>, vector<7x16x64xf32>
    %c2_90 = arith.constant 2 : index
    %c0_91 = arith.constant 0 : index
    %c0_92 = arith.constant 0 : index
    %82 = tpu.strided_load %arg7[%c2_90, %c0_91, %c0_92] {strides = array<i32: 2, 1, 1>} : memref<15x16x64xf32, #tpu.memory_space<vmem>>, vector<7x16x64xf32>
    %83 = arith.maximumf %80, %81 : vector<7x16x64xf32>
    %84 = arith.maximumf %83, %82 : vector<7x16x64xf32>
    %c0_93 = arith.constant 0 : index
    %c0_94 = arith.constant 0 : index
    %c0_95 = arith.constant 0 : index
    %85 = vector.load %arg8[%c0_93, %c0_94, %c0_95] : memref<7x16x64xf32, #tpu.memory_space<vmem>>, vector<7x16x64xf32>
    tpu.vector_store %arg8[%c0_93, %c0_94, %c0_95], %84 {strides = array<i32>} : memref<7x16x64xf32, #tpu.memory_space<vmem>>, vector<7x16x64xf32>,
    %c0_96 = arith.constant 0 : index
    %c0_97 = arith.constant 0 : index
    %c0_98 = arith.constant 0 : index
    %86 = tpu.strided_load %arg8[%c0_96, %c0_97, %c0_98] {strides = array<i32: 1, 2, 1>} : memref<7x16x64xf32, #tpu.memory_space<vmem>>, vector<7x7x64xf32>
    %c0_99 = arith.constant 0 : index
    %c1_100 = arith.constant 1 : index
    %c0_101 = arith.constant 0 : index
    %87 = tpu.strided_load %arg8[%c0_99, %c1_100, %c0_101] {strides = array<i32: 1, 2, 1>} : memref<7x16x64xf32, #tpu.memory_space<vmem>>, vector<7x7x64xf32>
    %c0_102 = arith.constant 0 : index
    %c2_103 = arith.constant 2 : index
    %c0_104 = arith.constant 0 : index
    %88 = tpu.strided_load %arg8[%c0_102, %c2_103, %c0_104] {strides = array<i32: 1, 2, 1>} : memref<7x16x64xf32, #tpu.memory_space<vmem>>, vector<7x7x64xf32>
    %89 = arith.maximumf %86, %87 : vector<7x7x64xf32>
    %90 = arith.maximumf %89, %88 : vector<7x7x64xf32>
    %cst_105 = arith.constant 0.000000e+00 : f32
    %91 = vector.broadcast %cst_105 : f32 to vector<11x16x64xf32>
    %c0_106 = arith.constant 0 : index
    %c0_107 = arith.constant 0 : index
    %c0_108 = arith.constant 0 : index
    %92 = vector.load %arg9[%c0_106, %c0_107, %c0_108] : memref<11x16x64xf32, #tpu.memory_space<vmem>>, vector<11x16x64xf32>
    tpu.vector_store %arg9[%c0_106, %c0_107, %c0_108], %91 {strides = array<i32>} : memref<11x16x64xf32, #tpu.memory_space<vmem>>, vector<11x16x64xf32>,
    %c2_109 = arith.constant 2 : index
    %c2_110 = arith.constant 2 : index
    %c0_111 = arith.constant 0 : index
    %93 = vector.load %arg9[%c2_109, %c2_110, %c0_111] : memref<11x16x64xf32, #tpu.memory_space<vmem>>, vector<7x7x64xf32>
    tpu.vector_store %arg9[%c2_109, %c2_110, %c0_111], %90 {strides = array<i32>} : memref<11x16x64xf32, #tpu.memory_space<vmem>>, vector<7x7x64xf32>,
    %cst_112 = arith.constant 0.000000e+00 : f32
    %94 = vector.broadcast %cst_112 : f32 to vector<56x192xf32>
    %c0_113 = arith.constant 0 : index
    %c0_114 = arith.constant 0 : index
    %c0_115 = arith.constant 0 : index
    %95 = vector.load %arg9[%c0_113, %c0_114, %c0_115] : memref<11x16x64xf32, #tpu.memory_space<vmem>>, vector<7x8x64xf32>
    %96 = vector.shape_cast %95 : vector<7x8x64xf32> to vector<56x64xf32>
    %97 = arith.truncf %96 : vector<56x64xf32> to vector<56x64xbf16>
    %c0_116 = arith.constant 0 : index
    %c0_117 = arith.constant 0 : index
    %c0_118 = arith.constant 0 : index
    %c0_119 = arith.constant 0 : index
    %98 = vector.load %arg4[%c0_116, %c0_117, %c0_118, %c0_119] : memref<5x5x64x192xbf16, #tpu.memory_space<vmem>>, vector<1x1x64x192xbf16>
    %99 = vector.shape_cast %98 : vector<1x1x64x192xbf16> to vector<64x192xbf16>
    %cst_120 = arith.constant dense<0.000000e+00> : vector<56x192xf32>
    %100 = tpu.matmul %97, %99, %cst_120 {dimension_numbers = #tpu.dot_dimension_numbers<[1], [0], [0], [1], [0, 0, 1, 1], [], []>} : vector<56x64xbf16>, vector<64x192xbf16>, vector<56x192xf32> -> vector<56x192xf32>
    %101 = arith.addf %94, %100 : vector<56x192xf32>
    %c0_121 = arith.constant 0 : index
    %c1_122 = arith.constant 1 : index
    %c0_123 = arith.constant 0 : index
    %102 = vector.load %arg9[%c0_121, %c1_122, %c0_123] : memref<11x16x64xf32, #tpu.memory_space<vmem>>, vector<7x8x64xf32>
    %103 = vector.shape_cast %102 : vector<7x8x64xf32> to vector<56x64xf32>
    %104 = arith.truncf %103 : vector<56x64xf32> to vector<56x64xbf16>
    %c0_124 = arith.constant 0 : index
    %c1_125 = arith.constant 1 : index
    %c0_126 = arith.constant 0 : index
    %c0_127 = arith.constant 0 : index
    %105 = vector.load %arg4[%c0_124, %c1_125, %c0_126, %c0_127] : memref<5x5x64x192xbf16, #tpu.memory_space<vmem>>, vector<1x1x64x192xbf16>
    %106 = vector.shape_cast %105 : vector<1x1x64x192xbf16> to vector<64x192xbf16>
    %cst_128 = arith.constant dense<0.000000e+00> : vector<56x192xf32>
    %107 = tpu.matmul %104, %106, %cst_128 {dimension_numbers = #tpu.dot_dimension_numbers<[1], [0], [0], [1], [0, 0, 1, 1], [], []>} : vector<56x64xbf16>, vector<64x192xbf16>, vector<56x192xf32> -> vector<56x192xf32>
    %108 = arith.addf %101, %107 : vector<56x192xf32>
    %c0_129 = arith.constant 0 : index
    %c2_130 = arith.constant 2 : index
    %c0_131 = arith.constant 0 : index
    %109 = vector.load %arg9[%c0_129, %c2_130, %c0_131] : memref<11x16x64xf32, #tpu.memory_space<vmem>>, vector<7x8x64xf32>
    %110 = vector.shape_cast %109 : vector<7x8x64xf32> to vector<56x64xf32>
    %111 = arith.truncf %110 : vector<56x64xf32> to vector<56x64xbf16>
    %c0_132 = arith.constant 0 : index
    %c2_133 = arith.constant 2 : index
    %c0_134 = arith.constant 0 : index
    %c0_135 = arith.constant 0 : index
    %112 = vector.load %arg4[%c0_132, %c2_133, %c0_134, %c0_135] : memref<5x5x64x192xbf16, #tpu.memory_space<vmem>>, vector<1x1x64x192xbf16>
    %113 = vector.shape_cast %112 : vector<1x1x64x192xbf16> to vector<64x192xbf16>
    %cst_136 = arith.constant dense<0.000000e+00> : vector<56x192xf32>
    %114 = tpu.matmul %111, %113, %cst_136 {dimension_numbers = #tpu.dot_dimension_numbers<[1], [0], [0], [1], [0, 0, 1, 1], [], []>} : vector<56x64xbf16>, vector<64x192xbf16>, vector<56x192xf32> -> vector<56x192xf32>
    %115 = arith.addf %108, %114 : vector<56x192xf32>
    %c0_137 = arith.constant 0 : index
    %c3 = arith.constant 3 : index
    %c0_138 = arith.constant 0 : index
    %116 = vector.load %arg9[%c0_137, %c3, %c0_138] : memref<11x16x64xf32, #tpu.memory_space<vmem>>, vector<7x8x64xf32>
    %117 = vector.shape_cast %116 : vector<7x8x64xf32> to vector<56x64xf32>
    %118 = arith.truncf %117 : vector<56x64xf32> to vector<56x64xbf16>
    %c0_139 = arith.constant 0 : index
    %c3_140 = arith.constant 3 : index
    %c0_141 = arith.constant 0 : index
    %c0_142 = arith.constant 0 : index
    %119 = vector.load %arg4[%c0_139, %c3_140, %c0_141, %c0_142] : memref<5x5x64x192xbf16, #tpu.memory_space<vmem>>, vector<1x1x64x192xbf16>
    %120 = vector.shape_cast %119 : vector<1x1x64x192xbf16> to vector<64x192xbf16>
    %cst_143 = arith.constant dense<0.000000e+00> : vector<56x192xf32>
    %121 = tpu.matmul %118, %120, %cst_143 {dimension_numbers = #tpu.dot_dimension_numbers<[1], [0], [0], [1], [0, 0, 1, 1], [], []>} : vector<56x64xbf16>, vector<64x192xbf16>, vector<56x192xf32> -> vector<56x192xf32>
    %122 = arith.addf %115, %121 : vector<56x192xf32>
    %c0_144 = arith.constant 0 : index
    %c4 = arith.constant 4 : index
    %c0_145 = arith.constant 0 : index
    %123 = vector.load %arg9[%c0_144, %c4, %c0_145] : memref<11x16x64xf32, #tpu.memory_space<vmem>>, vector<7x8x64xf32>
    %124 = vector.shape_cast %123 : vector<7x8x64xf32> to vector<56x64xf32>
    %125 = arith.truncf %124 : vector<56x64xf32> to vector<56x64xbf16>
    %c0_146 = arith.constant 0 : index
    %c4_147 = arith.constant 4 : index
    %c0_148 = arith.constant 0 : index
    %c0_149 = arith.constant 0 : index
    %126 = vector.load %arg4[%c0_146, %c4_147, %c0_148, %c0_149] : memref<5x5x64x192xbf16, #tpu.memory_space<vmem>>, vector<1x1x64x192xbf16>
    %127 = vector.shape_cast %126 : vector<1x1x64x192xbf16> to vector<64x192xbf16>
    %cst_150 = arith.constant dense<0.000000e+00> : vector<56x192xf32>
    %128 = tpu.matmul %125, %127, %cst_150 {dimension_numbers = #tpu.dot_dimension_numbers<[1], [0], [0], [1], [0, 0, 1, 1], [], []>} : vector<56x64xbf16>, vector<64x192xbf16>, vector<56x192xf32> -> vector<56x192xf32>
    %129 = arith.addf %122, %128 : vector<56x192xf32>
    %c1_151 = arith.constant 1 : index
    %c0_152 = arith.constant 0 : index
    %c0_153 = arith.constant 0 : index
    %130 = vector.load %arg9[%c1_151, %c0_152, %c0_153] : memref<11x16x64xf32, #tpu.memory_space<vmem>>, vector<7x8x64xf32>
    %131 = vector.shape_cast %130 : vector<7x8x64xf32> to vector<56x64xf32>
    %132 = arith.truncf %131 : vector<56x64xf32> to vector<56x64xbf16>
    %c1_154 = arith.constant 1 : index
    %c0_155 = arith.constant 0 : index
    %c0_156 = arith.constant 0 : index
    %c0_157 = arith.constant 0 : index
    %133 = vector.load %arg4[%c1_154, %c0_155, %c0_156, %c0_157] : memref<5x5x64x192xbf16, #tpu.memory_space<vmem>>, vector<1x1x64x192xbf16>
    %134 = vector.shape_cast %133 : vector<1x1x64x192xbf16> to vector<64x192xbf16>
    %cst_158 = arith.constant dense<0.000000e+00> : vector<56x192xf32>
    %135 = tpu.matmul %132, %134, %cst_158 {dimension_numbers = #tpu.dot_dimension_numbers<[1], [0], [0], [1], [0, 0, 1, 1], [], []>} : vector<56x64xbf16>, vector<64x192xbf16>, vector<56x192xf32> -> vector<56x192xf32>
    %136 = arith.addf %129, %135 : vector<56x192xf32>
    %c1_159 = arith.constant 1 : index
    %c1_160 = arith.constant 1 : index
    %c0_161 = arith.constant 0 : index
    %137 = vector.load %arg9[%c1_159, %c1_160, %c0_161] : memref<11x16x64xf32, #tpu.memory_space<vmem>>, vector<7x8x64xf32>
    %138 = vector.shape_cast %137 : vector<7x8x64xf32> to vector<56x64xf32>
    %139 = arith.truncf %138 : vector<56x64xf32> to vector<56x64xbf16>
    %c1_162 = arith.constant 1 : index
    %c1_163 = arith.constant 1 : index
    %c0_164 = arith.constant 0 : index
    %c0_165 = arith.constant 0 : index
    %140 = vector.load %arg4[%c1_162, %c1_163, %c0_164, %c0_165] : memref<5x5x64x192xbf16, #tpu.memory_space<vmem>>, vector<1x1x64x192xbf16>
    %141 = vector.shape_cast %140 : vector<1x1x64x192xbf16> to vector<64x192xbf16>
    %cst_166 = arith.constant dense<0.000000e+00> : vector<56x192xf32>
    %142 = tpu.matmul %139, %141, %cst_166 {dimension_numbers = #tpu.dot_dimension_numbers<[1], [0], [0], [1], [0, 0, 1, 1], [], []>} : vector<56x64xbf16>, vector<64x192xbf16>, vector<56x192xf32> -> vector<56x192xf32>
    %143 = arith.addf %136, %142 : vector<56x192xf32>
    %c1_167 = arith.constant 1 : index
    %c2_168 = arith.constant 2 : index
    %c0_169 = arith.constant 0 : index
    %144 = vector.load %arg9[%c1_167, %c2_168, %c0_169] : memref<11x16x64xf32, #tpu.memory_space<vmem>>, vector<7x8x64xf32>
    %145 = vector.shape_cast %144 : vector<7x8x64xf32> to vector<56x64xf32>
    %146 = arith.truncf %145 : vector<56x64xf32> to vector<56x64xbf16>
    %c1_170 = arith.constant 1 : index
    %c2_171 = arith.constant 2 : index
    %c0_172 = arith.constant 0 : index
    %c0_173 = arith.constant 0 : index
    %147 = vector.load %arg4[%c1_170, %c2_171, %c0_172, %c0_173] : memref<5x5x64x192xbf16, #tpu.memory_space<vmem>>, vector<1x1x64x192xbf16>
    %148 = vector.shape_cast %147 : vector<1x1x64x192xbf16> to vector<64x192xbf16>
    %cst_174 = arith.constant dense<0.000000e+00> : vector<56x192xf32>
    %149 = tpu.matmul %146, %148, %cst_174 {dimension_numbers = #tpu.dot_dimension_numbers<[1], [0], [0], [1], [0, 0, 1, 1], [], []>} : vector<56x64xbf16>, vector<64x192xbf16>, vector<56x192xf32> -> vector<56x192xf32>
    %150 = arith.addf %143, %149 : vector<56x192xf32>
    %c1_175 = arith.constant 1 : index
    %c3_176 = arith.constant 3 : index
    %c0_177 = arith.constant 0 : index
    %151 = vector.load %arg9[%c1_175, %c3_176, %c0_177] : memref<11x16x64xf32, #tpu.memory_space<vmem>>, vector<7x8x64xf32>
    %152 = vector.shape_cast %151 : vector<7x8x64xf32> to vector<56x64xf32>
    %153 = arith.truncf %152 : vector<56x64xf32> to vector<56x64xbf16>
    %c1_178 = arith.constant 1 : index
    %c3_179 = arith.constant 3 : index
    %c0_180 = arith.constant 0 : index
    %c0_181 = arith.constant 0 : index
    %154 = vector.load %arg4[%c1_178, %c3_179, %c0_180, %c0_181] : memref<5x5x64x192xbf16, #tpu.memory_space<vmem>>, vector<1x1x64x192xbf16>
    %155 = vector.shape_cast %154 : vector<1x1x64x192xbf16> to vector<64x192xbf16>
    %cst_182 = arith.constant dense<0.000000e+00> : vector<56x192xf32>
    %156 = tpu.matmul %153, %155, %cst_182 {dimension_numbers = #tpu.dot_dimension_numbers<[1], [0], [0], [1], [0, 0, 1, 1], [], []>} : vector<56x64xbf16>, vector<64x192xbf16>, vector<56x192xf32> -> vector<56x192xf32>
    %157 = arith.addf %150, %156 : vector<56x192xf32>
    %c1_183 = arith.constant 1 : index
    %c4_184 = arith.constant 4 : index
    %c0_185 = arith.constant 0 : index
    %158 = vector.load %arg9[%c1_183, %c4_184, %c0_185] : memref<11x16x64xf32, #tpu.memory_space<vmem>>, vector<7x8x64xf32>
    %159 = vector.shape_cast %158 : vector<7x8x64xf32> to vector<56x64xf32>
    %160 = arith.truncf %159 : vector<56x64xf32> to vector<56x64xbf16>
    %c1_186 = arith.constant 1 : index
    %c4_187 = arith.constant 4 : index
    %c0_188 = arith.constant 0 : index
    %c0_189 = arith.constant 0 : index
    %161 = vector.load %arg4[%c1_186, %c4_187, %c0_188, %c0_189] : memref<5x5x64x192xbf16, #tpu.memory_space<vmem>>, vector<1x1x64x192xbf16>
    %162 = vector.shape_cast %161 : vector<1x1x64x192xbf16> to vector<64x192xbf16>
    %cst_190 = arith.constant dense<0.000000e+00> : vector<56x192xf32>
    %163 = tpu.matmul %160, %162, %cst_190 {dimension_numbers = #tpu.dot_dimension_numbers<[1], [0], [0], [1], [0, 0, 1, 1], [], []>} : vector<56x64xbf16>, vector<64x192xbf16>, vector<56x192xf32> -> vector<56x192xf32>
    %164 = arith.addf %157, %163 : vector<56x192xf32>
    %c2_191 = arith.constant 2 : index
    %c0_192 = arith.constant 0 : index
    %c0_193 = arith.constant 0 : index
    %165 = vector.load %arg9[%c2_191, %c0_192, %c0_193] : memref<11x16x64xf32, #tpu.memory_space<vmem>>, vector<7x8x64xf32>
    %166 = vector.shape_cast %165 : vector<7x8x64xf32> to vector<56x64xf32>
    %167 = arith.truncf %166 : vector<56x64xf32> to vector<56x64xbf16>
    %c2_194 = arith.constant 2 : index
    %c0_195 = arith.constant 0 : index
    %c0_196 = arith.constant 0 : index
    %c0_197 = arith.constant 0 : index
    %168 = vector.load %arg4[%c2_194, %c0_195, %c0_196, %c0_197] : memref<5x5x64x192xbf16, #tpu.memory_space<vmem>>, vector<1x1x64x192xbf16>
    %169 = vector.shape_cast %168 : vector<1x1x64x192xbf16> to vector<64x192xbf16>
    %cst_198 = arith.constant dense<0.000000e+00> : vector<56x192xf32>
    %170 = tpu.matmul %167, %169, %cst_198 {dimension_numbers = #tpu.dot_dimension_numbers<[1], [0], [0], [1], [0, 0, 1, 1], [], []>} : vector<56x64xbf16>, vector<64x192xbf16>, vector<56x192xf32> -> vector<56x192xf32>
    %171 = arith.addf %164, %170 : vector<56x192xf32>
    %c2_199 = arith.constant 2 : index
    %c1_200 = arith.constant 1 : index
    %c0_201 = arith.constant 0 : index
    %172 = vector.load %arg9[%c2_199, %c1_200, %c0_201] : memref<11x16x64xf32, #tpu.memory_space<vmem>>, vector<7x8x64xf32>
    %173 = vector.shape_cast %172 : vector<7x8x64xf32> to vector<56x64xf32>
    %174 = arith.truncf %173 : vector<56x64xf32> to vector<56x64xbf16>
    %c2_202 = arith.constant 2 : index
    %c1_203 = arith.constant 1 : index
    %c0_204 = arith.constant 0 : index
    %c0_205 = arith.constant 0 : index
    %175 = vector.load %arg4[%c2_202, %c1_203, %c0_204, %c0_205] : memref<5x5x64x192xbf16, #tpu.memory_space<vmem>>, vector<1x1x64x192xbf16>
    %176 = vector.shape_cast %175 : vector<1x1x64x192xbf16> to vector<64x192xbf16>
    %cst_206 = arith.constant dense<0.000000e+00> : vector<56x192xf32>
    %177 = tpu.matmul %174, %176, %cst_206 {dimension_numbers = #tpu.dot_dimension_numbers<[1], [0], [0], [1], [0, 0, 1, 1], [], []>} : vector<56x64xbf16>, vector<64x192xbf16>, vector<56x192xf32> -> vector<56x192xf32>
    %178 = arith.addf %171, %177 : vector<56x192xf32>
    %c2_207 = arith.constant 2 : index
    %c2_208 = arith.constant 2 : index
    %c0_209 = arith.constant 0 : index
    %179 = vector.load %arg9[%c2_207, %c2_208, %c0_209] : memref<11x16x64xf32, #tpu.memory_space<vmem>>, vector<7x8x64xf32>
    %180 = vector.shape_cast %179 : vector<7x8x64xf32> to vector<56x64xf32>
    %181 = arith.truncf %180 : vector<56x64xf32> to vector<56x64xbf16>
    %c2_210 = arith.constant 2 : index
    %c2_211 = arith.constant 2 : index
    %c0_212 = arith.constant 0 : index
    %c0_213 = arith.constant 0 : index
    %182 = vector.load %arg4[%c2_210, %c2_211, %c0_212, %c0_213] : memref<5x5x64x192xbf16, #tpu.memory_space<vmem>>, vector<1x1x64x192xbf16>
    %183 = vector.shape_cast %182 : vector<1x1x64x192xbf16> to vector<64x192xbf16>
    %cst_214 = arith.constant dense<0.000000e+00> : vector<56x192xf32>
    %184 = tpu.matmul %181, %183, %cst_214 {dimension_numbers = #tpu.dot_dimension_numbers<[1], [0], [0], [1], [0, 0, 1, 1], [], []>} : vector<56x64xbf16>, vector<64x192xbf16>, vector<56x192xf32> -> vector<56x192xf32>
    %185 = arith.addf %178, %184 : vector<56x192xf32>
    %c2_215 = arith.constant 2 : index
    %c3_216 = arith.constant 3 : index
    %c0_217 = arith.constant 0 : index
    %186 = vector.load %arg9[%c2_215, %c3_216, %c0_217] : memref<11x16x64xf32, #tpu.memory_space<vmem>>, vector<7x8x64xf32>
    %187 = vector.shape_cast %186 : vector<7x8x64xf32> to vector<56x64xf32>
    %188 = arith.truncf %187 : vector<56x64xf32> to vector<56x64xbf16>
    %c2_218 = arith.constant 2 : index
    %c3_219 = arith.constant 3 : index
    %c0_220 = arith.constant 0 : index
    %c0_221 = arith.constant 0 : index
    %189 = vector.load %arg4[%c2_218, %c3_219, %c0_220, %c0_221] : memref<5x5x64x192xbf16, #tpu.memory_space<vmem>>, vector<1x1x64x192xbf16>
    %190 = vector.shape_cast %189 : vector<1x1x64x192xbf16> to vector<64x192xbf16>
    %cst_222 = arith.constant dense<0.000000e+00> : vector<56x192xf32>
    %191 = tpu.matmul %188, %190, %cst_222 {dimension_numbers = #tpu.dot_dimension_numbers<[1], [0], [0], [1], [0, 0, 1, 1], [], []>} : vector<56x64xbf16>, vector<64x192xbf16>, vector<56x192xf32> -> vector<56x192xf32>
    %192 = arith.addf %185, %191 : vector<56x192xf32>
    %c2_223 = arith.constant 2 : index
    %c4_224 = arith.constant 4 : index
    %c0_225 = arith.constant 0 : index
    %193 = vector.load %arg9[%c2_223, %c4_224, %c0_225] : memref<11x16x64xf32, #tpu.memory_space<vmem>>, vector<7x8x64xf32>
    %194 = vector.shape_cast %193 : vector<7x8x64xf32> to vector<56x64xf32>
    %195 = arith.truncf %194 : vector<56x64xf32> to vector<56x64xbf16>
    %c2_226 = arith.constant 2 : index
    %c4_227 = arith.constant 4 : index
    %c0_228 = arith.constant 0 : index
    %c0_229 = arith.constant 0 : index
    %196 = vector.load %arg4[%c2_226, %c4_227, %c0_228, %c0_229] : memref<5x5x64x192xbf16, #tpu.memory_space<vmem>>, vector<1x1x64x192xbf16>
    %197 = vector.shape_cast %196 : vector<1x1x64x192xbf16> to vector<64x192xbf16>
    %cst_230 = arith.constant dense<0.000000e+00> : vector<56x192xf32>
    %198 = tpu.matmul %195, %197, %cst_230 {dimension_numbers = #tpu.dot_dimension_numbers<[1], [0], [0], [1], [0, 0, 1, 1], [], []>} : vector<56x64xbf16>, vector<64x192xbf16>, vector<56x192xf32> -> vector<56x192xf32>
    %199 = arith.addf %192, %198 : vector<56x192xf32>
    %c3_231 = arith.constant 3 : index
    %c0_232 = arith.constant 0 : index
    %c0_233 = arith.constant 0 : index
    %200 = vector.load %arg9[%c3_231, %c0_232, %c0_233] : memref<11x16x64xf32, #tpu.memory_space<vmem>>, vector<7x8x64xf32>
    %201 = vector.shape_cast %200 : vector<7x8x64xf32> to vector<56x64xf32>
    %202 = arith.truncf %201 : vector<56x64xf32> to vector<56x64xbf16>
    %c3_234 = arith.constant 3 : index
    %c0_235 = arith.constant 0 : index
    %c0_236 = arith.constant 0 : index
    %c0_237 = arith.constant 0 : index
    %203 = vector.load %arg4[%c3_234, %c0_235, %c0_236, %c0_237] : memref<5x5x64x192xbf16, #tpu.memory_space<vmem>>, vector<1x1x64x192xbf16>
    %204 = vector.shape_cast %203 : vector<1x1x64x192xbf16> to vector<64x192xbf16>
    %cst_238 = arith.constant dense<0.000000e+00> : vector<56x192xf32>
    %205 = tpu.matmul %202, %204, %cst_238 {dimension_numbers = #tpu.dot_dimension_numbers<[1], [0], [0], [1], [0, 0, 1, 1], [], []>} : vector<56x64xbf16>, vector<64x192xbf16>, vector<56x192xf32> -> vector<56x192xf32>
    %206 = arith.addf %199, %205 : vector<56x192xf32>
    %c3_239 = arith.constant 3 : index
    %c1_240 = arith.constant 1 : index
    %c0_241 = arith.constant 0 : index
    %207 = vector.load %arg9[%c3_239, %c1_240, %c0_241] : memref<11x16x64xf32, #tpu.memory_space<vmem>>, vector<7x8x64xf32>
    %208 = vector.shape_cast %207 : vector<7x8x64xf32> to vector<56x64xf32>
    %209 = arith.truncf %208 : vector<56x64xf32> to vector<56x64xbf16>
    %c3_242 = arith.constant 3 : index
    %c1_243 = arith.constant 1 : index
    %c0_244 = arith.constant 0 : index
    %c0_245 = arith.constant 0 : index
    %210 = vector.load %arg4[%c3_242, %c1_243, %c0_244, %c0_245] : memref<5x5x64x192xbf16, #tpu.memory_space<vmem>>, vector<1x1x64x192xbf16>
    %211 = vector.shape_cast %210 : vector<1x1x64x192xbf16> to vector<64x192xbf16>
    %cst_246 = arith.constant dense<0.000000e+00> : vector<56x192xf32>
    %212 = tpu.matmul %209, %211, %cst_246 {dimension_numbers = #tpu.dot_dimension_numbers<[1], [0], [0], [1], [0, 0, 1, 1], [], []>} : vector<56x64xbf16>, vector<64x192xbf16>, vector<56x192xf32> -> vector<56x192xf32>
    %213 = arith.addf %206, %212 : vector<56x192xf32>
    %c3_247 = arith.constant 3 : index
    %c2_248 = arith.constant 2 : index
    %c0_249 = arith.constant 0 : index
    %214 = vector.load %arg9[%c3_247, %c2_248, %c0_249] : memref<11x16x64xf32, #tpu.memory_space<vmem>>, vector<7x8x64xf32>
    %215 = vector.shape_cast %214 : vector<7x8x64xf32> to vector<56x64xf32>
    %216 = arith.truncf %215 : vector<56x64xf32> to vector<56x64xbf16>
    %c3_250 = arith.constant 3 : index
    %c2_251 = arith.constant 2 : index
    %c0_252 = arith.constant 0 : index
    %c0_253 = arith.constant 0 : index
    %217 = vector.load %arg4[%c3_250, %c2_251, %c0_252, %c0_253] : memref<5x5x64x192xbf16, #tpu.memory_space<vmem>>, vector<1x1x64x192xbf16>
    %218 = vector.shape_cast %217 : vector<1x1x64x192xbf16> to vector<64x192xbf16>
    %cst_254 = arith.constant dense<0.000000e+00> : vector<56x192xf32>
    %219 = tpu.matmul %216, %218, %cst_254 {dimension_numbers = #tpu.dot_dimension_numbers<[1], [0], [0], [1], [0, 0, 1, 1], [], []>} : vector<56x64xbf16>, vector<64x192xbf16>, vector<56x192xf32> -> vector<56x192xf32>
    %220 = arith.addf %213, %219 : vector<56x192xf32>
    %c3_255 = arith.constant 3 : index
    %c3_256 = arith.constant 3 : index
    %c0_257 = arith.constant 0 : index
    %221 = vector.load %arg9[%c3_255, %c3_256, %c0_257] : memref<11x16x64xf32, #tpu.memory_space<vmem>>, vector<7x8x64xf32>
    %222 = vector.shape_cast %221 : vector<7x8x64xf32> to vector<56x64xf32>
    %223 = arith.truncf %222 : vector<56x64xf32> to vector<56x64xbf16>
    %c3_258 = arith.constant 3 : index
    %c3_259 = arith.constant 3 : index
    %c0_260 = arith.constant 0 : index
    %c0_261 = arith.constant 0 : index
    %224 = vector.load %arg4[%c3_258, %c3_259, %c0_260, %c0_261] : memref<5x5x64x192xbf16, #tpu.memory_space<vmem>>, vector<1x1x64x192xbf16>
    %225 = vector.shape_cast %224 : vector<1x1x64x192xbf16> to vector<64x192xbf16>
    %cst_262 = arith.constant dense<0.000000e+00> : vector<56x192xf32>
    %226 = tpu.matmul %223, %225, %cst_262 {dimension_numbers = #tpu.dot_dimension_numbers<[1], [0], [0], [1], [0, 0, 1, 1], [], []>} : vector<56x64xbf16>, vector<64x192xbf16>, vector<56x192xf32> -> vector<56x192xf32>
    %227 = arith.addf %220, %226 : vector<56x192xf32>
    %c3_263 = arith.constant 3 : index
    %c4_264 = arith.constant 4 : index
    %c0_265 = arith.constant 0 : index
    %228 = vector.load %arg9[%c3_263, %c4_264, %c0_265] : memref<11x16x64xf32, #tpu.memory_space<vmem>>, vector<7x8x64xf32>
    %229 = vector.shape_cast %228 : vector<7x8x64xf32> to vector<56x64xf32>
    %230 = arith.truncf %229 : vector<56x64xf32> to vector<56x64xbf16>
    %c3_266 = arith.constant 3 : index
    %c4_267 = arith.constant 4 : index
    %c0_268 = arith.constant 0 : index
    %c0_269 = arith.constant 0 : index
    %231 = vector.load %arg4[%c3_266, %c4_267, %c0_268, %c0_269] : memref<5x5x64x192xbf16, #tpu.memory_space<vmem>>, vector<1x1x64x192xbf16>
    %232 = vector.shape_cast %231 : vector<1x1x64x192xbf16> to vector<64x192xbf16>
    %cst_270 = arith.constant dense<0.000000e+00> : vector<56x192xf32>
    %233 = tpu.matmul %230, %232, %cst_270 {dimension_numbers = #tpu.dot_dimension_numbers<[1], [0], [0], [1], [0, 0, 1, 1], [], []>} : vector<56x64xbf16>, vector<64x192xbf16>, vector<56x192xf32> -> vector<56x192xf32>
    %234 = arith.addf %227, %233 : vector<56x192xf32>
    %c4_271 = arith.constant 4 : index
    %c0_272 = arith.constant 0 : index
    %c0_273 = arith.constant 0 : index
    %235 = vector.load %arg9[%c4_271, %c0_272, %c0_273] : memref<11x16x64xf32, #tpu.memory_space<vmem>>, vector<7x8x64xf32>
    %236 = vector.shape_cast %235 : vector<7x8x64xf32> to vector<56x64xf32>
    %237 = arith.truncf %236 : vector<56x64xf32> to vector<56x64xbf16>
    %c4_274 = arith.constant 4 : index
    %c0_275 = arith.constant 0 : index
    %c0_276 = arith.constant 0 : index
    %c0_277 = arith.constant 0 : index
    %238 = vector.load %arg4[%c4_274, %c0_275, %c0_276, %c0_277] : memref<5x5x64x192xbf16, #tpu.memory_space<vmem>>, vector<1x1x64x192xbf16>
    %239 = vector.shape_cast %238 : vector<1x1x64x192xbf16> to vector<64x192xbf16>
    %cst_278 = arith.constant dense<0.000000e+00> : vector<56x192xf32>
    %240 = tpu.matmul %237, %239, %cst_278 {dimension_numbers = #tpu.dot_dimension_numbers<[1], [0], [0], [1], [0, 0, 1, 1], [], []>} : vector<56x64xbf16>, vector<64x192xbf16>, vector<56x192xf32> -> vector<56x192xf32>
    %241 = arith.addf %234, %240 : vector<56x192xf32>
    %c4_279 = arith.constant 4 : index
    %c1_280 = arith.constant 1 : index
    %c0_281 = arith.constant 0 : index
    %242 = vector.load %arg9[%c4_279, %c1_280, %c0_281] : memref<11x16x64xf32, #tpu.memory_space<vmem>>, vector<7x8x64xf32>
    %243 = vector.shape_cast %242 : vector<7x8x64xf32> to vector<56x64xf32>
    %244 = arith.truncf %243 : vector<56x64xf32> to vector<56x64xbf16>
    %c4_282 = arith.constant 4 : index
    %c1_283 = arith.constant 1 : index
    %c0_284 = arith.constant 0 : index
    %c0_285 = arith.constant 0 : index
    %245 = vector.load %arg4[%c4_282, %c1_283, %c0_284, %c0_285] : memref<5x5x64x192xbf16, #tpu.memory_space<vmem>>, vector<1x1x64x192xbf16>
    %246 = vector.shape_cast %245 : vector<1x1x64x192xbf16> to vector<64x192xbf16>
    %cst_286 = arith.constant dense<0.000000e+00> : vector<56x192xf32>
    %247 = tpu.matmul %244, %246, %cst_286 {dimension_numbers = #tpu.dot_dimension_numbers<[1], [0], [0], [1], [0, 0, 1, 1], [], []>} : vector<56x64xbf16>, vector<64x192xbf16>, vector<56x192xf32> -> vector<56x192xf32>
    %248 = arith.addf %241, %247 : vector<56x192xf32>
    %c4_287 = arith.constant 4 : index
    %c2_288 = arith.constant 2 : index
    %c0_289 = arith.constant 0 : index
    %249 = vector.load %arg9[%c4_287, %c2_288, %c0_289] : memref<11x16x64xf32, #tpu.memory_space<vmem>>, vector<7x8x64xf32>
    %250 = vector.shape_cast %249 : vector<7x8x64xf32> to vector<56x64xf32>
    %251 = arith.truncf %250 : vector<56x64xf32> to vector<56x64xbf16>
    %c4_290 = arith.constant 4 : index
    %c2_291 = arith.constant 2 : index
    %c0_292 = arith.constant 0 : index
    %c0_293 = arith.constant 0 : index
    %252 = vector.load %arg4[%c4_290, %c2_291, %c0_292, %c0_293] : memref<5x5x64x192xbf16, #tpu.memory_space<vmem>>, vector<1x1x64x192xbf16>
    %253 = vector.shape_cast %252 : vector<1x1x64x192xbf16> to vector<64x192xbf16>
    %cst_294 = arith.constant dense<0.000000e+00> : vector<56x192xf32>
    %254 = tpu.matmul %251, %253, %cst_294 {dimension_numbers = #tpu.dot_dimension_numbers<[1], [0], [0], [1], [0, 0, 1, 1], [], []>} : vector<56x64xbf16>, vector<64x192xbf16>, vector<56x192xf32> -> vector<56x192xf32>
    %255 = arith.addf %248, %254 : vector<56x192xf32>
    %c4_295 = arith.constant 4 : index
    %c3_296 = arith.constant 3 : index
    %c0_297 = arith.constant 0 : index
    %256 = vector.load %arg9[%c4_295, %c3_296, %c0_297] : memref<11x16x64xf32, #tpu.memory_space<vmem>>, vector<7x8x64xf32>
    %257 = vector.shape_cast %256 : vector<7x8x64xf32> to vector<56x64xf32>
    %258 = arith.truncf %257 : vector<56x64xf32> to vector<56x64xbf16>
    %c4_298 = arith.constant 4 : index
    %c3_299 = arith.constant 3 : index
    %c0_300 = arith.constant 0 : index
    %c0_301 = arith.constant 0 : index
    %259 = vector.load %arg4[%c4_298, %c3_299, %c0_300, %c0_301] : memref<5x5x64x192xbf16, #tpu.memory_space<vmem>>, vector<1x1x64x192xbf16>
    %260 = vector.shape_cast %259 : vector<1x1x64x192xbf16> to vector<64x192xbf16>
    %cst_302 = arith.constant dense<0.000000e+00> : vector<56x192xf32>
    %261 = tpu.matmul %258, %260, %cst_302 {dimension_numbers = #tpu.dot_dimension_numbers<[1], [0], [0], [1], [0, 0, 1, 1], [], []>} : vector<56x64xbf16>, vector<64x192xbf16>, vector<56x192xf32> -> vector<56x192xf32>
    %262 = arith.addf %255, %261 : vector<56x192xf32>
    %c4_303 = arith.constant 4 : index
    %c4_304 = arith.constant 4 : index
    %c0_305 = arith.constant 0 : index
    %263 = vector.load %arg9[%c4_303, %c4_304, %c0_305] : memref<11x16x64xf32, #tpu.memory_space<vmem>>, vector<7x8x64xf32>
    %264 = vector.shape_cast %263 : vector<7x8x64xf32> to vector<56x64xf32>
    %265 = arith.truncf %264 : vector<56x64xf32> to vector<56x64xbf16>
    %c4_306 = arith.constant 4 : index
    %c4_307 = arith.constant 4 : index
    %c0_308 = arith.constant 0 : index
    %c0_309 = arith.constant 0 : index
    %266 = vector.load %arg4[%c4_306, %c4_307, %c0_308, %c0_309] : memref<5x5x64x192xbf16, #tpu.memory_space<vmem>>, vector<1x1x64x192xbf16>
    %267 = vector.shape_cast %266 : vector<1x1x64x192xbf16> to vector<64x192xbf16>
    %cst_310 = arith.constant dense<0.000000e+00> : vector<56x192xf32>
    %268 = tpu.matmul %265, %267, %cst_310 {dimension_numbers = #tpu.dot_dimension_numbers<[1], [0], [0], [1], [0, 0, 1, 1], [], []>} : vector<56x64xbf16>, vector<64x192xbf16>, vector<56x192xf32> -> vector<56x192xf32>
    %269 = arith.addf %262, %268 : vector<56x192xf32>
    %c0_311 = arith.constant 0 : index
    %c0_312 = arith.constant 0 : index
    %270 = vector.load %arg5[%c0_311, %c0_312] : memref<1x192xf32, #tpu.memory_space<vmem>>, vector<1x192xf32>
    %271 = vector.broadcast %270 : vector<1x192xf32> to vector<56x192xf32>
    %272 = arith.addf %269, %271 : vector<56x192xf32>
    %cst_313 = arith.constant 0.000000e+00 : f32
    %273 = vector.broadcast %cst_313 : f32 to vector<56x192xf32>
    %274 = arith.maximumf %272, %273 : vector<56x192xf32>
    %c0_314 = arith.constant 0 : index
    %c0_315 = arith.constant 0 : index
    %c0_316 = arith.constant 0 : index
    %275 = vector.load %arg6[%c0_314, %c0_315, %c0_316] : memref<1x56x192xf32, #tpu.memory_space<vmem>>, vector<1x56x192xf32>
    %276 = vector.shape_cast %275 : vector<1x56x192xf32> to vector<56x192xf32>
    %277 = vector.shape_cast %274 : vector<56x192xf32> to vector<1x56x192xf32>
    tpu.vector_store %arg6[%c0_314, %c0_315, %c0_316], %277 {strides = array<i32>} : memref<1x56x192xf32, #tpu.memory_space<vmem>>, vector<1x56x192xf32>,
    return
  }
  func.func @transform_0(%arg0: i32) -> (i32, i32, i32, i32) {
    %c0_i32 = arith.constant 0 : i32
    %c0_i32_0 = arith.constant 0 : i32
    %c0_i32_1 = arith.constant 0 : i32
    %c0_i32_2 = arith.constant 0 : i32
    return %arg0, %c0_i32, %c0_i32_0, %c0_i32_1 : i32, i32, i32, i32
  }
  func.func @transform_1(%arg0: i32) -> (i32, i32, i32, i32) {
    %c0_i32 = arith.constant 0 : i32
    %c0_i32_0 = arith.constant 0 : i32
    %c0_i32_1 = arith.constant 0 : i32
    %c0_i32_2 = arith.constant 0 : i32
    %c0_i32_3 = arith.constant 0 : i32
    return %c0_i32, %c0_i32_0, %c0_i32_1, %c0_i32_2 : i32, i32, i32, i32
  }
  func.func @transform_2(%arg0: i32) -> (i32, i32) {
    %c0_i32 = arith.constant 0 : i32
    %c0_i32_0 = arith.constant 0 : i32
    %c0_i32_1 = arith.constant 0 : i32
    return %c0_i32, %c0_i32_0 : i32, i32
  }
  func.func @transform_3(%arg0: i32) -> (i32, i32, i32, i32) {
    %c0_i32 = arith.constant 0 : i32
    %c0_i32_0 = arith.constant 0 : i32
    %c0_i32_1 = arith.constant 0 : i32
    %c0_i32_2 = arith.constant 0 : i32
    %c0_i32_3 = arith.constant 0 : i32
    return %c0_i32, %c0_i32_0, %c0_i32_1, %c0_i32_2 : i32, i32, i32, i32
  }
  func.func @transform_4(%arg0: i32) -> (i32, i32) {
    %c0_i32 = arith.constant 0 : i32
    %c0_i32_0 = arith.constant 0 : i32
    %c0_i32_1 = arith.constant 0 : i32
    return %c0_i32, %c0_i32_0 : i32, i32
  }
  func.func @transform_5(%arg0: i32) -> (i32, i32, i32) {
    %c0_i32 = arith.constant 0 : i32
    %c0_i32_0 = arith.constant 0 : i32
    %c0_i32_1 = arith.constant 0 : i32
    return %arg0, %c0_i32, %c0_i32_0 : i32, i32, i32
  }
}

</mosaic_0001>

<bundles_post_ra>
// kernel: alexnet_part1_forward.1
= control target key start
LH: loop header
LB: loop body
LE: loop exit
PB: predicated region body
PF: predicated region fallthrough
CT: control target
= control target key end

     0   :  { %s8082_s18 = smov 0   ;;  %s11824_s0 = inlined_call_operand.vmem [shape: f32[2,17,24,48], index: 0, kind: input, shape index: {}]   ;;  %s11825_s1 = inlined_call_operand.vmem [shape: bf16[3,3,48,64], index: 1, kind: input, shape index: {}]   ;;  %s11826_s2 = inlined_call_operand.vmem [shape: f32[1,64], index: 2, kind: input, shape index: {}]   ;;  %s11827_s3 = inlined_call_operand.vmem [shape: bf16[5,5,64,192], index: 3, kind: input, shape index: {}]   ;;  %s11828_s4 = inlined_call_operand.vmem [shape: f32[1,192], index: 4, kind: input, shape index: {}]   ;;  %s11829_s5 = inlined_call_operand.vmem [shape: f32[2,56,192], index: 5, kind: output, shape index: {}]  }
   0x1 LB: > { %s6123_s19 = sadd.s32 4294967295, %s8049_s18   ;;  %p6127_p0 = scmp.ge.s32.totalorder %s8049_s18, 1  ;;  %s8049_s18 = sphi %s8082_s18, %s15_s18  }
   0x2   : > { %p187_p1 = scmp.lt.s32.totalorder %s8049_s18, 3 }
   0x4   : > { %p188_p2 = pnand %p6127_p0, %p187_p1 }
   0x6   : > { %191 = sbr.rel (%p188_p2) target bundleno = 1785 (0x6f9), region = 40 }
   0xb   : > { %v7800_v0 = vld [vmem:[%s11825_s1 + $0x28] sm:$0xff]  ;;  %v7797_v1 = vld [vmem:[%s11825_s1 + $0x10] sm:$0xff]  ;;  %p215_p3 = scmp.lt.s32.totalorder %s6123_s19, 1  ;;  %v7799_v2 = vld [vmem:[%s11825_s1 + $0x20] sm:$0xff]  ;;  %vm347_vm0 = vcmask 392192   ;;  %vm2293_vm1 = vcmask 523264  }
   0xc   : > { %398 = vmatpush.bf16.msra.mxu0 %v7800_v0  ;;  %545 = vmatpush.bf16.msra.mxu1 %v7797_v1  ;;  %v7796_v3 = vld [vmem:[%s11825_s1 + $0x8] sm:$0xff]  ;;  %v7798_v4 = vld [vmem:[%s11825_s1 + $0x18] sm:$0xff]  ;;  %v7795_v5 = vld [vmem:[%s11825_s1] sm:$0xff]  ;;  %vm2488_vm2 = vcmask 522240  }
   0xd   : > { %s11897_s19 = smov (!%p215_p3, %s6123_s19), 1  ;;  %8025 = vmatpush.bf16.msra.mxu2 %v7797_v1  ;;  %8022 = vmatpush.bf16.msra.mxu3 %v7800_v0  ;;  %v7809_v6 = vld [vmem:[%s11825_s1 + $0x70] sm:$0xff]  ;;  %v7803_v7 = vld [vmem:[%s11825_s1 + $0x40] sm:$0xff]  ;;  %v7806_v17 = vld [vmem:[%s11825_s1 + $0x58] sm:$0xff] }
   0xe   : > { %s8028_s28 = smul.u32 408, %s11897_s19  ;;  %v7802_v21 = vld [vmem:[%s11825_s1 + $0x38] sm:$0xff]  ;;  %v7805_v22 = vld [vmem:[%s11825_s1 + $0x50] sm:$0xff]  ;;  %v7804_v24 = vld [vmem:[%s11825_s1 + $0x48] sm:$0xff] }
   0xf   : > { %v7801_v23 = vld [vmem:[%s11825_s1 + $0x30] sm:$0xff]  ;;  %v7808_v43 = vld [vmem:[%s11825_s1 + $0x68] sm:$0xff]  ;;  %s8029_s12 = smul.u32 112, %s11897_s19 }
  0x10   : > { %399 = vmatpush.bf16.msra.mxu0 %v7799_v2  ;;  %546 = vmatpush.bf16.msra.mxu1 %v7796_v3  ;;  %s8114_s10 = scalar_lea.vmem %s11824_s0, %s8028_s28 }
  0x11   : > { %8026 = vmatpush.bf16.msra.mxu2 %v7796_v3  ;;  %v277_v8 = vld [vmem:[%s8114_s10 + $0x1] sm:$0xff]  ;;  %v278_v9 = vld [vmem:[%s8114_s10 + $0x9] sm:$0xff]  ;;  %8023 = vmatpush.bf16.msra.mxu3 %v7799_v2  ;;  %v252_v12 = vld [vmem:[%s8114_s10 + $0x138] sm:$0xff]  ;;  %s11743_s15 = scalar_lea.vmem %s11829_s5, %s8029_s12 }
  0x12   : > { %v226_v10 = vld [vmem:[%s8114_s10] sm:$0xff]  ;;  %v227_v11 = vld [vmem:[%s8114_s10 + $0x8] sm:$0xff]  ;;  %v307_v14 = vpack.c.bf16 %v278_v9, %v277_v8  ;;  %v305_v18 = vld [vmem:[%s8114_s10 + $0x151] sm:$0xff] }
  0x13   : > { %v253_v13 = vld [vmem:[%s8114_s10 + $0x140] sm:$0xff]  ;;  %v256_v15 = vpack.c.bf16 %v227_v11, %v226_v10  ;;  %v228_v27 = vld [vmem:[%s8114_s10 + $0x18] sm:$0xff]  ;;  %v254_v29 = vld [vmem:[%s8114_s10 + $0x150] sm:$0xff] }
  0x14   : > { %400 = vmatpush.bf16.msra.mxu0 %v7798_v4  ;;  %547 = vmatpush.bf16.msra.mxu1 %v7795_v5  ;;  %v8128_v16 = vpack.c.bf16 %v253_v13, %v252_v12  ;;  %v306_v19 = vld [vmem:[%s8114_s10 + $0x159] sm:$0xff]  ;;  %v280_v26 = vld [vmem:[%s8114_s10 + $0x21] sm:$0xff]  ;;  %v281_v34 = vld [vmem:[%s8114_s10 + $0x31] sm:$0xff] }
  0x15   : > { %8027 = vmatpush.bf16.msra.mxu2 %v7795_v5  ;;  %8024 = vmatpush.bf16.msra.mxu3 %v7798_v4  ;;  %v321_v20 = vpack.c.bf16 %v306_v19, %v305_v18  ;;  %v279_v25 = vld [vmem:[%s8114_s10 + $0x19] sm:$0xff]  ;;  %v230_v36 = vld [vmem:[%s8114_s10 + $0x30] sm:$0xff]  ;;  %v624_v38 = vld [vmem:[%s8114_s10 + $0x2] sm:$0xff] }
  0x16   : > { %v229_v28 = vld [vmem:[%s8114_s10 + $0x20] sm:$0xff]  ;;  %v255_v30 = vld [vmem:[%s8114_s10 + $0x158] sm:$0xff]  ;;  %v8158_v31 = vpack.c.bf16 %v280_v26, %v279_v25  ;;  %v625_v39 = vld [vmem:[%s8114_s10 + $0xa] sm:$0xff] }
  0x17   : > { %6148 = vmatmul.msk.bf16.vlgmr.msra.gmra.mxu0 %vm347_vm0, %v307_v14  ;;  %6175 = vmatmul.msk.bf16.vlgmr.msra.gmra.mxu1 %vm347_vm0, %v256_v15  ;;  %v257_v32 = vpack.c.bf16 %v229_v28, %v228_v27  ;;  %v8160_v33 = vpack.c.bf16 %v255_v30, %v254_v29  ;;  %v282_v35 = vld [vmem:[%s8114_s10 + $0x39] sm:$0xff]  ;;  %v654_v42 = vpack.c.bf16 %v625_v39, %v624_v38  ;;  %v283_v44 = vld [vmem:[%s8114_s10 + $0x49] sm:$0xff]  ;;  %v284_v45 = vld [vmem:[%s8114_s10 + $0x51] sm:$0xff] }
  0x18   : > { %1203 = vmatpush.bf16.msrb.mxu0 %v7809_v6  ;;  %6188 = vmatmul.msk.bf16.vlgmr.msra.gmra.mxu2 %vm347_vm0, %v8128_v16  ;;  %v231_v37 = vld [vmem:[%s8114_s10 + $0x38] sm:$0xff]  ;;  %v8174_v40 = vpack.c.bf16 %v282_v35, %v281_v34  ;;  %v232_v46 = vld [vmem:[%s8114_s10 + $0x48] sm:$0xff]  ;;  %v233_v47 = vld [vmem:[%s8114_s10 + $0x50] sm:$0xff]  ;;  %v8194_v50 = vpack.c.bf16 %v284_v45, %v283_v44 }
  0x19   : > { %744 = vmatpush.bf16.msrb.mxu2 %v7803_v7  ;;  %974 = vmatpush.bf16.msrb.mxu3 %v7806_v17  ;;  %v8176_v41 = vpack.c.bf16 %v231_v37, %v230_v36  ;;  %v626_v48 = vld [vmem:[%s8114_s10 + $0x1a] sm:$0xff]  ;;  %v627_v49 = vld [vmem:[%s8114_s10 + $0x22] sm:$0xff]  ;;  %v8196_v51 = vpack.c.bf16 %v233_v47, %v232_v46  ;;  %v628_v57 = vld [vmem:[%s8114_s10 + $0x32] sm:$0xff] }
  0x1a   : > { %6162 = vmatmul.msk.bf16.vlgmr.msra.gmra.mxu3 %vm347_vm0, %v321_v20  ;;  %v8198_v52 = vpack.c.bf16 %v627_v49, %v626_v48  ;;  %v285_v53 = vld [vmem:[%s8114_s10 + $0x61] sm:$0xff]  ;;  %v286_v54 = vld [vmem:[%s8114_s10 + $0x69] sm:$0xff]  ;;  %v287_v62 = vld [vmem:[%s8114_s10 + $0x79] sm:$0xff] }
  0x1b   : > { %v234_v55 = vld [vmem:[%s8114_s10 + $0x60] sm:$0xff]  ;;  %v235_v56 = vld [vmem:[%s8114_s10 + $0x68] sm:$0xff]  ;;  %v8214_v59 = vpack.c.bf16 %v286_v54, %v285_v53  ;;  %v236_v0 = vld [vmem:[%s8114_s10 + $0x78] sm:$0xff] }
  0x1c   : > { %1204 = vmatpush.bf16.msrb.mxu0 %v7808_v43  ;;  %v629_v58 = vld [vmem:[%s8114_s10 + $0x3a] sm:$0xff]  ;;  %v8216_v60 = vpack.c.bf16 %v235_v56, %v234_v55  ;;  %v630_v2 = vld [vmem:[%s8114_s10 + $0x4a] sm:$0xff]  ;;  %v631_v3 = vld [vmem:[%s8114_s10 + $0x52] sm:$0xff] }
  0x1d   : > { %745 = vmatpush.bf16.msrb.mxu2 %v7802_v21  ;;  %975 = vmatpush.bf16.msrb.mxu3 %v7805_v22  ;;  %v8218_v61 = vpack.c.bf16 %v629_v58, %v628_v57  ;;  %v288_v63 = vld [vmem:[%s8114_s10 + $0x81] sm:$0xff]  ;;  %v8238_v6 = vpack.c.bf16 %v631_v3, %v630_v2  ;;  %v289_v7 = vld [vmem:[%s8114_s10 + $0x91] sm:$0xff]  ;;  %v290_v8 = vld [vmem:[%s8114_s10 + $0x99] sm:$0xff] }
  0x1e   : > { %v237_v1 = vld [vmem:[%s8114_s10 + $0x80] sm:$0xff]  ;;  %v8234_v4 = vpack.c.bf16 %v288_v63, %v287_v62  ;;  %v238_v9 = vld [vmem:[%s8114_s10 + $0x90] sm:$0xff]  ;;  %v239_v10 = vld [vmem:[%s8114_s10 + $0x98] sm:$0xff]  ;;  %v8254_v13 = vpack.c.bf16 %v290_v8, %v289_v7 }
  0x1f   : > { %v8236_v5 = vpack.c.bf16 %v237_v1, %v236_v0  ;;  %v632_v11 = vld [vmem:[%s8114_s10 + $0x62] sm:$0xff]  ;;  %v633_v12 = vld [vmem:[%s8114_s10 + $0x6a] sm:$0xff]  ;;  %v8256_v14 = vpack.c.bf16 %v239_v10, %v238_v9  ;;  %v634_v21 = vld [vmem:[%s8114_s10 + $0x7a] sm:$0xff] }
  0x20   : > { %v8258_v15 = vpack.c.bf16 %v633_v12, %v632_v11  ;;  %v291_v17 = vld [vmem:[%s8114_s10 + $0xa9] sm:$0xff]  ;;  %v292_v18 = vld [vmem:[%s8114_s10 + $0xb1] sm:$0xff]  ;;  %v7807_v26 = vld [vmem:[%s11825_s1 + $0x60] sm:$0xff] }
  0x21   : > { %746 = vmatpush.bf16.msrb.mxu2 %v7801_v23  ;;  %976 = vmatpush.bf16.msrb.mxu3 %v7804_v24  ;;  %v240_v19 = vld [vmem:[%s8114_s10 + $0xa8] sm:$0xff]  ;;  %v241_v20 = vld [vmem:[%s8114_s10 + $0xb0] sm:$0xff]  ;;  %v8274_v23 = vpack.c.bf16 %v292_v18, %v291_v17  ;;  %v242_v29 = vld [vmem:[%s8114_s10 + $0xc0] sm:$0xff] }
  0x22   : > { %v635_v22 = vld [vmem:[%s8114_s10 + $0x82] sm:$0xff]  ;;  %v8276_v24 = vpack.c.bf16 %v241_v20, %v240_v19  ;;  %1205 = vmatpush.bf16.msrb.mxu0 %v7807_v26  ;;  %v637_v34 = vld [vmem:[%s8114_s10 + $0x9a] sm:$0xff]  ;;  %v638_v55 = vld [vmem:[%s8114_s10 + $0xaa] sm:$0xff] }
  0x23   : > { %v8278_v25 = vpack.c.bf16 %v635_v22, %v634_v21  ;;  %v293_v27 = vld [vmem:[%s8114_s10 + $0xc1] sm:$0xff]  ;;  %v294_v28 = vld [vmem:[%s8114_s10 + $0xc9] sm:$0xff]  ;;  %v295_v48 = vld [vmem:[%s8114_s10 + $0xd9] sm:$0xff] }
  0x24   : > { %v243_v30 = vld [vmem:[%s8114_s10 + $0xc8] sm:$0xff]  ;;  %v8297_v35 = vpack.c.bf16 %v294_v28, %v293_v27  ;;  %v244_v53 = vld [vmem:[%s8114_s10 + $0xd8] sm:$0xff]  ;;  %v245_v54 = vld [vmem:[%s8114_s10 + $0xe0] sm:$0xff] }
  0x25   : > { %v8299_v36 = vpack.c.bf16 %v243_v30, %v242_v29  ;;  %v296_v49 = vld [vmem:[%s8114_s10 + $0xe1] sm:$0xff]  ;;  %v639_v56 = vld [vmem:[%s8114_s10 + $0xb2] sm:$0xff]  ;;  %v8323_v62 = vpack.c.bf16 %v245_v54, %v244_v53  ;;  %v641_v22 = vld [vmem:[%s8114_s10 + $0xca] sm:$0xff] }
  0x26   : > { %v8321_v58 = vpack.c.bf16 %v296_v49, %v295_v48  ;;  %v8325_v1 = vpack.c.bf16 %v639_v56, %v638_v55  ;;  %v297_v17 = vld [vmem:[%s8114_s10 + $0xf1] sm:$0xff]  ;;  %v298_v18 = vld [vmem:[%s8114_s10 + $0xf9] sm:$0xff]  ;;  %v640_v21 = vld [vmem:[%s8114_s10 + $0xc2] sm:$0xff] }
  0x27   : > { %6149 = vmatmul.msk.bf16.gmra.mxu0 %vm347_vm0, %v8158_v31  ;;  %6176 = vmatmul.msk.bf16.gmra.mxu1 %vm347_vm0, %v257_v32  ;;  %v246_v19 = vld [vmem:[%s8114_s10 + $0xf0] sm:$0xff]  ;;  %v247_v20 = vld [vmem:[%s8114_s10 + $0xf8] sm:$0xff]  ;;  %v8345_v27 = vpack.c.bf16 %v298_v18, %v297_v17 }
  0x28   : > { %6189 = vmatmul.msk.bf16.gmra.mxu2 %vm347_vm0, %v8160_v33  ;;  %v8347_v28 = vpack.c.bf16 %v247_v20, %v246_v19  ;;  %v299_v55 = vld [vmem:[%s8114_s10 + $0x109] sm:$0xff]  ;;  %v300_v56 = vld [vmem:[%s8114_s10 + $0x111] sm:$0xff] }
  0x2a   : > { %6271 = vmatmul.msk.bf16.vlgmr.msrb.gmra.mxu3 %vm347_vm0, %v257_v32  ;;  %v636_v32 = vld [vmem:[%s8114_s10 + $0x92] sm:$0xff]  ;;  %11840 = vst [vmem:[#allocation5_spill] sm:$0xff] %v8347_v28 }
  0x2b   : > { %v8301_v39 = vpack.c.bf16 %v637_v34, %v636_v32  ;;  %v8351_v34 = vpack.c.bf16 %v641_v22, %v640_v21 }
  0x37   : > { %6150 = vmatmul.msk.bf16.gmra.mxu0 %vm347_vm0, %v8174_v40  ;;  %6177 = vmatmul.msk.bf16.gmra.mxu1 %vm347_vm0, %v8176_v41 }
  0x38   : > { %6208 = vmatmul.msk.bf16.vlgmr.msrb.gmra.mxu2 %vm347_vm0, %v654_v42 }
  0x3a   : > { %6272 = vmatmul.msk.bf16.gmra.mxu3 %vm347_vm0, %v8176_v41 }
  0x47   : > { %6151 = vmatmul.msk.bf16.gmra.mxu0 %vm347_vm0, %v8194_v50  ;;  %6178 = vmatmul.msk.bf16.gmra.mxu1 %vm347_vm0, %v8196_v51 }
  0x48   : > { %6209 = vmatmul.msk.bf16.gmra.mxu2 %vm347_vm0, %v8198_v52 }
  0x4a   : > { %6273 = vmatmul.msk.bf16.gmra.mxu3 %vm347_vm0, %v8196_v51 }
  0x57   : > { %6152 = vmatmul.msk.bf16.gmra.mxu0 %vm347_vm0, %v8214_v59  ;;  %6179 = vmatmul.msk.bf16.gmra.mxu1 %vm347_vm0, %v8216_v60 }
  0x58   : > { %6210 = vmatmul.msk.bf16.gmra.mxu2 %vm347_vm0, %v8218_v61 }
  0x5a   : > { %6274 = vmatmul.msk.bf16.gmra.mxu3 %vm347_vm0, %v8216_v60 }
  0x67   : > { %6153 = vmatmul.msk.bf16.gmra.mxu0 %vm347_vm0, %v8234_v4  ;;  %6180 = vmatmul.msk.bf16.gmra.mxu1 %vm347_vm0, %v8236_v5 }
  0x68   : > { %6211 = vmatmul.msk.bf16.gmra.mxu2 %vm347_vm0, %v8238_v6 }
  0x6a   : > { %6275 = vmatmul.msk.bf16.gmra.mxu3 %vm347_vm0, %v8236_v5 }
  0x77   : > { %6154 = vmatmul.msk.bf16.gmra.mxu0 %vm347_vm0, %v8254_v13  ;;  %6181 = vmatmul.msk.bf16.gmra.mxu1 %vm347_vm0, %v8256_v14 }
  0x78   : > { %6212 = vmatmul.msk.bf16.gmra.mxu2 %vm347_vm0, %v8258_v15 }
  0x7a   : > { %6276 = vmatmul.msk.bf16.gmra.mxu3 %vm347_vm0, %v8256_v14 }
  0x87   : > { %6155 = vmatmul.msk.bf16.gmra.mxu0 %vm347_vm0, %v8274_v23  ;;  %6182 = vmatmul.msk.bf16.gmra.mxu1 %vm347_vm0, %v8276_v24 }
  0x88   : > { %6213 = vmatmul.msk.bf16.gmra.mxu2 %vm347_vm0, %v8278_v25 }
  0x8a   : > { %6277 = vmatmul.msk.bf16.gmra.mxu3 %vm347_vm0, %v8276_v24 }
  0x94   : > { %v402_v37 = vpop.f32.mrf.mxu0  ;;  %v549_v38 = vpop.f32.mrf.mxu1 }
  0x95   : > { %v550_v42 = vadd.f32 %v549_v38, %v402_v37 }
  0x97   : > { %6156 = vmatmul.msk.bf16.gmra.mxu0 %vm347_vm0, %v8297_v35  ;;  %6183 = vmatmul.msk.bf16.gmra.mxu1 %vm347_vm0, %v8299_v36 }
  0x98   : > { %6214 = vmatmul.msk.bf16.gmra.mxu2 %vm347_vm0, %v8301_v39 }
  0x9a   : > { %6278 = vmatmul.msk.bf16.gmra.mxu3 %vm347_vm0, %v8299_v36 }
  0x9b   : > { %v8311_v43 = vpop.f32.mrf.mxu2 }
  0x9c   : > { %v404_v44 = vpop.f32.mrf.mxu0  ;;  %v551_v45 = vpop.f32.mrf.mxu1 }
  0x9d   : > { %v552_v46 = vadd.f32 %v551_v45, %v404_v44  ;;  %v472_v47 = vpop.f32.mrf.mxu3 }
  0xa3   : > { %v8319_v57 = vpop.f32.mrf.mxu2 }
  0xa4   : > { %v407_v63 = vpop.f32.mrf.mxu0  ;;  %v554_v0 = vpop.f32.mrf.mxu1 }
  0xa5   : > { %v555_v2 = vadd.f32 %v554_v0, %v407_v63  ;;  %v474_v3 = vpop.f32.mrf.mxu3  ;;  %v248_v63 = vld [vmem:[%s8114_s10 + $0x108] sm:$0xff]  ;;  %v249_v0 = vld [vmem:[%s8114_s10 + $0x110] sm:$0xff] }
  0xa6   : > { %v8375_v17 = vpack.c.bf16 %v249_v0, %v248_v63  ;;  %v250_v63 = vld [vmem:[%s8114_s10 + $0x120] sm:$0xff]  ;;  %v251_v0 = vld [vmem:[%s8114_s10 + $0x128] sm:$0xff] }
  0xa7   : > { %6157 = vmatmul.msk.bf16.gmra.mxu0 %vm347_vm0, %v8321_v58  ;;  %6184 = vmatmul.msk.bf16.gmra.mxu1 %vm347_vm0, %v8323_v62 }
  0xa8   : > { %6215 = vmatmul.msk.bf16.gmra.mxu2 %vm347_vm0, %v8325_v1  ;;  %11841 = vst [vmem:[#allocation6_spill] sm:$0xff] %v8375_v17 }
  0xaa   : > { %6279 = vmatmul.msk.bf16.gmra.mxu3 %vm347_vm0, %v8323_v62 }
  0xab   : > { %v619_v7 = vpop.f32.mrf.mxu2 }
  0xac   : > { %v409_v8 = vpop.f32.mrf.mxu0  ;;  %v8335_v9 = vadd.f32 %v619_v7, %v472_v47  ;;  %v556_v10 = vpop.f32.mrf.mxu1  ;;  %v643_v7 = vld [vmem:[%s8114_s10 + $0xe2] sm:$0xff] }
  0xad   : > { %v8337_v11 = vadd.f32 %v556_v10, %v409_v8  ;;  %v978_v12 = vpop.f32.mrf.mxu3  ;;  %v8373_v10 = vpack.c.bf16 %v300_v56, %v299_v55  ;;  %v301_v55 = vld [vmem:[%s8114_s10 + $0x121] sm:$0xff]  ;;  %v302_v56 = vld [vmem:[%s8114_s10 + $0x129] sm:$0xff] }
  0xb3   : > { %v621_v26 = vpop.f32.mrf.mxu2 }
  0xb4   : > { %v412_v29 = vpop.f32.mrf.mxu0  ;;  %v8349_v30 = vadd.f32 %v621_v26, %v474_v3  ;;  %v559_v32 = vpop.f32.mrf.mxu1  ;;  %v642_v3 = vld [vmem:[%s8114_s10 + $0xda] sm:$0xff] }
  0xb5   : > { %v8353_v37 = vadd.f32 %v559_v32, %v412_v29  ;;  %v980_v38 = vpop.f32.mrf.mxu3  ;;  %v8377_v20 = vpack.c.bf16 %v643_v7, %v642_v3  ;;  %v644_v3 = vld [vmem:[%s8114_s10 + $0xf2] sm:$0xff]  ;;  %v645_v7 = vld [vmem:[%s8114_s10 + $0xfa] sm:$0xff] }
  0xb7   : > { %6158 = vmatmul.msk.bf16.gmra.mxu0 %vm347_vm0, %v8345_v27  ;;  %6185 = vmatmul.msk.bf16.gmra.mxu1 %vm347_vm0, %v8347_v28 }
  0xb8   : > { %6216 = vmatmul.msk.bf16.gmra.mxu2 %vm347_vm0, %v8351_v34 }
  0xba   : > { %6280 = vmatmul.msk.bf16.gmra.mxu3 %vm347_vm0, %v8347_v28 }
  0xbb   : > { %v748_v44 = vpop.f32.mrf.mxu2 }
  0xbc   : > { %v823_v45 = vadd.f32 %v748_v44, %v550_v42  ;;  %v414_v47 = vpop.f32.mrf.mxu0  ;;  %v561_v48 = vpop.f32.mrf.mxu1 }
  0xbd   : > { %v8363_v49 = vadd.f32 %v561_v48, %v414_v47  ;;  %v983_v53 = vpop.f32.mrf.mxu3  ;;  %v7815_v48 = vld [vmem:[%s11825_s1 + $0xa0] sm:$0xff] }
  0xbe   : > { %v8365_v54 = vadd.f32 %v978_v12, %v823_v45  ;;  %v7812_v45 = vld [vmem:[%s11825_s1 + $0x88] sm:$0xff]  ;;  %1662 = vmatpush.bf16.msra.mxu2 %v7815_v48  ;;  %v7810_v48 = vld [vmem:[%s11825_s1 + $0x78] sm:$0xff] }
  0xbf   : > { %1432 = vmatpush.bf16.msrb.mxu1 %v7812_v45 }
  0xc3   : > { %v750_v8 = vpop.f32.mrf.mxu2 }
  0xc4   : > { %v824_v18 = vadd.f32 %v750_v8, %v552_v46  ;;  %v417_v42 = vpop.f32.mrf.mxu0  ;;  %v564_v19 = vpop.f32.mrf.mxu1 }
  0xc5   : > { %v8379_v21 = vadd.f32 %v564_v19, %v417_v42  ;;  %v985_v12 = vpop.f32.mrf.mxu3  ;;  %v8415_v42 = vpack.c.bf16 %v251_v0, %v250_v63 }
  0xc6   : > { %v8381_v22 = vadd.f32 %v980_v38, %v824_v18  ;;  %v8413_v18 = vpack.c.bf16 %v302_v56, %v301_v55 }
  0xc7   : > { %6159 = vmatmul.msk.bf16.gmra.mxu0 %vm347_vm0, %v8373_v10  ;;  %6186 = vmatmul.msk.bf16.gmra.mxu1 %vm347_vm0, %v8375_v17  ;;  %11842 = vst [vmem:[#allocation7_spill] sm:$0xff] %v8415_v42 }
  0xc8   : > { %6217 = vmatmul.msk.bf16.gmra.mxu2 %vm347_vm0, %v8377_v20 }
  0xca   : > { %6281 = vmatmul.msk.bf16.gmra.mxu3 %vm347_vm0, %v8375_v17 }
  0xcb   : > { %v753_v46 = vpop.f32.mrf.mxu2 }
  0xcc   : > { %v825_v26 = vadd.f32 %v753_v46, %v555_v2  ;;  %v419_v29 = vpop.f32.mrf.mxu0  ;;  %v566_v32 = vpop.f32.mrf.mxu1  ;;  %v7818_v2 = vld [vmem:[%s11825_s1 + $0xb8] sm:$0xff] }
  0xcd   : > { %v8391_v38 = vadd.f32 %v566_v32, %v419_v29  ;;  %v988_v44 = vpop.f32.mrf.mxu3  ;;  %1891 = vmatpush.bf16.msra.mxu3 %v7818_v2  ;;  %v8418_v29 = vpack.c.bf16 %v645_v7, %v644_v3 }
  0xce   : > { %v8396_v47 = vadd.f32 %v983_v53, %v825_v26  ;;  %v7811_v53 = vld [vmem:[%s11825_s1 + $0x80] sm:$0xff] }
  0xcf   : > { %1433 = vmatpush.bf16.msrb.mxu1 %v7811_v53  ;;  %v303_v53 = vld [vmem:[%s8114_s10 + $0x139] sm:$0xff] }
  0xd3   : > { %v755_v8 = vpop.f32.mrf.mxu2  ;;  %1434 = vmatpush.bf16.msrb.mxu1 %v7810_v48 }
  0xd4   : > { %v826_v19 = vadd.f32 %v755_v8, %v8337_v11  ;;  %v422_v46 = vpop.f32.mrf.mxu0  ;;  %v569_v26 = vpop.f32.mrf.mxu1  ;;  %v7821_v11 = vld [vmem:[%s11825_s1 + $0xd0] sm:$0xff]  ;;  %v304_v8 = vld [vmem:[%s8114_s10 + $0x141] sm:$0xff] }
  0xd5   : > { %v570_v32 = vadd.f32 %v569_v26, %v422_v46  ;;  %v990_v45 = vpop.f32.mrf.mxu3  ;;  %2120 = vmatpush.bf16.msra.mxu0 %v7821_v11  ;;  %v647_v46 = vld [vmem:[%s8114_s10 + $0x112] sm:$0xff]  ;;  %v8443_v48 = vpack.c.bf16 %v304_v8, %v303_v53  ;;  %v648_v53 = vld [vmem:[%s8114_s10 + $0x122] sm:$0xff]  ;;  %v649_v8 = vld [vmem:[%s8114_s10 + $0x12a] sm:$0xff] }
  0xd6   : > { %v8423_v2 = vadd.f32 %v985_v12, %v826_v19  ;;  %v646_v19 = vld [vmem:[%s8114_s10 + $0x10a] sm:$0xff] }
  0xd7   : > { %6160 = vmatmul.msk.bf16.gmra.mxu0 %vm347_vm0, %v8413_v18  ;;  %6187 = vmatmul.msk.bf16.gmra.mxu1 %vm347_vm0, %v8415_v42  ;;  %11843 = vst [vmem:[#allocation8_spill] sm:$0xff] %v8443_v48  ;;  %v8446_v28 = vpack.c.bf16 %v647_v46, %v646_v19 }
  0xd8   : > { %6218 = vmatmul.msk.bf16.gmra.mxu2 %vm347_vm0, %v8418_v29 }
  0xda   : > { %6282 = vmatmul.msk.bf16.gmra.mxu3 %vm347_vm0, %v8415_v42 }
  0xdb   : > { %v758_v12 = vpop.f32.mrf.mxu2 }
  0xdc   : > { %v827_v55 = vadd.f32 %v758_v12, %v8353_v37  ;;  %v424_v56 = vpop.f32.mrf.mxu0  ;;  %v571_v63 = vpop.f32.mrf.mxu1 }
  0xdd   : > { %v572_v0 = vadd.f32 %v571_v63, %v424_v56  ;;  %v993_v3 = vpop.f32.mrf.mxu3 }
  0xde   : > { %v8437_v7 = vadd.f32 %v988_v44, %v827_v55 }
  0xe3   : > { %v760_v26 = vpop.f32.mrf.mxu2 }
  0xe4   : > { %v828_v17 = vadd.f32 %v760_v26, %v8363_v49  ;;  %v427_v42 = vpop.f32.mrf.mxu0  ;;  %v574_v11 = vpop.f32.mrf.mxu1 }
  0xe5   : > { %v575_v37 = vadd.f32 %v574_v11, %v427_v42  ;;  %v995_v12 = vpop.f32.mrf.mxu3  ;;  %v8464_v11 = vpack.c.bf16 %v649_v8, %v648_v53  ;;  %v651_v53 = vld [vmem:[%s8114_s10 + $0x142] sm:$0xff]  ;;  %v7817_v8 = vld [vmem:[%s11825_s1 + $0xb0] sm:$0xff] }
  0xe6   : > { %v8448_v56 = vadd.f32 %v990_v45, %v828_v17  ;;  %1892 = vmatpush.bf16.msra.mxu3 %v7817_v8 }
  0xe7   : > { %6161 = vmatmul.msk.bf16.gmra.mxu0 %vm347_vm0, %v8443_v48  ;;  %6397 = vmatmul.msk.bf16.vlgmr.msrb.gmra.mxu1 %vm347_vm0, %v8198_v52 }
  0xe8   : > { %6219 = vmatmul.msk.bf16.gmra.mxu2 %vm347_vm0, %v8446_v28 }
  0xea   : > { %6283 = vmatmul.msk.bf16.gmra.mxu3 %vm347_vm0, %v8128_v16 }
  0xeb   : > { %v763_v49 = vpop.f32.mrf.mxu2 }
  0xec   : > { %v829_v44 = vadd.f32 %v763_v49, %v8379_v21  ;;  %v429_v55 = vpop.f32.mrf.mxu0  ;;  %v576_v42 = vpop.f32.mrf.mxu1 }
  0xed   : > { %v577_v63 = vadd.f32 %v576_v42, %v429_v55  ;;  %v998_v17 = vpop.f32.mrf.mxu3 }
  0xee   : > { %v8459_v45 = vadd.f32 %v993_v3, %v829_v44 }
  0xf3   : > { %v765_v19 = vpop.f32.mrf.mxu2 }
  0xf4   : > { %v830_v52 = vadd.f32 %v765_v19, %v8391_v38  ;;  %v432_v46 = vpop.f32.mrf.mxu0  ;;  %v579_v26 = vpop.f32.mrf.mxu1  ;;  %v6252_v19 = vld [vmem:[%s8114_s10 + $0x170] sm:$0xff] }
  0xf5   : > { %v580_v48 = vadd.f32 %v579_v26, %v432_v46  ;;  %v1000_v16 = vpop.f32.mrf.mxu3 }
  0xf6   : > { %v8466_v21 = vadd.f32 %v995_v12, %v830_v52 }
  0xf7   : > { %6334 = vmatmul.msk.bf16.vlgmr.msrb.gmra.mxu0 %vm347_vm0, %v8158_v31  ;;  %6398 = vmatmul.msk.bf16.gmra.mxu1 %vm347_vm0, %v8218_v61  ;;  %v7814_v31 = vld [vmem:[%s11825_s1 + $0x98] sm:$0xff] }
  0xf8   : > { %11844 = vst [vmem:[#allocation9_spill] sm:$0xff] %v8466_v21  ;;  %6220 = vmatmul.msk.bf16.gmra.mxu2 %vm347_vm0, %v8464_v11  ;;  %v650_v61 = vld [vmem:[%s8114_s10 + $0x13a] sm:$0xff] }
  0xf9   : > { %1663 = vmatpush.bf16.msra.mxu2 %v7814_v31  ;;  %v7816_v31 = vld [vmem:[%s11825_s1 + $0xa8] sm:$0xff] }
  0xfa   : > { %6284 = vmatmul.msk.bf16.gmra.mxu3 %vm347_vm0, %v8160_v33  ;;  %v6251_v33 = vld [vmem:[%s8114_s10 + $0x168] sm:$0xff] }
  0xfb   : > { %v768_v38 = vpop.f32.mrf.mxu2  ;;  %1893 = vmatpush.bf16.msra.mxu3 %v7816_v31 }
  0xfc   : > { %v831_v3 = vadd.f32 %v768_v38, %v570_v32  ;;  %v434_v49 = vpop.f32.mrf.mxu0  ;;  %v581_v44 = vpop.f32.mrf.mxu1  ;;  %v8491_v38 = vpack.c.bf16 %v651_v53, %v650_v61 }
  0xfd   : > { %v582_v12 = vadd.f32 %v581_v44, %v434_v49  ;;  %v1003_v55 = vpop.f32.mrf.mxu3  ;;  %v8493_v44 = vpack.c.bf16 %v6252_v19, %v6251_v33 }
  0xfe   : > { %v8476_v42 = vadd.f32 %v998_v17, %v831_v3  ;;  %v7813_v17 = vld [vmem:[%s11825_s1 + $0x90] sm:$0xff]  ;;  %11846 = vst [vmem:[#allocation11_spill] sm:$0xff] %v8491_v38 }
  0xff   : > { %1664 = vmatpush.bf16.msra.mxu2 %v7813_v17  ;;  %v652_v17 = vld [vmem:[%s8114_s10 + $0x152] sm:$0xff] }
 0x100   : > { %11845 = vst [vmem:[#allocation10_spill] sm:$0xff] %v8476_v42 }
 0x103   : > { %v770_v32 = vpop.f32.mrf.mxu2 }
 0x104   : > { %v832_v52 = vadd.f32 %v770_v32, %v572_v0  ;;  %v437_v46 = vpop.f32.mrf.mxu0  ;;  %v584_v26 = vpop.f32.mrf.mxu1 }
 0x105   : > { %v585_v3 = vadd.f32 %v584_v26, %v437_v46  ;;  %v1005_v49 = vpop.f32.mrf.mxu3 }
 0x106   : > { %v8498_v8 = vadd.f32 %v1000_v16, %v832_v52  ;;  %v653_v52 = vld [vmem:[%s8114_s10 + $0x15a] sm:$0xff] }
 0x107   : > { %6335 = vmatmul.msk.bf16.gmra.mxu0 %vm347_vm0, %v8174_v40  ;;  %6399 = vmatmul.msk.bf16.gmra.mxu1 %vm347_vm0, %v8238_v6  ;;  %v8512_v42 = vpack.c.bf16 %v653_v52, %v652_v17 }
 0x108   : > { %11847 = vst [vmem:[#allocation12_spill] sm:$0xff] %v8498_v8  ;;  %6221 = vmatmul.msk.bf16.gmra.mxu2 %vm347_vm0, %v8491_v38 }
 0x10a   : > { %6285 = vmatmul.msk.bf16.gmra.mxu3 %vm347_vm0, %v8493_v44 }
 0x10b   : > { %v773_v0 = vpop.f32.mrf.mxu2 }
 0x10c   : > { %v833_v61 = vadd.f32 %v773_v0, %v575_v37  ;;  %v439_v53 = vpop.f32.mrf.mxu0  ;;  %v586_v33 = vpop.f32.mrf.mxu1 }
 0x10d   : > { %v587_v19 = vadd.f32 %v586_v33, %v439_v53  ;;  %v1008_v16 = vpop.f32.mrf.mxu3 }
 0x10e   : > { %v8508_v32 = vadd.f32 %v1003_v55, %v833_v61 }
 0x113   : > { %v775_v46 = vpop.f32.mrf.mxu2 }
 0x114   : > { %v834_v26 = vadd.f32 %v775_v46, %v577_v63  ;;  %v442_v6 = vpop.f32.mrf.mxu0  ;;  %v589_v8 = vpop.f32.mrf.mxu1 }
 0x115   : > { %v590_v31 = vadd.f32 %v589_v8, %v442_v6  ;;  %v1010_v21 = vpop.f32.mrf.mxu3 }
 0x116   : > { %v8514_v38 = vadd.f32 %v1005_v49, %v834_v26 }
 0x117   : > { %6336 = vmatmul.msk.bf16.gmra.mxu0 %vm347_vm0, %v8194_v50  ;;  %6400 = vmatmul.msk.bf16.gmra.mxu1 %vm347_vm0, %v8258_v15 }
 0x118   : > { %6222 = vmatmul.msk.bf16.gmra.mxu2 %vm347_vm0, %v8512_v42 }
 0x11a   : > { %6523 = vmatmul.msk.bf16.vlgmr.msra.gmra.mxu3 %vm347_vm0, %v8174_v40  ;;  %v7820_v40 = vld [vmem:[%s11825_s1 + $0xc8] sm:$0xff] }
 0x11b   : > { %v778_v37 = vpop.f32.mrf.mxu2  ;;  %2121 = vmatpush.bf16.msra.mxu0 %v7820_v40 }
 0x11c   : > { %v835_v63 = vadd.f32 %v778_v37, %v580_v48  ;;  %v444_v55 = vpop.f32.mrf.mxu0  ;;  %v591_v0 = vpop.f32.mrf.mxu1 }
 0x11d   : > { %v592_v8 = vadd.f32 %v591_v0, %v444_v55  ;;  %v1013_v61 = vpop.f32.mrf.mxu3 }
 0x11e   : > { %v8524_v49 = vadd.f32 %v1008_v16, %v835_v63 }
 0x123   : > { %v780_v53 = vpop.f32.mrf.mxu2 }
 0x124   : > { %v836_v33 = vadd.f32 %v780_v53, %v582_v12  ;;  %v447_v17 = vpop.f32.mrf.mxu0  ;;  %v594_v52 = vpop.f32.mrf.mxu1 }
 0x125   : > { %v595_v46 = vadd.f32 %v594_v52, %v447_v17  ;;  %v1015_v15 = vpop.f32.mrf.mxu3 }
 0x126   : > { %v8526_v26 = vadd.f32 %v1010_v21, %v836_v33 }
 0x127   : > { %6337 = vmatmul.msk.bf16.gmra.mxu0 %vm347_vm0, %v8214_v59  ;;  %6401 = vmatmul.msk.bf16.gmra.mxu1 %vm347_vm0, %v8278_v25 }
 0x128   : > { %6460 = vmatmul.msk.bf16.vlgmr.msra.gmra.mxu2 %vm347_vm0, %v8176_v41 }
 0x12a   : > { %6524 = vmatmul.msk.bf16.gmra.mxu3 %vm347_vm0, %v8194_v50 }
 0x12b   : > { %v783_v48 = vpop.f32.mrf.mxu2 }
 0x12c   : > { %v837_v21 = vadd.f32 %v783_v48, %v585_v3  ;;  %v449_v12 = vpop.f32.mrf.mxu0  ;;  %v596_v16 = vpop.f32.mrf.mxu1 }
 0x12d   : > { %v597_v6 = vadd.f32 %v596_v16, %v449_v12  ;;  %v1018_v37 = vpop.f32.mrf.mxu3 }
 0x12e   : > { %v8539_v63 = vadd.f32 %v1013_v61, %v837_v21 }
 0x133   : > { %v785_v25 = vpop.f32.mrf.mxu2 }
 0x134   : > { %v838_v55 = vadd.f32 %v785_v25, %v587_v19  ;;  %v452_v0 = vpop.f32.mrf.mxu0  ;;  %v599_v41 = vpop.f32.mrf.mxu1 }
 0x135   : > { %v600_v53 = vadd.f32 %v599_v41, %v452_v0  ;;  %v1020_v33 = vpop.f32.mrf.mxu3 }
 0x136   : > { %v8541_v17 = vadd.f32 %v1015_v15, %v838_v55 }
 0x137   : > { %6338 = vmatmul.msk.bf16.gmra.mxu0 %vm347_vm0, %v8234_v4  ;;  %6402 = vmatmul.msk.bf16.gmra.mxu1 %vm347_vm0, %v8301_v39 }
 0x138   : > { %6461 = vmatmul.msk.bf16.gmra.mxu2 %vm347_vm0, %v8196_v51 }
 0x13a   : > { %6525 = vmatmul.msk.bf16.gmra.mxu3 %vm347_vm0, %v8214_v59 }
 0x13b   : > { %v788_v50 = vpop.f32.mrf.mxu2 }
 0x13c   : > { %v839_v3 = vadd.f32 %v788_v50, %v590_v31  ;;  %v454_v19 = vpop.f32.mrf.mxu0  ;;  %v601_v61 = vpop.f32.mrf.mxu1 }
 0x13d   : > { %v602_v52 = vadd.f32 %v601_v61, %v454_v19  ;;  %v1023_v40 = vpop.f32.mrf.mxu3 }
 0x13e   : > { %v8551_v15 = vadd.f32 %v1018_v37, %v839_v3 }
 0x143   : > { %v790_v48 = vpop.f32.mrf.mxu2 }
 0x144   : > { %v840_v21 = vadd.f32 %v790_v48, %v592_v8  ;;  %v457_v12 = vpop.f32.mrf.mxu0  ;;  %v604_v16 = vpop.f32.mrf.mxu1 }
 0x145   : > { %v605_v25 = vadd.f32 %v604_v16, %v457_v12  ;;  %v1025_v39 = vpop.f32.mrf.mxu3 }
 0x146   : > { %v8553_v55 = vadd.f32 %v1020_v33, %v840_v21 }
 0x147   : > { %6339 = vmatmul.msk.bf16.gmra.mxu0 %vm347_vm0, %v8254_v13  ;;  %6403 = vmatmul.msk.bf16.gmra.mxu1 %vm347_vm0, %v8325_v1 }
 0x148   : > { %6462 = vmatmul.msk.bf16.gmra.mxu2 %vm347_vm0, %v8216_v60 }
 0x14a   : > { %6526 = vmatmul.msk.bf16.gmra.mxu3 %vm347_vm0, %v8234_v4 }
 0x14b   : > { %v793_v51 = vpop.f32.mrf.mxu2 }
 0x14c   : > { %v841_v59 = vadd.f32 %v793_v51, %v595_v46  ;;  %v459_v31 = vpop.f32.mrf.mxu0  ;;  %v606_v8 = vpop.f32.mrf.mxu1 }
 0x14d   : > { %v607_v37 = vadd.f32 %v606_v8, %v459_v31  ;;  %v1028_v0 = vpop.f32.mrf.mxu3 }
 0x14e   : > { %v8563_v41 = vadd.f32 %v1023_v40, %v841_v59 }
 0x153   : > { %v795_v33 = vpop.f32.mrf.mxu2 }
 0x154   : > { %v842_v50 = vadd.f32 %v795_v33, %v597_v6  ;;  %v462_v3 = vpop.f32.mrf.mxu0  ;;  %v609_v19 = vpop.f32.mrf.mxu1 }
 0x155   : > { %v610_v61 = vadd.f32 %v609_v19, %v462_v3  ;;  %v1030_v1 = vpop.f32.mrf.mxu3 }
 0x156   : > { %v8565_v48 = vadd.f32 %v1025_v39, %v842_v50 }
 0x157   : > { %6340 = vmatmul.msk.bf16.gmra.mxu0 %vm347_vm0, %v8274_v23  ;;  %6404 = vmatmul.msk.bf16.gmra.mxu1 %vm347_vm0, %v8351_v34 }
 0x158   : > { %6463 = vmatmul.msk.bf16.gmra.mxu2 %vm347_vm0, %v8236_v5 }
 0x15a   : > { %6527 = vmatmul.msk.bf16.gmra.mxu3 %vm347_vm0, %v8254_v13 }
 0x15b   : > { %v798_v60 = vpop.f32.mrf.mxu2 }
 0x15c   : > { %v843_v4 = vadd.f32 %v798_v60, %v600_v53  ;;  %v464_v46 = vpop.f32.mrf.mxu0  ;;  %v611_v6 = vpop.f32.mrf.mxu1 }
 0x15d   : > { %v612_v40 = vadd.f32 %v611_v6, %v464_v46  ;;  %v1033_v21 = vpop.f32.mrf.mxu3 }
 0x15e   : > { %v8575_v12 = vadd.f32 %v1028_v0, %v843_v4 }
 0x163   : > { %v800_v16 = vpop.f32.mrf.mxu2 }
 0x164   : > { %v844_v39 = vadd.f32 %v800_v16, %v602_v52  ;;  %v467_v51 = vpop.f32.mrf.mxu0  ;;  %v1436_v5 = vpop.f32.mrf.mxu1 }
 0x165   : > { %v1035_v59 = vpop.f32.mrf.mxu3 }
 0x166   : > { %v8577_v31 = vadd.f32 %v1030_v1, %v844_v39 }
 0x167   : > { %6341 = vmatmul.msk.bf16.gmra.mxu0 %vm347_vm0, %v8297_v35  ;;  %6405 = vmatmul.msk.bf16.gmra.mxu1 %vm347_vm0, %v8377_v20 }
 0x168   : > { %6464 = vmatmul.msk.bf16.gmra.mxu2 %vm347_vm0, %v8256_v14 }
 0x16a   : > { %6528 = vmatmul.msk.bf16.gmra.mxu3 %vm347_vm0, %v8274_v23  ;;  %v7819_v23 = vld [vmem:[%s11825_s1 + $0xc0] sm:$0xff] }
 0x16b   : > { %v803_v13 = vpop.f32.mrf.mxu2  ;;  %2122 = vmatpush.bf16.msra.mxu0 %v7819_v23 }
 0x16c   : > { %v845_v34 = vadd.f32 %v803_v13, %v605_v25  ;;  %v469_v53 = vpop.f32.mrf.mxu0  ;;  %v1438_v3 = vpop.f32.mrf.mxu1 }
 0x16d   : > { %v1038_v52 = vpop.f32.mrf.mxu3 }
 0x16e   : > { %v8587_v8 = vadd.f32 %v1033_v21, %v845_v34 }
 0x173   : > { %v805_v0 = vpop.f32.mrf.mxu2 }
 0x174   : > { %v846_v33 = vadd.f32 %v805_v0, %v607_v37  ;;  %v1207_v50 = vpop.f32.mrf.mxu0 }
 0x175   : > { %v1282_v19 = vadd.f32 %v1207_v50, %v8365_v54  ;;  %v1040_v20 = vpop.f32.mrf.mxu3 }
 0x176   : > { %v8590_v1 = vadd.f32 %v1035_v59, %v846_v33 }
 0x177   : > { %v8592_v14 = vadd.f32 %v1436_v5, %v1282_v19  ;;  %6342 = vmatmul.msk.bf16.gmra.mxu0 %vm347_vm0, %v8321_v58  ;;  %6406 = vmatmul.msk.bf16.gmra.mxu1 %vm347_vm0, %v8418_v29  ;;  %v1441_v29 = vpop.f32.mrf.mxu1 }
 0x178   : > { %6465 = vmatmul.msk.bf16.gmra.mxu2 %vm347_vm0, %v8276_v24 }
 0x17a   : > { %6529 = vmatmul.msk.bf16.gmra.mxu3 %vm347_vm0, %v8297_v35 }
 0x17b   : > { %v808_v54 = vpop.f32.mrf.mxu2 }
 0x17c   : > { %v847_v25 = vadd.f32 %v808_v54, %v610_v61  ;;  %v1209_v37 = vpop.f32.mrf.mxu0 }
 0x17d   : > { %v1283_v60 = vadd.f32 %v1209_v37, %v8381_v22  ;;  %v1043_v4 = vpop.f32.mrf.mxu3  ;;  %v6493_v37 = vld [vmem:[%s8114_s10 + $0x109] sm:$0xff] }
 0x17e   : > { %v8606_v46 = vadd.f32 %v1038_v52, %v847_v25 }
 0x17f   : > { %v8608_v6 = vadd.f32 %v1438_v3, %v1283_v60  ;;  %v1443_v22 = vpop.f32.mrf.mxu1 }
 0x183   : > { %v810_v24 = vpop.f32.mrf.mxu2 }
 0x184   : > { %v848_v21 = vadd.f32 %v810_v24, %v612_v40  ;;  %v1212_v16 = vpop.f32.mrf.mxu0  ;;  %v11849_v24 = vld [vmem:[#allocation5_spill] sm:$0xff] }
 0x185   : > { %v1284_v39 = vadd.f32 %v1212_v16, %v8396_v47  ;;  %v1045_v59 = vpop.f32.mrf.mxu3  ;;  %v615_v47 = vadd.f32 %v8311_v43, %v467_v51 }
 0x186   : > { %v8611_v5 = vadd.f32 %v1040_v20, %v848_v21 }
 0x187   : > { %v8613_v35 = vadd.f32 %v1441_v29, %v1284_v39  ;;  %6343 = vmatmul.msk.bf16.gmra.mxu0 %vm347_vm0, %v8345_v27  ;;  %6407 = vmatmul.msk.bf16.gmra.mxu1 %vm347_vm0, %v8446_v28  ;;  %v617_v28 = vadd.f32 %v8319_v57, %v469_v53  ;;  %v1446_v50 = vpop.f32.mrf.mxu1  ;;  %v11850_v39 = vld [vmem:[#allocation9_spill] sm:$0xff] }
 0x188   : > { %6466 = vmatmul.msk.bf16.gmra.mxu2 %vm347_vm0, %v8299_v36 }
 0x18a   : > { %6530 = vmatmul.msk.bf16.gmra.mxu3 %vm347_vm0, %v8321_v58 }
 0x18b   : > { %v813_v61 = vpop.f32.mrf.mxu2 }
 0x18c   : > { %v849_v40 = vadd.f32 %v813_v61, %v615_v47  ;;  %v1214_v13 = vpop.f32.mrf.mxu0  ;;  %v6495_v47 = vld [vmem:[%s8114_s10 + $0x121] sm:$0xff] }
 0x18d   : > { %v1285_v34 = vadd.f32 %v1214_v13, %v8423_v2  ;;  %v1048_v52 = vpop.f32.mrf.mxu3 }
 0x18e   : > { %v8625_v0 = vadd.f32 %v1043_v4, %v849_v40 }
 0x18f   : > { %v8627_v33 = vadd.f32 %v1443_v22, %v1285_v34  ;;  %v1448_v20 = vpop.f32.mrf.mxu1  ;;  %v11851_v34 = vld [vmem:[#allocation10_spill] sm:$0xff] }
 0x193   : > { %v815_v36 = vpop.f32.mrf.mxu2 }
 0x194   : > { %v850_v3 = vadd.f32 %v815_v36, %v617_v28  ;;  %v1217_v19 = vpop.f32.mrf.mxu0  ;;  %v11852_v36 = vld [vmem:[#allocation8_spill] sm:$0xff] }
 0x195   : > { %v1286_v58 = vadd.f32 %v1217_v19, %v8437_v7  ;;  %v1050_v2 = vpop.f32.mrf.mxu3 }
 0x196   : > { %v8631_v43 = vadd.f32 %v1045_v59, %v850_v3 }
 0x197   : > { %v8633_v51 = vadd.f32 %v1446_v50, %v1286_v58  ;;  %6344 = vmatmul.msk.bf16.gmra.mxu0 %vm347_vm0, %v8373_v10  ;;  %6408 = vmatmul.msk.bf16.gmra.mxu1 %vm347_vm0, %v8464_v11  ;;  %v6494_v11 = vld [vmem:[%s8114_s10 + $0x111] sm:$0xff] }
 0x198   : > { %6467 = vmatmul.msk.bf16.gmra.mxu2 %vm347_vm0, %v8323_v62 }
 0x19a   : > { %6531 = vmatmul.msk.bf16.gmra.mxu3 %vm347_vm0, %v8345_v27 }
 0x19b   : > { %v818_v57 = vpop.f32.mrf.mxu2 }
 0x19c   : > { %v851_v7 = vadd.f32 %v818_v57, %v8335_v9  ;;  %v1219_v53 = vpop.f32.mrf.mxu0  ;;  %v1810_v9 = vpack.c.bf16 %v6494_v11, %v6493_v37  ;;  %v6378_v37 = vld [vmem:[%s8114_s10 + $0x172] sm:$0xff]  ;;  %v6498_v11 = vld [vmem:[%s8114_s10 + $0x141] sm:$0xff] }
 0x19d   : > { %v1287_v23 = vadd.f32 %v1219_v53, %v8448_v56  ;;  %v1895_v25 = vpop.f32.mrf.mxu3  ;;  %v11848_v56 = vld [vmem:[#allocation11_spill] sm:$0xff] }
 0x19e   : > { %v8645_v54 = vadd.f32 %v1048_v52, %v851_v7 }
 0x19f   : > { %v8647_v10 = vadd.f32 %v1448_v20, %v1287_v23  ;;  %v6312_v20 = vld [vmem:[%s8114_s10 + $0x151] sm:$0xff]  ;;  %v6313_v23 = vld [vmem:[%s8114_s10 + $0x159] sm:$0xff] }
 0x1a3   : > { %v820_v60 = vpop.f32.mrf.mxu2 }
 0x1a4   : > { %v852_v62 = vadd.f32 %v820_v60, %v8349_v30  ;;  %v1222_v27 = vpop.f32.mrf.mxu0 }
 0x1a5   : > { %v8653_v4 = vadd.f32 %v1222_v27, %v8459_v45  ;;  %v1897_v21 = vpop.f32.mrf.mxu3 }
 0x1a6   : > { %v8655_v29 = vadd.f32 %v1050_v2, %v852_v62  ;;  %v11854_v2 = vld [vmem:[#allocation12_spill] sm:$0xff]  ;;  %v1126_v62 = vpack.c.bf16 %v6313_v23, %v6312_v20 }
 0x1a7   : > { %6345 = vmatmul.msk.bf16.gmra.mxu0 %vm347_vm0, %v8413_v18  ;;  %6409 = vmatmul.msk.bf16.gmra.mxu1 %vm347_vm0, %v11848_v56  ;;  %v6496_v18 = vld [vmem:[%s8114_s10 + $0x129] sm:$0xff] }
 0x1a8   : > { %6468 = vmatmul.msk.bf16.gmra.mxu2 %vm347_vm0, %v11849_v24 }
 0x1aa   : > { %6532 = vmatmul.msk.bf16.gmra.mxu3 %vm347_vm0, %v1810_v9 }
 0x1ab   : > { %v1666_v30 = vpop.f32.mrf.mxu2 }
 0x1ac   : > { %v1741_v16 = vadd.f32 %v1666_v30, %v8592_v14  ;;  %v1224_v45 = vpop.f32.mrf.mxu0  ;;  %v1811_v14 = vpack.c.bf16 %v6496_v18, %v6495_v47  ;;  %v6314_v18 = vld [vmem:[%s8114_s10 + $0x169] sm:$0xff] }
 0x1ad   : > { %v8666_v59 = vadd.f32 %v1224_v45, %v11850_v39  ;;  %v1900_v28 = vpop.f32.mrf.mxu3 }
 0x1ae   : > { %v8668_v22 = vadd.f32 %v1895_v25, %v1741_v16  ;;  %v6377_v25 = vld [vmem:[%s8114_s10 + $0x16a] sm:$0xff] }
 0x1af   : > { %v8697_v27 = vpack.c.bf16 %v6378_v37, %v6377_v25 }
 0x1b3   : > { %v1668_v61 = vpop.f32.mrf.mxu2 }
 0x1b4   : > { %v1742_v40 = vadd.f32 %v1668_v61, %v8608_v6  ;;  %v1227_v13 = vpop.f32.mrf.mxu0  ;;  %v11853_v6 = vld [vmem:[#allocation6_spill] sm:$0xff] }
 0x1b5   : > { %v8674_v52 = vadd.f32 %v1227_v13, %v11851_v34  ;;  %v1902_v53 = vpop.f32.mrf.mxu3  ;;  %v6315_v61 = vld [vmem:[%s8114_s10 + $0x171] sm:$0xff]  ;;  %v6435_v13 = vld [vmem:[%s8114_s10 + $0x140] sm:$0xff] }
 0x1b6   : > { %v8676_v50 = vadd.f32 %v1897_v21, %v1742_v40  ;;  %v11855_v21 = vld [vmem:[#allocation7_spill] sm:$0xff]  ;;  %v6434_v40 = vld [vmem:[%s8114_s10 + $0x138] sm:$0xff] }
 0x1b7   : > { %6346 = vmatmul.msk.bf16.gmra.mxu0 %vm347_vm0, %v11852_v36  ;;  %6410 = vmatmul.msk.bf16.gmra.mxu1 %vm347_vm0, %v8512_v42  ;;  %v6497_v42 = vld [vmem:[%s8114_s10 + $0x139] sm:$0xff] }
 0x1b8   : > { %6469 = vmatmul.msk.bf16.gmra.mxu2 %vm347_vm0, %v11853_v6  ;;  %v1812_v24 = vpack.c.bf16 %v6498_v11, %v6497_v42  ;;  %v1583_v6 = vpack.c.bf16 %v6435_v13, %v6434_v40  ;;  %v6540_v11 = vld [vmem:[%s8114_s10 + $0x4a] sm:$0xff] }
 0x1b9   : > { %v6441_v40 = vld [vmem:[%s8114_s10 + $0x188] sm:$0xff] }
 0x1ba   : > { %6533 = vmatmul.msk.bf16.gmra.mxu3 %vm347_vm0, %v1811_v14  ;;  %v1127_v14 = vpack.c.bf16 %v6315_v61, %v6314_v18  ;;  %v6542_v18 = vld [vmem:[%s8114_s10 + $0x62] sm:$0xff]  ;;  %v6543_v61 = vld [vmem:[%s8114_s10 + $0x6a] sm:$0xff] }
 0x1bb   : > { %v1671_v3 = vpop.f32.mrf.mxu2  ;;  %v2032_v13 = vpack.c.bf16 %v6543_v61, %v6542_v18  ;;  %v6550_v61 = vld [vmem:[%s8114_s10 + $0xc2] sm:$0xff] }
 0x1bc   : > { %v1743_v19 = vadd.f32 %v1671_v3, %v8613_v35  ;;  %v1229_v58 = vpop.f32.mrf.mxu0 }
 0x1bd   : > { %v8687_v57 = vadd.f32 %v1229_v58, %v11854_v2  ;;  %v1905_v16 = vpop.f32.mrf.mxu3  ;;  %v6539_v2 = vld [vmem:[%s8114_s10 + $0x3a] sm:$0xff] }
 0x1be   : > { %v8689_v7 = vadd.f32 %v1900_v28, %v1743_v19 }
 0x1c3   : > { %v1673_v60 = vpop.f32.mrf.mxu2 }
 0x1c4   : > { %v1744_v35 = vadd.f32 %v1673_v60, %v8627_v33  ;;  %v1232_v9 = vpop.f32.mrf.mxu0  ;;  %v6541_v60 = vld [vmem:[%s8114_s10 + $0x52] sm:$0xff] }
 0x1c5   : > { %v8701_v56 = vadd.f32 %v1232_v9, %v8508_v32  ;;  %v1907_v28 = vpop.f32.mrf.mxu3  ;;  %v2031_v9 = vpack.c.bf16 %v6541_v60, %v6540_v11  ;;  %v6675_v11 = vld [vmem:[%s11827_s3 + $0x30] sm:$0xf]  ;;  %v7829_v60 = vld [vmem:[%s11827_s3 + $0x34] sm:$0xf0] }
 0x1c6   : > { %v8703_v30 = vadd.f32 %v1902_v53, %v1744_v35  ;;  %v6437_v53 = vld [vmem:[%s8114_s10 + $0x158] sm:$0xff]  ;;  %v6504_v35 = vld [vmem:[%s8114_s10 + $0x189] sm:$0xff] }
 0x1c7   : > { %6347 = vmatmul.msk.bf16.gmra.mxu0 %vm347_vm0, %v1126_v62  ;;  %6411 = vmatmul.msk.bf16.gmra.mxu1 %vm347_vm0, %v8697_v27 }
 0x1c8   : > { %6470 = vmatmul.msk.bf16.gmra.mxu2 %vm347_vm0, %v11855_v21  ;;  %v7837_v21 = vld [vmem:[%s11827_s3 + $0x74] sm:$0xf0] }
 0x1ca   : > { %6534 = vmatmul.msk.bf16.gmra.mxu3 %vm347_vm0, %v1812_v24  ;;  %v6635_v24 = vld [vmem:[%s11827_s3 + $0x70] sm:$0xf] }
 0x1cb   : > { %v1676_v33 = vpop.f32.mrf.mxu2 }
 0x1cc   : > { %v1745_v45 = vadd.f32 %v1676_v33, %v8633_v51  ;;  %v1234_v32 = vpop.f32.mrf.mxu0  ;;  %v6636_v33 = vor.u32 %v7837_v21, %v6635_v24 }
 0x1cd   : > { %v8713_v39 = vadd.f32 %v1234_v32, %v8514_v38 }
 0x1ce   : > { %v8715_v47 = vadd.f32 %v1905_v16, %v1745_v45  ;;  %2591 = vmatpush.bf16.msra.mxu1 %v6636_v33 }
 0x1d3   : > { %v1678_v34 = vpop.f32.mrf.mxu2 }
 0x1d4   : > { %v1746_v36 = vadd.f32 %v1678_v34, %v8647_v10  ;;  %v1237_v51 = vpop.f32.mrf.mxu0  ;;  %v6538_v10 = vld [vmem:[%s8114_s10 + $0x32] sm:$0xff] }
 0x1d5   : > { %v8723_v38 = vadd.f32 %v1237_v51, %v8524_v49  ;;  %v6436_v49 = vld [vmem:[%s8114_s10 + $0x150] sm:$0xff]  ;;  %v2030_v20 = vpack.c.bf16 %v6539_v2, %v6538_v10  ;;  %v6545_v51 = vld [vmem:[%s8114_s10 + $0x82] sm:$0xff] }
 0x1d6   : > { %v8725_v3 = vadd.f32 %v1907_v28, %v1746_v36  ;;  %v1584_v25 = vpack.c.bf16 %v6437_v53, %v6436_v49  ;;  %v6544_v36 = vld [vmem:[%s8114_s10 + $0x7a] sm:$0xff]  ;;  %v6546_v49 = vld [vmem:[%s8114_s10 + $0x92] sm:$0xff] }
 0x1d7   : > { %6348 = vmatmul.msk.bf16.gmra.mxu0 %vm347_vm0, %v1127_v14  ;;  %v6547_v53 = vld [vmem:[%s8114_s10 + $0x9a] sm:$0xff] }
 0x1d8   : > { %6471 = vmatmul.msk.bf16.gmra.mxu2 %vm347_vm0, %v1583_v6  ;;  %v2033_v6 = vpack.c.bf16 %v6545_v51, %v6544_v36 }
 0x1da   : > { %6535 = vmatmul.msk.bf16.gmra.mxu3 %vm347_vm0, %v1126_v62  ;;  %v6503_v62 = vld [vmem:[%s8114_s10 + $0x181] sm:$0xff] }
 0x1db   : > { %v1815_v16 = vpack.c.bf16 %v6504_v35, %v6503_v62  ;;  %v7835_v62 = vld [vmem:[%s11827_s3 + $0x64] sm:$0xf0] }
 0x1dc   : > { %v1239_v19 = vpop.f32.mrf.mxu0  ;;  %v6548_v35 = vld [vmem:[%s8114_s10 + $0xaa] sm:$0xff] }
 0x1dd   : > { %v8731_v58 = vadd.f32 %v1239_v19, %v8526_v26 }
 0x1e4   : > { %v1242_v23 = vpop.f32.mrf.mxu0 }
 0x1e5   : > { %v8738_v37 = vadd.f32 %v1242_v23, %v8539_v63 }
 0x1e7   : > { %6586 = vmatmul.msk.bf16.vlgmr.msra.gmra.mxu0 %vm347_vm0, %v2030_v20  ;;  %v2034_v20 = vpack.c.bf16 %v6547_v53, %v6546_v49 }
 0x1e8   : > { %6472 = vmatmul.msk.bf16.gmra.mxu2 %vm347_vm0, %v1584_v25 }
 0x1ea   : > { %6536 = vmatmul.msk.bf16.gmra.mxu3 %vm347_vm0, %v1127_v14 }
 0x1ec   : > { %v1244_v26 = vpop.f32.mrf.mxu0 }
 0x1ed   : > { %v8744_v42 = vadd.f32 %v1244_v26, %v8541_v17  ;;  %v6637_v26 = vld [vmem:[%s11827_s3 + $0x78] sm:$0xf0] }
 0x1f4   : > { %v1247_v63 = vpop.f32.mrf.mxu0 }
 0x1f5   : > { %v8757_v17 = vadd.f32 %v1247_v63, %v8551_v15  ;;  %v6440_v15 = vld [vmem:[%s8114_s10 + $0x180] sm:$0xff]  ;;  %v6676_v63 = vor.u32 %v7829_v60, %v6675_v11 }
 0x1f6   : > { %v1586_v28 = vpack.c.bf16 %v6441_v40, %v6440_v15  ;;  %v6551_v15 = vld [vmem:[%s8114_s10 + $0xca] sm:$0xff] }
 0x1f7   : > { %6587 = vmatmul.msk.bf16.gmra.mxu0 %vm347_vm0, %v2031_v9  ;;  %v6549_v9 = vld [vmem:[%s8114_s10 + $0xb2] sm:$0xff]  ;;  %2699 = vmatpush.bf16.msrb.mxu3 %v6676_v63  ;;  %v2036_v40 = vpack.c.bf16 %v6551_v15, %v6550_v61 }
 0x1f8   : > { %6473 = vmatmul.msk.bf16.gmra.mxu2 %vm347_vm0, %v8493_v44  ;;  %v2035_v21 = vpack.c.bf16 %v6549_v9, %v6548_v35  ;;  %v6557_v61 = vld [vmem:[%s8114_s10 + $0x112] sm:$0xff] }
 0x1fa   : > { %6537 = vmatmul.msk.bf16.gmra.mxu3 %vm347_vm0, %v1815_v16 }
 0x1fc   : > { %v1249_v45 = vpop.f32.mrf.mxu0 }
 0x1fd   : > { %v8764_v32 = vadd.f32 %v1249_v45, %v8553_v55 }
 0x204   : > { %v1252_v34 = vpop.f32.mrf.mxu0 }
 0x205   : > { %v8771_v14 = vadd.f32 %v1252_v34, %v8563_v41  ;;  %v8825_v34 = vpop.f32.mrf.mxu1 }
 0x207   : > { %6588 = vmatmul.msk.bf16.gmra.mxu0 %vm347_vm0, %v2032_v13 }
 0x208   : > { %6474 = vmatmul.msk.bf16.gmra.mxu2 %vm347_vm0, %v1586_v28 }
 0x20c   : > { %v1254_v44 = vpop.f32.mrf.mxu0 }
 0x20d   : > { %v8776_v55 = vadd.f32 %v1254_v44, %v8565_v48  ;;  %v8830_v44 = vpop.f32.mrf.mxu3 }
 0x214   : > { %v1257_v19 = vpop.f32.mrf.mxu0 }
 0x215   : > { %v8781_v10 = vadd.f32 %v1257_v19, %v8575_v12  ;;  %v8838_v51 = vpop.f32.mrf.mxu3  ;;  %v6553_v19 = vld [vmem:[%s8114_s10 + $0xe2] sm:$0xff] }
 0x217   : > { %6589 = vmatmul.msk.bf16.gmra.mxu0 %vm347_vm0, %v2033_v6  ;;  %v6552_v6 = vld [vmem:[%s8114_s10 + $0xda] sm:$0xff] }
 0x21c   : > { %v1259_v2 = vpop.f32.mrf.mxu0 }
 0x21d   : > { %v8785_v41 = vadd.f32 %v1259_v2, %v8577_v31  ;;  %v7836_v31 = vld [vmem:[%s11827_s3 + $0x74] sm:$0xf]  ;;  %v2037_v2 = vpack.c.bf16 %v6553_v19, %v6552_v6  ;;  %v7834_v19 = vld [vmem:[%s11827_s3 + $0x64] sm:$0xf] }
 0x224   : > { %v1262_v48 = vpop.f32.mrf.mxu0 }
 0x225   : > { %v8790_v23 = vadd.f32 %v1262_v48, %v8587_v8  ;;  %v6640_v8 = vor.u32 %v7836_v31, %v6637_v26  ;;  %v6554_v31 = vld [vmem:[%s8114_s10 + $0xf2] sm:$0xff]  ;;  %v6555_v26 = vld [vmem:[%s8114_s10 + $0xfa] sm:$0xff] }
 0x227   : > { %6590 = vmatmul.msk.bf16.gmra.mxu0 %vm347_vm0, %v2034_v20  ;;  %2619 = vmatpush.bf16.msrb.mxu2 %v6640_v8  ;;  %v8848_v20 = vpop.f32.mrf.mxu3  ;;  %v2038_v8 = vpack.c.bf16 %v6555_v26, %v6554_v31  ;;  %v7833_v31 = vld [vmem:[%s11827_s3 + $0x54] sm:$0xf0] }
 0x22c   : > { %v1264_v25 = vpop.f32.mrf.mxu0 }
 0x22d   : > { %v8794_v12 = vadd.f32 %v1264_v25, %v8590_v1  ;;  %v6627_v1 = vld [vmem:[%s11827_s3 + $0x60] sm:$0xf]  ;;  %v8853_v25 = vpop.f32.mrf.mxu2 }
 0x22e   : > { %v6628_v24 = vor.u32 %v7835_v62, %v6627_v1 }
 0x22f   : > { %v8864_v60 = vpop.f32.mrf.mxu3 }
 0x230   : > { %2592 = vmatpush.bf16.msra.mxu1 %v6628_v24 }
 0x234   : > { %v1267_v16 = vpop.f32.mrf.mxu0 }
 0x235   : > { %v8817_v33 = vadd.f32 %v1267_v16, %v8606_v46  ;;  %v8869_v35 = vpop.f32.mrf.mxu2 }
 0x237   : > { %6591 = vmatmul.msk.bf16.gmra.mxu0 %vm347_vm0, %v2035_v21  ;;  %v8875_v16 = vpop.f32.mrf.mxu3 }
 0x23c   : > { %v1269_v45 = vpop.f32.mrf.mxu0 }
 0x23d   : > { %v8821_v18 = vadd.f32 %v1269_v45, %v8611_v5  ;;  %v8836_v5 = vpop.f32.mrf.mxu1 }
 0x244   : > { %v1272_v13 = vpop.f32.mrf.mxu0 }
 0x245   : > { %v8828_v28 = vadd.f32 %v1272_v13, %v8625_v0  ;;  %v8846_v53 = vpop.f32.mrf.mxu1 }
 0x247   : > { %6592 = vmatmul.msk.bf16.gmra.mxu0 %vm347_vm0, %v2036_v40  ;;  %v8880_v40 = vpop.f32.mrf.mxu2 }
 0x24c   : > { %v1274_v46 = vpop.f32.mrf.mxu0 }
 0x24d   : > { %v8834_v36 = vadd.f32 %v1274_v46, %v8631_v43  ;;  %v8857_v11 = vpop.f32.mrf.mxu1 }
 0x254   : > { %v1277_v49 = vpop.f32.mrf.mxu0 }
 0x255   : > { %v8843_v0 = vadd.f32 %v1277_v49, %v8645_v54  ;;  %v8862_v54 = vld [vmem:[%s11826_s2] ss:$0 sm:$0xff]  ;;  %v8872_v24 = vpop.f32.mrf.mxu1 }
 0x257   : > { %6593 = vmatmul.msk.bf16.gmra.mxu0 %vm347_vm0, %v2037_v2  ;;  %v6667_v2 = vld [vmem:[%s11827_s3 + $0x20] sm:$0xf] }
 0x25c   : > { %v1279_v48 = vpop.f32.mrf.mxu0 }
 0x25d   : > { %v8851_v43 = vadd.f32 %v1279_v48, %v8655_v29  ;;  %v7827_v48 = vld [vmem:[%s11827_s3 + $0x24] sm:$0xf0]  ;;  %v8902_v26 = vpop.f32.mrf.mxu1 }
 0x264   : > { %v2124_v1 = vpop.f32.mrf.mxu0 }
 0x265   : > { %v2199_v29 = vadd.f32 %v2124_v1, %v8668_v22  ;;  %v6556_v22 = vld [vmem:[%s8114_s10 + $0x10a] sm:$0xff]  ;;  %v6668_v1 = vor.u32 %v7827_v48, %v6667_v2 }
 0x266   : > { %v2039_v13 = vpack.c.bf16 %v6557_v61, %v6556_v22  ;;  %v6558_v61 = vld [vmem:[%s8114_s10 + $0x122] sm:$0xff] }
 0x267   : > { %v2233_v62 = vadd.f32 %v8862_v54, %v2199_v29  ;;  %6594 = vmatmul.msk.bf16.gmra.mxu0 %vm347_vm0, %v2038_v8  ;;  %2700 = vmatpush.bf16.msrb.mxu3 %v6668_v1  ;;  %v1517_v1 = vadd.f32 %v8825_v34, %v8653_v4  ;;  %v6560_v4 = vld [vmem:[%s8114_s10 + $0x13a] sm:$0xff]  ;;  %v6561_v34 = vld [vmem:[%s8114_s10 + $0x142] sm:$0xff] }
 0x269   : > { %v2263_v9 = vmax.f32 %v2233_v62, 0.0  ;;  %v8906_v62 = vpop.f32.mrf.mxu3 }
 0x26b   : > { %2294 = vst.msk [vmem:[#allocation2] sm:$0xff] %vm2293_vm1, %v2263_v9 }
 0x26c   : > { %v2126_v63 = vpop.f32.mrf.mxu0 }
 0x26d   : > { %v2200_v21 = vadd.f32 %v2126_v63, %v8676_v50  ;;  %v6629_v50 = vld [vmem:[%s11827_s3 + $0x68] sm:$0xf0]  ;;  %v8909_v63 = vpop.f32.mrf.mxu2 }
 0x26e   : > { %v6632_v49 = vor.u32 %v7834_v19, %v6629_v50 }
 0x26f   : > { %v2234_v45 = vadd.f32 %v8862_v54, %v2200_v21 }
 0x270   : > { %2620 = vmatpush.bf16.msrb.mxu2 %v6632_v49 }
 0x271   : > { %v2264_v15 = vmax.f32 %v2234_v45, 0.0 }
 0x273   : > { %2295 = vst.msk [vmem:[#allocation2 + $0x8] sm:$0xff] %vm2293_vm1, %v2264_v15  ;;  %v6559_v15 = vld [vmem:[%s8114_s10 + $0x12a] sm:$0xff] }
 0x274   : > { %v2129_v46 = vpop.f32.mrf.mxu0  ;;  %v2040_v19 = vpack.c.bf16 %v6559_v15, %v6558_v61  ;;  %v2324_v61 = vld [vmem:[#allocation2] sm:$0xff] }
 0x275   : > { %v2201_v6 = vadd.f32 %v2129_v46, %v8689_v7  ;;  %v6619_v7 = vld [vmem:[%s11827_s3 + $0x50] sm:$0xf]  ;;  %v8921_v49 = vpop.f32.mrf.mxu2 }
 0x276   : > { %v6620_v29 = vor.u32 %v7833_v31, %v6619_v7  ;;  %v8051_v7 = vmov 0.0  }
 0x277   : > { %v2235_v8 = vadd.f32 %v8862_v54, %v2201_v6  ;;  %6595 = vmatmul.msk.bf16.gmra.mxu0 %vm347_vm0, %v2039_v13  ;;  %v8915_v13 = vpop.f32.mrf.mxu1  ;;  %v8917_v6 = vpop.f32.mrf.mxu3  ;;  %2465 = vst.msk [vmem:[#allocation4] sm:$0xff] %vm2293_vm1, %v8051_v7 }
 0x278   : > { %2593 = vmatpush.bf16.msra.mxu1 %v6620_v29  ;;  %2466 = vst.msk [vmem:[#allocation4 + $0x8] sm:$0xff] %vm2293_vm1, %v8051_v7 }
 0x279   : > { %v2265_v9 = vmax.f32 %v2235_v8, 0.0  ;;  %2467 = vst.msk [vmem:[#allocation4 + $0x10] sm:$0xff] %vm2293_vm1, %v8051_v7 }
 0x27a   : > { %2468 = vst.msk [vmem:[#allocation4 + $0x18] sm:$0xff] %vm2293_vm1, %v8051_v7 }
 0x27b   : > { %2296 = vst.msk [vmem:[#allocation2 + $0x10] sm:$0xff] %vm2293_vm1, %v2265_v9 }
 0x27c   : > { %v2131_v21 = vpop.f32.mrf.mxu0  ;;  %2469 = vst.msk [vmem:[#allocation4 + $0x20] sm:$0xff] %vm2293_vm1, %v8051_v7 }
 0x27d   : > { %v2202_v45 = vadd.f32 %v2131_v21, %v8703_v30  ;;  %v1747_v21 = vadd.f32 %v8853_v25, %v1517_v1  ;;  %2470 = vst.msk [vmem:[#allocation4 + $0x28] sm:$0xff] %vm2293_vm1, %v8051_v7 }
 0x27e   : > { %2471 = vst.msk [vmem:[#allocation4 + $0x30] sm:$0xff] %vm2293_vm1, %v8051_v7 }
 0x27f   : > { %v2236_v22 = vadd.f32 %v8862_v54, %v2202_v45  ;;  %v8929_v31 = vpop.f32.mrf.mxu1  ;;  %2472 = vst.msk [vmem:[#allocation4 + $0x38] sm:$0xff] %vm2293_vm1, %v8051_v7  ;;  %v1976_v25 = vadd.f32 %v8830_v44, %v1747_v21 }
 0x280   : > { %2473 = vst.msk [vmem:[#allocation4 + $0x40] sm:$0xff] %vm2293_vm1, %v8051_v7 }
 0x281   : > { %v2266_v46 = vmax.f32 %v2236_v22, 0.0  ;;  %v8947_v22 = vpop.f32.mrf.mxu2  ;;  %2474 = vst.msk [vmem:[#allocation4 + $0x48] sm:$0xff] %vm2293_vm1, %v8051_v7 }
 0x282   : > { %v2339_v9 = vld [vmem:[#allocation2 + $0x10] sm:$0xff]  ;;  %2475 = vst.msk [vmem:[#allocation4 + $0x50] sm:$0xff] %vm2293_vm1, %v8051_v7 }
 0x283   : > { %2297 = vst.msk [vmem:[#allocation2 + $0x18] sm:$0xff] %vm2293_vm1, %v2266_v46 }
 0x284   : > { %v2134_v50 = vpop.f32.mrf.mxu0  ;;  %2476 = vst.msk [vmem:[#allocation4 + $0x58] sm:$0xff] %vm2293_vm1, %v8051_v7 }
 0x285   : > { %v2203_v2 = vadd.f32 %v2134_v50, %v8715_v47  ;;  %v8932_v47 = vpop.f32.mrf.mxu3  ;;  %v2041_v50 = vpack.c.bf16 %v6561_v34, %v6560_v4  ;;  %2477 = vst.msk [vmem:[#allocation4 + $0x60] sm:$0xff] %vm2293_vm1, %v8051_v7  ;;  %v6621_v4 = vld [vmem:[%s11827_s3 + $0x58] sm:$0xf0] }
 0x286   : > { %2478 = vst.msk [vmem:[#allocation4 + $0x68] sm:$0xff] %vm2293_vm1, %v8051_v7 }
 0x287   : > { %v2237_v48 = vadd.f32 %v8862_v54, %v2203_v2  ;;  %6596 = vmatmul.msk.bf16.gmra.mxu0 %vm347_vm0, %v2040_v19  ;;  %2479 = vst.msk [vmem:[#allocation4 + $0x70] sm:$0xff] %vm2293_vm1, %v8051_v7 }
 0x288   : > { %2480 = vst.msk [vmem:[#allocation4 + $0x78] sm:$0xff] %vm2293_vm1, %v8051_v7 }
 0x289   : > { %v2267_v30 = vmax.f32 %v2237_v48, 0.0  ;;  %v1518_v48 = vadd.f32 %v8836_v5, %v8666_v59  ;;  %v2325_v59 = vld [vmem:[#allocation2 + $0x8] sm:$0xff]  ;;  %2481 = vst.msk [vmem:[#allocation4 + $0x80] sm:$0xff] %vm2293_vm1, %v8051_v7 }
 0x28a   : > { %v2340_v44 = vld [vmem:[#allocation2 + $0x18] sm:$0xff]  ;;  %2482 = vst.msk [vmem:[#allocation4 + $0x88] sm:$0xff] %vm2293_vm1, %v8051_v7 }
 0x28b   : > { %2298 = vst.msk [vmem:[#allocation2 + $0x20] sm:$0xff] %vm2293_vm1, %v2267_v30  ;;  %v8966_v30 = vpop.f32.mrf.mxu1  ;;  %v2369_v5 = vmax.f32 %v2325_v59, %v2340_v44  ;;  %v7831_v44 = vld [vmem:[%s11827_s3 + $0x44] sm:$0xf0] }
 0x28c   : > { %v2136_v8 = vpop.f32.mrf.mxu0  ;;  %2483 = vst.msk [vmem:[#allocation4 + $0x90] sm:$0xff] %vm2293_vm1, %v8051_v7 }
 0x28d   : > { %v2204_v29 = vadd.f32 %v2136_v8, %v8725_v3  ;;  %v2368_v3 = vmax.f32 %v2324_v61, %v2339_v9  ;;  %v8969_v1 = vpop.f32.mrf.mxu3  ;;  %2484 = vst.msk [vmem:[#allocation4 + $0x98] sm:$0xff] %vm2293_vm1, %v8051_v7 }
 0x28e   : > { %2485 = vst.msk [vmem:[#allocation4 + $0xa0] sm:$0xff] %vm2293_vm1, %v8051_v7 }
 0x28f   : > { %v2238_v45 = vadd.f32 %v8862_v54, %v2204_v29  ;;  %v1748_v29 = vadd.f32 %v8869_v35, %v1518_v48  ;;  %v7832_v35 = vld [vmem:[%s11827_s3 + $0x54] sm:$0xf]  ;;  %2486 = vst.msk [vmem:[#allocation4 + $0xa8] sm:$0xff] %vm2293_vm1, %v8051_v7 }
 0x291   : > { %v2268_v15 = vmax.f32 %v2238_v45, 0.0  ;;  %v8982_v45 = vpop.f32.mrf.mxu2  ;;  %v1977_v34 = vadd.f32 %v8838_v51, %v1748_v29  ;;  %v1519_v51 = vadd.f32 %v8846_v53, %v8674_v52  ;;  %v7830_v29 = vld [vmem:[%s11827_s3 + $0x44] sm:$0xf] }
 0x292   : > { %v8955_v46 = vld [vmem:[#allocation2 + $0x20] sm:$0xff] }
 0x293   : > { %v2382_v19 = vmax.f32 %v2368_v3, %v8955_v46  ;;  %2299 = vst.msk [vmem:[#allocation2 + $0x28] sm:$0xff] %vm2293_vm1, %v2268_v15  ;;  %v6624_v15 = vor.u32 %v7832_v35, %v6621_v4  ;;  %v1749_v52 = vadd.f32 %v8880_v40, %v1519_v51  ;;  %v9018_v53 = vpop.f32.mrf.mxu1  ;;  %v7823_v35 = vld [vmem:[%s11827_s3 + $0x4] sm:$0xf0]  ;;  %v6562_v40 = vld [vmem:[%s8114_s10 + $0x152] sm:$0xff] }
 0x294   : > { %v2139_v2 = vpop.f32.mrf.mxu0  ;;  %v2497_v51 = vld [vmem:[#allocation4 + $0x10] sm:$0xff] }
 0x295   : > { %2396 = vst.msk [vmem:[#allocation3] sm:$0xff] %vm2293_vm1, %v2382_v19  ;;  %v2205_v8 = vadd.f32 %v2139_v2, %v1976_v25  ;;  %v6659_v25 = vld [vmem:[%s11827_s3 + $0x10] sm:$0xf]  ;;  %v7825_v19 = vld [vmem:[%s11827_s3 + $0x14] sm:$0xf0]  ;;  %2621 = vmatpush.bf16.msrb.mxu2 %v6624_v15  ;;  %v9030_v4 = vpop.f32.mrf.mxu3 }
 0x296   : > { %v6660_v2 = vor.u32 %v7825_v19, %v6659_v25  ;;  %v9034_v25 = vld [vmem:[#allocation4 + $0x11] sm:$0xff] }
 0x297   : > { %v2239_v9 = vadd.f32 %v8862_v54, %v2205_v8  ;;  %6597 = vmatmul.msk.bf16.gmra.mxu0 %vm347_vm0, %v2041_v50  ;;  %v6611_v8 = vld [vmem:[%s11827_s3 + $0x40] sm:$0xf] }
 0x298   : > { %2701 = vmatpush.bf16.msrb.mxu3 %v6660_v2  ;;  %v6612_v59 = vor.u32 %v7831_v44, %v6611_v8  ;;  %v2496_v2 = vld [vmem:[#allocation4] sm:$0xff]  ;;  %v1978_v44 = vadd.f32 %v8848_v20, %v1749_v52  ;;  %v6915_v52 = vld [vmem:[%s11827_s3 + $0x1b0] sm:$0xf] }
 0x299   : > { %v2269_v21 = vmax.f32 %v2239_v9, 0.0  ;;  %v9043_v8 = vpack.c.bf16 %v2497_v51, %v2496_v2  ;;  %v6907_v51 = vld [vmem:[%s11827_s3 + $0x1a0] sm:$0xf] }
 0x29a   : > { %v8984_v61 = vld [vmem:[#allocation2 + $0x28] sm:$0xff]  ;;  %2594 = vmatpush.bf16.msra.mxu1 %v6612_v59 }
 0x29b   : > { %v2383_v3 = vmax.f32 %v2369_v5, %v8984_v61  ;;  %2300 = vst.msk [vmem:[#allocation2 + $0x30] sm:$0xff] %vm2293_vm1, %v2269_v21  ;;  %v6613_v5 = vld [vmem:[%s11827_s3 + $0x48] sm:$0xf0]  ;;  %v6651_v21 = vld [vmem:[%s11827_s3] sm:$0xf] }
 0x29c   : > { %v2141_v50 = vpop.f32.mrf.mxu0  ;;  %v6652_v15 = vor.u32 %v7823_v35, %v6651_v21  ;;  %v1520_v21 = vadd.f32 %v8857_v11, %v8687_v57  ;;  %v7877_v57 = vld [vmem:[%s11827_s3 + $0x1b4] sm:$0xf0] }
 0x29d   : > { %2397 = vst.msk [vmem:[#allocation3 + $0x8] sm:$0xff] %vm2293_vm1, %v2383_v3  ;;  %v2206_v48 = vadd.f32 %v2141_v50, %v1977_v34  ;;  %v6563_v34 = vld [vmem:[%s8114_s10 + $0x15a] sm:$0xff]  ;;  %v6616_v3 = vor.u32 %v7830_v29, %v6613_v5  ;;  %v9072_v2 = vpop.f32.mrf.mxu3 }
 0x29e   : > { %v2515_v50 = vld [vmem:[#allocation4 + $0x1] sm:$0xff]  ;;  %2702 = vmatpush.bf16.msrb.mxu3 %v6652_v15  ;;  %v2042_v29 = vpack.c.bf16 %v6563_v34, %v6562_v40  ;;  %v1750_v40 = vadd.f32 %v8909_v63, %v1520_v21 }
 0x29f   : > { %v2240_v9 = vadd.f32 %v8862_v54, %v2206_v48  ;;  %2622 = vmatpush.bf16.msrb.mxu2 %v6616_v3  ;;  %v2522_v48 = vpack.c.bf16 %v9034_v25, %v2515_v50  ;;  %v6916_v3 = vor.u32 %v7877_v57, %v6915_v52  ;;  %v9070_v50 = vpop.f32.mrf.mxu1  ;;  %v7875_v63 = vld [vmem:[%s11827_s3 + $0x1a4] sm:$0xf0] }
 0x2a1   : > { %v2270_v19 = vmax.f32 %v2240_v9, 0.0  ;;  %v9047_v9 = vpop.f32.mrf.mxu2  ;;  %6641 = vmatmul.msk.bf16.vlgmr.msra.gmra.mxu1 %vm2293_vm1, %v2522_v48  ;;  %6681 = vmatmul.msk.bf16.vlgmr.msrb.gmra.mxu3 %vm2293_vm1, %v9043_v8 }
 0x2a2   : > { %6645 = vmatmul.msk.bf16.vlgmr.msrb.gmra.mxu2 %vm2293_vm1, %v2522_v48  ;;  %3396 = vmatpush.bf16.msrb.mxu0 %v6916_v3  ;;  %v1979_v48 = vadd.f32 %v8864_v60, %v1750_v40  ;;  %v7873_v60 = vld [vmem:[%s11827_s3 + $0x194] sm:$0xf0] }
 0x2a3   : > { %2301 = vst.msk [vmem:[#allocation2 + $0x38] sm:$0xff] %vm2293_vm1, %v2270_v19 }
 0x2a4   : > { %v2144_v59 = vpop.f32.mrf.mxu0  ;;  %v2410_v5 = vld [vmem:[#allocation3] ss:$2 sm:$0x7f]  ;;  %v2424_v20 = vld [vmem:[#allocation3 + $0x1] ss:$2 sm:$0x7f] }
 0x2a5   : > { %v2207_v35 = vadd.f32 %v2144_v59, %v1978_v44  ;;  %v2451_v11 = vmax.f32 %v2410_v5, %v2424_v20  ;;  %v2438_v15 = vld [vmem:[#allocation3 + $0x2] ss:$2 sm:$0x7f]  ;;  %v6908_v44 = vor.u32 %v7875_v63, %v6907_v51  ;;  %v1521_v59 = vadd.f32 %v8872_v24, %v8701_v56 }
 0x2a6   : > { %v6899_v20 = vld [vmem:[%s11827_s3 + $0x190] sm:$0xf] }
 0x2a7   : > { %v2241_v34 = vadd.f32 %v8862_v54, %v2207_v35  ;;  %6598 = vmatmul.msk.bf16.gmra.mxu0 %vm347_vm0, %v2042_v29  ;;  %v2458_v19 = vmax.f32 %v2451_v11, %v2438_v15  ;;  %v2341_v35 = vld [vmem:[#allocation2 + $0x30] sm:$0xff]  ;;  %v1751_v52 = vadd.f32 %v8921_v49, %v1521_v59  ;;  %v6900_v11 = vor.u32 %v7873_v60, %v6899_v20  ;;  %v9099_v3 = vpop.f32.mrf.mxu1 }
 0x2a8   : > { %3397 = vmatpush.bf16.msrb.mxu0 %v6908_v44  ;;  %v2370_v56 = vmax.f32 %v8955_v46, %v2341_v35  ;;  %v7871_v46 = vld [vmem:[%s11827_s3 + $0x184] sm:$0xf0] }
 0x2a9   : > { %v2271_v7 = vmax.f32 %v2241_v34, 0.0  ;;  %2489 = vst.msk [vmem:[#allocation4 + $0x22] sm:$0x7f] %vm2488_vm2, %v2458_v19  ;;  %v9085_v21 = vpop.f32.mrf.mxu2  ;;  %v1980_v34 = vadd.f32 %v8875_v16, %v1751_v52  ;;  %v9103_v19 = vpop.f32.mrf.mxu3  ;;  %v1522_v16 = vadd.f32 %v8902_v26, %v8713_v39 }
 0x2ab   : > { %2302 = vst.msk [vmem:[#allocation2 + $0x40] sm:$0xff] %vm2293_vm1, %v2271_v7  ;;  %v6891_v7 = vld [vmem:[%s11827_s3 + $0x180] sm:$0xf]  ;;  %v1752_v44 = vadd.f32 %v8947_v22, %v1522_v16 }
 0x2ac   : > { %v2146_v29 = vpop.f32.mrf.mxu0  ;;  %3398 = vmatpush.bf16.msrb.mxu0 %v6900_v11  ;;  %v6892_v63 = vor.u32 %v7871_v46, %v6891_v7  ;;  %v1524_v46 = vadd.f32 %v8929_v31, %v8731_v58 }
 0x2ad   : > { %v2208_v5 = vadd.f32 %v2146_v29, %v1979_v48  ;;  %v2342_v48 = vld [vmem:[#allocation2 + $0x38] sm:$0xff]  ;;  %v1981_v35 = vadd.f32 %v8906_v62, %v1752_v44  ;;  %v6566_v62 = vld [vmem:[%s8114_s10 + $0x182] sm:$0xff] }
 0x2af   : > { %v2242_v57 = vadd.f32 %v8862_v54, %v2208_v5  ;;  %v2371_v5 = vmax.f32 %v8984_v61, %v2342_v48  ;;  %v9128_v60 = vpop.f32.mrf.mxu1  ;;  %v1754_v48 = vadd.f32 %v9047_v9, %v1524_v46 }
 0x2b0   : > { %3399 = vmatpush.bf16.msrb.mxu0 %v6892_v63 }
 0x2b1   : > { %v2272_v24 = vmax.f32 %v2242_v57, 0.0  ;;  %v9118_v59 = vpop.f32.mrf.mxu2  ;;  %v9131_v57 = vpop.f32.mrf.mxu3 }
 0x2b2   : > { %v9096_v40 = vld [vmem:[#allocation2 + $0x40] sm:$0xff] }
 0x2b3   : > { %v2384_v15 = vmax.f32 %v2370_v56, %v9096_v40  ;;  %2303 = vst.msk [vmem:[#allocation2 + $0x48] sm:$0xff] %vm2293_vm1, %v2272_v24  ;;  %v6567_v56 = vld [vmem:[%s8114_s10 + $0x18a] sm:$0xff] }
 0x2b4   : > { %v2149_v49 = vpop.f32.mrf.mxu0 }
 0x2b5   : > { %2398 = vst.msk [vmem:[#allocation3 + $0x10] sm:$0xff] %vm2293_vm1, %v2384_v15  ;;  %v2209_v51 = vadd.f32 %v2149_v49, %v1980_v34 }
 0x2b7   : > { %v2243_v29 = vadd.f32 %v8862_v54, %v2209_v51  ;;  %6599 = vmatmul.msk.bf16.gmra.mxu0 %vm347_vm0, %v8697_v27  ;;  %v1523_v27 = vadd.f32 %v8915_v13, %v8723_v38  ;;  %v2044_v38 = vpack.c.bf16 %v6567_v56, %v6566_v62  ;;  %v9143_v63 = vpop.f32.mrf.mxu1 }
 0x2b9   : > { %v2273_v39 = vmax.f32 %v2243_v29, 0.0  ;;  %v1753_v61 = vadd.f32 %v8982_v45, %v1523_v27  ;;  %v9137_v34 = vpop.f32.mrf.mxu2  ;;  %v9148_v29 = vpop.f32.mrf.mxu3 }
 0x2ba   : > { %v9121_v26 = vld [vmem:[#allocation2 + $0x48] sm:$0xff] }
 0x2bb   : > { %v2385_v20 = vmax.f32 %v2371_v5, %v9121_v26  ;;  %2304 = vst.msk [vmem:[#allocation2 + $0x50] sm:$0xff] %vm2293_vm1, %v2273_v39  ;;  %v1982_v15 = vadd.f32 %v8917_v6, %v1753_v61  ;;  %v1983_v39 = vadd.f32 %v8932_v47, %v1754_v48 }
 0x2bc   : > { %v2151_v22 = vpop.f32.mrf.mxu0 }
 0x2bd   : > { %2399 = vst.msk [vmem:[#allocation3 + $0x18] sm:$0xff] %vm2293_vm1, %v2385_v20  ;;  %v2210_v52 = vadd.f32 %v2151_v22, %v1981_v35  ;;  %v1525_v35 = vadd.f32 %v8966_v30, %v8738_v37 }
 0x2bf   : > { %v2244_v11 = vadd.f32 %v8862_v54, %v2210_v52  ;;  %v1755_v22 = vadd.f32 %v9085_v21, %v1525_v35  ;;  %v2517_v52 = vld [vmem:[#allocation4 + $0x21] sm:$0xff]  ;;  %v9161_v47 = vpop.f32.mrf.mxu1 }
 0x2c1   : > { %v2274_v24 = vmax.f32 %v2244_v11, 0.0  ;;  %v1708_v58 = vpop.f32.mrf.mxu2  ;;  %v2498_v11 = vld [vmem:[#allocation4 + $0x20] sm:$0xff]  ;;  %v9168_v30 = vpop.f32.mrf.mxu3 }
 0x2c2   : > { %v2343_v20 = vld [vmem:[#allocation2 + $0x50] sm:$0xff] }
 0x2c3   : > { %2305 = vst.msk [vmem:[#allocation2 + $0x58] sm:$0xff] %vm2293_vm1, %v2274_v24  ;;  %v2372_v56 = vmax.f32 %v9096_v40, %v2343_v20 }
 0x2c4   : > { %v2154_v13 = vpop.f32.mrf.mxu0  ;;  %v2412_v49 = vld [vmem:[#allocation3 + $0x10] ss:$2 sm:$0x7f]  ;;  %v2426_v7 = vld [vmem:[#allocation3 + $0x11] ss:$2 sm:$0x7f] }
 0x2c5   : > { %v2211_v16 = vadd.f32 %v2154_v13, %v1982_v15  ;;  %v2452_v45 = vmax.f32 %v2412_v49, %v2426_v7  ;;  %v2440_v51 = vld [vmem:[#allocation3 + $0x12] ss:$2 sm:$0x7f]  ;;  %v1526_v49 = vadd.f32 %v9018_v53, %v8744_v42 }
 0x2c7   : > { %v2245_v44 = vadd.f32 %v8862_v54, %v2211_v16  ;;  %6600 = vmatmul.msk.bf16.gmra.mxu0 %vm347_vm0, %v2044_v38  ;;  %v2459_v6 = vmax.f32 %v2452_v45, %v2440_v51  ;;  %v1984_v38 = vadd.f32 %v8969_v1, %v1755_v22  ;;  %v9183_v1 = vpack.c.bf16 %v2517_v52, %v9034_v25  ;;  %v9192_v42 = vpop.f32.mrf.mxu1 }
 0x2c8   : > { %v1756_v45 = vadd.f32 %v9118_v59, %v1526_v49 }
 0x2c9   : > { %v2275_v5 = vmax.f32 %v2245_v44, 0.0  ;;  %2490 = vst.msk [vmem:[#allocation4 + $0x32] sm:$0x7f] %vm2488_vm2, %v2459_v6  ;;  %v1711_v46 = vpop.f32.mrf.mxu2 }
 0x2ca   : > { %v2344_v16 = vld [vmem:[#allocation2 + $0x58] sm:$0xff]  ;;  %v1985_v53 = vadd.f32 %v9030_v4, %v1756_v45 }
 0x2cb   : > { %2306 = vst.msk [vmem:[#allocation2 + $0x60] sm:$0xff] %vm2293_vm1, %v2275_v5  ;;  %v2373_v48 = vmax.f32 %v9121_v26, %v2344_v16  ;;  %v9197_v5 = vpop.f32.mrf.mxu3  ;;  %v1529_v16 = vadd.f32 %v9128_v60, %v8771_v14 }
 0x2cc   : > { %v2156_v31 = vpop.f32.mrf.mxu0 }
 0x2cd   : > { %v2212_v9 = vadd.f32 %v2156_v31, %v1983_v39  ;;  %v1527_v39 = vadd.f32 %v9070_v50, %v8757_v17 }
 0x2cf   : > { %v2246_v27 = vadd.f32 %v8862_v54, %v2212_v9  ;;  %v1757_v31 = vadd.f32 %v9137_v34, %v1527_v39  ;;  %v9208_v17 = vpop.f32.mrf.mxu1 }
 0x2d0   : > { %v9157_v61 = vld [vmem:[#allocation4 + $0x31] sm:$0xff] }
 0x2d1   : > { %v9159_v62 = vld [vmem:[#allocation4 + $0x30] sm:$0xff]  ;;  %v2276_v24 = vmax.f32 %v2246_v27, 0.0  ;;  %v2523_v15 = vpack.c.bf16 %v9157_v61, %v2517_v52  ;;  %v1713_v9 = vpop.f32.mrf.mxu2  ;;  %v1986_v4 = vadd.f32 %v9072_v2, %v1757_v31 }
 0x2d2   : > { %v9166_v37 = vpack.c.bf16 %v9159_v62, %v2498_v11  ;;  %v9170_v21 = vld [vmem:[#allocation2 + $0x60] sm:$0xff]  ;;  %v1528_v11 = vadd.f32 %v9099_v3, %v8764_v32  ;;  %v7828_v32 = vld [vmem:[%s11827_s3 + $0x34] sm:$0xf]  ;;  %v6677_v3 = vld [vmem:[%s11827_s3 + $0x38] sm:$0xf0] }
 0x2d3   : > { %v2386_v13 = vmax.f32 %v2372_v56, %v9170_v21  ;;  %2307 = vst.msk [vmem:[#allocation2 + $0x68] sm:$0xff] %vm2293_vm1, %v2276_v24  ;;  %6642 = vmatmul.msk.bf16.gmra.mxu1 %vm2293_vm1, %v2523_v15  ;;  %6646 = vmatmul.msk.bf16.gmra.mxu2 %vm2293_vm1, %v2523_v15  ;;  %v9210_v24 = vpop.f32.mrf.mxu3 }
 0x2d4   : > { %6682 = vmatmul.msk.bf16.gmra.mxu3 %vm2293_vm1, %v9166_v37  ;;  %v2159_v40 = vpop.f32.mrf.mxu0  ;;  %v1758_v15 = vadd.f32 %v1708_v58, %v1528_v11  ;;  %v1530_v11 = vadd.f32 %v9143_v63, %v8776_v55 }
 0x2d5   : > { %2400 = vst.msk [vmem:[#allocation3 + $0x20] sm:$0xff] %vm2293_vm1, %v2386_v13  ;;  %v2213_v7 = vadd.f32 %v2159_v40, %v1984_v38 }
 0x2d6   : > { %v1987_v49 = vadd.f32 %v9103_v19, %v1758_v15  ;;  %v1759_v19 = vadd.f32 %v1711_v46, %v1529_v16  ;;  %v9242_v46 = vld [vmem:[#allocation4 + $0x34] sm:$0xff] }
 0x2d7   : > { %v2247_v51 = vadd.f32 %v8862_v54, %v2213_v7  ;;  %6921 = vmatmul.msk.bf16.vlgmr.msrb.gmra.mxu0 %vm2293_vm1, %v9183_v1  ;;  %v6680_v7 = vor.u32 %v7828_v32, %v6677_v3 }
 0x2d9   : > { %v2277_v44 = vmax.f32 %v2247_v51, 0.0  ;;  %v1716_v40 = vpop.f32.mrf.mxu2  ;;  %2727 = vmatpush.bf16.msrb.mxu1 %v6680_v7 }
 0x2da   : > { %v9190_v6 = vld [vmem:[#allocation2 + $0x68] sm:$0xff] }
 0x2db   : > { %v2387_v25 = vmax.f32 %v2373_v48, %v9190_v6  ;;  %2308 = vst.msk [vmem:[#allocation2 + $0x70] sm:$0xff] %vm2293_vm1, %v2277_v44  ;;  %v9224_v48 = vpop.f32.mrf.mxu1 }
 0x2dc   : > { %v2161_v59 = vpop.f32.mrf.mxu0 }
 0x2dd   : > { %2401 = vst.msk [vmem:[#allocation3 + $0x28] sm:$0xff] %vm2293_vm1, %v2387_v25  ;;  %v2214_v26 = vadd.f32 %v2161_v59, %v1985_v53  ;;  %v9227_v53 = vld [vmem:[#allocation4 + $0x32] sm:$0xff]  ;;  %v9229_v25 = vpop.f32.mrf.mxu3 }
 0x2df   : > { %v2248_v35 = vadd.f32 %v8862_v54, %v2214_v26 }
 0x2e1   : > { %v2278_v20 = vmax.f32 %v2248_v35, 0.0 }
 0x2e2   : > { %v2345_v45 = vld [vmem:[#allocation2 + $0x70] sm:$0xff] }
 0x2e3   : > { %2309 = vst.msk [vmem:[#allocation2 + $0x78] sm:$0xff] %vm2293_vm1, %v2278_v20  ;;  %v2374_v59 = vmax.f32 %v9170_v21, %v2345_v45 }
 0x2e4   : > { %v2164_v22 = vpop.f32.mrf.mxu0  ;;  %v2414_v27 = vld [vmem:[#allocation3 + $0x20] ss:$2 sm:$0x7f]  ;;  %v2428_v52 = vld [vmem:[#allocation3 + $0x21] ss:$2 sm:$0x7f] }
 0x2e5   : > { %v2215_v50 = vadd.f32 %v2164_v22, %v1986_v4  ;;  %v2453_v56 = vmax.f32 %v2414_v27, %v2428_v52  ;;  %v2442_v34 = vld [vmem:[#allocation3 + $0x22] ss:$2 sm:$0x7f] }
 0x2e7   : > { %v2249_v38 = vadd.f32 %v8862_v54, %v2215_v50  ;;  %v2460_v13 = vmax.f32 %v2453_v56, %v2442_v34  ;;  %v1760_v34 = vadd.f32 %v1713_v9, %v1530_v11  ;;  %v1531_v9 = vadd.f32 %v9161_v47, %v8781_v10 }
 0x2e9   : > { %v2279_v2 = vmax.f32 %v2249_v38, 0.0  ;;  %2491 = vst.msk [vmem:[#allocation4 + $0x42] sm:$0x7f] %vm2488_vm2, %v2460_v13  ;;  %v1989_v32 = vadd.f32 %v9148_v29, %v1760_v34  ;;  %v1761_v16 = vadd.f32 %v1716_v40, %v1531_v9 }
 0x2ea   : > { %v2346_v56 = vld [vmem:[#allocation2 + $0x78] sm:$0xff] }
 0x2eb   : > { %2310 = vst.msk [vmem:[#allocation2 + $0x80] sm:$0xff] %vm2293_vm1, %v2279_v2  ;;  %v2375_v38 = vmax.f32 %v9190_v6, %v2346_v56  ;;  %v9272_v2 = vpop.f32.mrf.mxu3  ;;  %v7826_v6 = vld [vmem:[%s11827_s3 + $0x24] sm:$0xf]  ;;  %v1990_v10 = vadd.f32 %v9168_v30, %v1761_v16 }
 0x2ec   : > { %v2166_v58 = vpop.f32.mrf.mxu0 }
 0x2ed   : > { %v2216_v51 = vadd.f32 %v2166_v58, %v1987_v49  ;;  %v6669_v58 = vld [vmem:[%s11827_s3 + $0x28] sm:$0xf0] }
 0x2ee   : > { %v6672_v7 = vor.u32 %v7826_v6, %v6669_v58 }
 0x2ef   : > { %v2250_v44 = vadd.f32 %v8862_v54, %v2216_v51 }
 0x2f0   : > { %v9232_v39 = vld [vmem:[#allocation4 + $0x41] sm:$0xff]  ;;  %2728 = vmatpush.bf16.msrb.mxu1 %v6672_v7 }
 0x2f1   : > { %v9234_v26 = vld [vmem:[#allocation4 + $0x40] sm:$0xff]  ;;  %v2280_v14 = vmax.f32 %v2250_v44, 0.0  ;;  %v9240_v60 = vpack.c.bf16 %v9232_v39, %v9157_v61  ;;  %v1988_v61 = vadd.f32 %v9131_v57, %v1759_v19  ;;  %v9269_v57 = vpop.f32.mrf.mxu1 }
 0x2f2   : > { %v9236_v31 = vld [vmem:[#allocation4 + $0x42] sm:$0xff]  ;;  %v9248_v20 = vpack.c.bf16 %v9234_v26, %v9159_v62  ;;  %v1718_v62 = vpop.f32.mrf.mxu2 }
 0x2f3   : > { %v9244_v35 = vld [vmem:[#allocation4 + $0x44] sm:$0xff]  ;;  %v9252_v21 = vpack.c.bf16 %v9236_v31, %v9227_v53  ;;  %2311 = vst.msk [vmem:[#allocation2 + $0x88] sm:$0xff] %vm2293_vm1, %v2280_v14  ;;  %6922 = vmatmul.msk.bf16.gmra.mxu0 %vm2293_vm1, %v9240_v60  ;;  %v9293_v47 = vpop.f32.mrf.mxu3 }
 0x2f4   : > { %v9254_v4 = vld [vmem:[#allocation2 + $0x80] sm:$0xff]  ;;  %v9258_v22 = vpack.c.bf16 %v9244_v35, %v9242_v46  ;;  %v2169_v52 = vpop.f32.mrf.mxu0 }
 0x2f5   : > { %v2388_v27 = vmax.f32 %v2374_v59, %v9254_v4  ;;  %v2217_v50 = vadd.f32 %v2169_v52, %v1988_v61  ;;  %v1532_v61 = vadd.f32 %v9192_v42, %v8785_v41  ;;  %v6661_v41 = vld [vmem:[%s11827_s3 + $0x18] sm:$0xf0] }
 0x2f7   : > { %2402 = vst.msk [vmem:[#allocation3 + $0x30] sm:$0xff] %vm2293_vm1, %v2388_v27  ;;  %v2251_v15 = vadd.f32 %v8862_v54, %v2217_v50  ;;  %v1762_v11 = vadd.f32 %v1718_v62, %v1532_v61  ;;  %v6725_v61 = vld [vmem:[%s11827_s3 + $0xb8] sm:$0xf0] }
 0x2f9   : > { %v2281_v13 = vmax.f32 %v2251_v15, 0.0  ;;  %v9289_v19 = vpop.f32.mrf.mxu1  ;;  %v1991_v30 = vadd.f32 %v9197_v5, %v1762_v11 }
 0x2fa   : > { %v9274_v49 = vld [vmem:[#allocation2 + $0x88] sm:$0xff]  ;;  %v1721_v29 = vpop.f32.mrf.mxu2 }
 0x2fb   : > { %v2389_v55 = vmax.f32 %v2375_v38, %v9274_v49  ;;  %2312 = vst.msk [vmem:[#allocation2 + $0x90] sm:$0xff] %vm2293_vm1, %v2281_v13  ;;  %v7824_v38 = vld [vmem:[%s11827_s3 + $0x14] sm:$0xf]  ;;  %v1533_v13 = vadd.f32 %v9208_v17, %v8790_v23 }
 0x2fc   : > { %v2171_v63 = vpop.f32.mrf.mxu0  ;;  %v6664_v62 = vor.u32 %v7824_v38, %v6661_v41  ;;  %v6717_v41 = vld [vmem:[%s11827_s3 + $0xa8] sm:$0xf0] }
 0x2fd   : > { %2403 = vst.msk [vmem:[#allocation3 + $0x38] sm:$0xff] %vm2293_vm1, %v2389_v55  ;;  %v2218_v3 = vadd.f32 %v2171_v63, %v1989_v32  ;;  %v9311_v63 = vpop.f32.mrf.mxu3  ;;  %v1763_v9 = vadd.f32 %v1721_v29, %v1533_v13 }
 0x2fe   : > { %2729 = vmatpush.bf16.msrb.mxu1 %v6664_v62 }
 0x2ff   : > { %v2252_v45 = vadd.f32 %v8862_v54, %v2218_v3  ;;  %v1992_v29 = vadd.f32 %v9210_v24, %v1763_v9  ;;  %v7845_v24 = vld [vmem:[%s11827_s3 + $0xb4] sm:$0xf0] }
 0x301   : > { %v2282_v51 = vmax.f32 %v2252_v45, 0.0  ;;  %v9309_v32 = vpop.f32.mrf.mxu1 }
 0x302   : > { %v1723_v34 = vpop.f32.mrf.mxu2  ;;  %v2347_v5 = vld [vmem:[#allocation2 + $0x90] sm:$0xff] }
 0x303   : > { %2313 = vst.msk [vmem:[#allocation2 + $0x98] sm:$0xff] %vm2293_vm1, %v2282_v51  ;;  %v2376_v7 = vmax.f32 %v9254_v4, %v2347_v5  ;;  %v7844_v4 = vld [vmem:[%s11827_s3 + $0xb4] sm:$0xf] }
 0x304   : > { %v2174_v44 = vpop.f32.mrf.mxu0  ;;  %v2416_v59 = vld [vmem:[#allocation3 + $0x30] ss:$2 sm:$0x7f]  ;;  %v2430_v14 = vld [vmem:[#allocation3 + $0x31] ss:$2 sm:$0x7f] }
 0x305   : > { %v2219_v27 = vadd.f32 %v2174_v44, %v1990_v10  ;;  %v2454_v40 = vmax.f32 %v2416_v59, %v2430_v14  ;;  %v2444_v52 = vld [vmem:[#allocation3 + $0x32] ss:$2 sm:$0x7f]  ;;  %v1534_v44 = vadd.f32 %v9224_v48, %v8794_v12 }
 0x306   : > { %v6715_v12 = vld [vmem:[%s11827_s3 + $0xa0] sm:$0xf]  ;;  %v7843_v48 = vld [vmem:[%s11827_s3 + $0xa4] sm:$0xf0] }
 0x307   : > { %v2253_v50 = vadd.f32 %v8862_v54, %v2219_v27  ;;  %v2461_v56 = vmax.f32 %v2454_v40, %v2444_v52  ;;  %v6728_v40 = vor.u32 %v7844_v4, %v6725_v61  ;;  %v1764_v11 = vadd.f32 %v1723_v34, %v1534_v44  ;;  %v6699_v4 = vld [vmem:[%s11827_s3 + $0x80] sm:$0xf]  ;;  %v7839_v44 = vld [vmem:[%s11827_s3 + $0x84] sm:$0xf0] }
 0x308   : > { %v6716_v38 = vor.u32 %v7843_v48, %v6715_v12  ;;  %v6700_v61 = vor.u32 %v7839_v44, %v6699_v4 }
 0x309   : > { %v2283_v15 = vmax.f32 %v2253_v50, 0.0  ;;  %2492 = vst.msk [vmem:[#allocation4 + $0x52] sm:$0x7f] %vm2488_vm2, %v2461_v56  ;;  %v9349_v52 = vpop.f32.mrf.mxu1  ;;  %v9352_v56 = vpop.f32.mrf.mxu3  ;;  %2855 = vmatpush.bf16.msra.mxu3 %v6728_v40  ;;  %v1993_v13 = vadd.f32 %v9229_v25, %v1764_v11  ;;  %v7840_v25 = vld [vmem:[%s11827_s3 + $0x94] sm:$0xf] }
 0x30a   : > { %v1726_v45 = vpop.f32.mrf.mxu2  ;;  %v2348_v27 = vld [vmem:[#allocation2 + $0x98] sm:$0xff] }
 0x30b   : > { %2314 = vst.msk [vmem:[#allocation2 + $0xa0] sm:$0xff] %vm2293_vm1, %v2283_v15  ;;  %v7842_v15 = vld [vmem:[%s11827_s3 + $0xa4] sm:$0xf]  ;;  %v2377_v34 = vmax.f32 %v9274_v49, %v2348_v27  ;;  %v6707_v49 = vld [vmem:[%s11827_s3 + $0x90] sm:$0xf] }
 0x30c   : > { %v2176_v42 = vpop.f32.mrf.mxu0  ;;  %v6720_v62 = vor.u32 %v7842_v15, %v6717_v41  ;;  %v6701_v27 = vld [vmem:[%s11827_s3 + $0x88] sm:$0xf0] }
 0x30d   : > { %v2220_v55 = vadd.f32 %v2176_v42, %v1991_v30 }
 0x30e   : > { %2856 = vmatpush.bf16.msra.mxu3 %v6720_v62 }
 0x30f   : > { %v2254_v3 = vadd.f32 %v8862_v54, %v2220_v55 }
 0x310   : > { %v9314_v6 = vld [vmem:[#allocation4 + $0x51] sm:$0xff] }
 0x311   : > { %v9316_v58 = vld [vmem:[#allocation4 + $0x50] sm:$0xff]  ;;  %v2284_v16 = vmax.f32 %v2254_v3, 0.0  ;;  %v2524_v23 = vpack.c.bf16 %v9314_v6, %v9232_v39  ;;  %v7841_v3 = vld [vmem:[%s11827_s3 + $0x94] sm:$0xf0]  ;;  %v9408_v40 = vpop.f32.mrf.mxu3 }
 0x312   : > { %v9323_v17 = vpack.c.bf16 %v9316_v58, %v9234_v26  ;;  %v9325_v51 = vld [vmem:[#allocation2 + $0xa0] sm:$0xff]  ;;  %v6723_v26 = vld [vmem:[%s11827_s3 + $0xb0] sm:$0xf]  ;;  %v1728_v5 = vpop.f32.mrf.mxu2 }
 0x313   : > { %v2390_v10 = vmax.f32 %v2376_v7, %v9325_v51  ;;  %2315 = vst.msk [vmem:[#allocation2 + $0xa8] sm:$0xff] %vm2293_vm1, %v2284_v16  ;;  %6643 = vmatmul.msk.bf16.gmra.mxu1 %vm2293_vm1, %v2524_v23  ;;  %6647 = vmatmul.msk.bf16.gmra.mxu2 %vm2293_vm1, %v2524_v23  ;;  %v6724_v14 = vor.u32 %v7845_v24, %v6723_v26  ;;  %v7822_v23 = vld [vmem:[%s11827_s3 + $0x4] sm:$0xf]  ;;  %v6709_v26 = vld [vmem:[%s11827_s3 + $0x98] sm:$0xf0] }
 0x314   : > { %6683 = vmatmul.msk.bf16.gmra.mxu3 %vm2293_vm1, %v9323_v17  ;;  %v2179_v39 = vpop.f32.mrf.mxu0  ;;  %v1535_v7 = vadd.f32 %v9269_v57, %v8817_v33  ;;  %v6712_v57 = vor.u32 %v7840_v25, %v6709_v26 }
 0x315   : > { %2404 = vst.msk [vmem:[#allocation3 + $0x40] sm:$0xff] %vm2293_vm1, %v2390_v10  ;;  %v2221_v59 = vadd.f32 %v2179_v39, %v1992_v29  ;;  %2827 = vmatpush.bf16.msra.mxu2 %v6724_v14  ;;  %v6653_v29 = vld [vmem:[%s11827_s3 + $0x8] sm:$0xf0]  ;;  %v6708_v10 = vor.u32 %v7841_v3, %v6707_v49  ;;  %v9403_v14 = vpop.f32.mrf.mxu1 }
 0x316   : > { %v6656_v39 = vor.u32 %v7822_v23, %v6653_v29  ;;  %v1765_v24 = vadd.f32 %v1726_v45, %v1535_v7  ;;  %2857 = vmatpush.bf16.msra.mxu3 %v6712_v57  ;;  %v9433_v29 = vld [vmem:[%s11826_s2] ss:$0 sm:$0xff] }
 0x317   : > { %v2255_v50 = vadd.f32 %v8862_v54, %v2221_v59  ;;  %v7838_v59 = vld [vmem:[%s11827_s3 + $0x84] sm:$0xf] }
 0x318   : > { %2730 = vmatpush.bf16.msrb.mxu1 %v6656_v39  ;;  %v6704_v11 = vor.u32 %v7838_v59, %v6701_v27 }
 0x319   : > { %v2285_v30 = vmax.f32 %v2255_v50, 0.0  ;;  %2828 = vmatpush.bf16.msra.mxu2 %v6716_v38  ;;  %v1994_v50 = vadd.f32 %v9272_v2, %v1765_v24 }
 0x31a   : > { %v9367_v42 = vld [vmem:[#allocation2 + $0xa8] sm:$0xff]  ;;  %2858 = vmatpush.bf16.msra.mxu3 %v6704_v11  ;;  %v1731_v41 = vpop.f32.mrf.mxu2 }
 0x31b   : > { %v2391_v55 = vmax.f32 %v2377_v34, %v9367_v42  ;;  %2316 = vst.msk [vmem:[#allocation2 + $0xb0] sm:$0xff] %vm2293_vm1, %v2285_v30  ;;  %v1536_v34 = vadd.f32 %v9289_v19, %v8821_v18  ;;  %v6771_v18 = vld [vmem:[%s11827_s3 + $0xf0] sm:$0xf]  ;;  %v7853_v19 = vld [vmem:[%s11827_s3 + $0xf4] sm:$0xf0] }
 0x31c   : > { %v2181_v9 = vpop.f32.mrf.mxu0  ;;  %v6772_v7 = vor.u32 %v7853_v19, %v6771_v18 }
 0x31d   : > { %2405 = vst.msk [vmem:[#allocation3 + $0x48] sm:$0xff] %vm2293_vm1, %v2391_v55  ;;  %v2222_v16 = vadd.f32 %v2181_v9, %v1993_v13  ;;  %2829 = vmatpush.bf16.msra.mxu2 %v6708_v10  ;;  %v1766_v13 = vadd.f32 %v1728_v5, %v1536_v34  ;;  %v9416_v2 = vpop.f32.mrf.mxu1  ;;  %v9428_v5 = vpop.f32.mrf.mxu3 }
 0x31e   : > { %2969 = vmatpush.bf16.msra.mxu1 %v6772_v7 }
 0x31f   : > { %v2256_v33 = vadd.f32 %v8862_v54, %v2222_v16  ;;  %v1995_v3 = vadd.f32 %v9293_v47, %v1766_v13 }
 0x321   : > { %v2286_v45 = vmax.f32 %v2256_v33, 0.0  ;;  %2830 = vmatpush.bf16.msra.mxu2 %v6700_v61 }
 0x322   : > { %v2349_v16 = vld [vmem:[#allocation2 + $0xb0] sm:$0xff]  ;;  %v1733_v39 = vpop.f32.mrf.mxu2 }
 0x323   : > { %2317 = vst.msk [vmem:[#allocation2 + $0xb8] sm:$0xff] %vm2293_vm1, %v2286_v45  ;;  %v2378_v26 = vmax.f32 %v9325_v51, %v2349_v16  ;;  %v9453_v51 = vld [vmem:[#allocation4 + $0x52] sm:$0xff] }
 0x324   : > { %v2184_v12 = vpop.f32.mrf.mxu0  ;;  %v2418_v48 = vld [vmem:[#allocation3 + $0x40] ss:$2 sm:$0x7f]  ;;  %v2432_v15 = vld [vmem:[#allocation3 + $0x41] ss:$2 sm:$0x7f] }
 0x325   : > { %v2223_v30 = vadd.f32 %v2184_v12, %v1994_v50  ;;  %v2455_v38 = vmax.f32 %v2418_v48, %v2432_v15  ;;  %v2446_v62 = vld [vmem:[#allocation3 + $0x42] ss:$2 sm:$0x7f]  ;;  %v2596_v11 = vpop.f32.mrf.mxu1  ;;  %v2704_v48 = vpop.f32.mrf.mxu3 }
 0x326   : > { %v9459_v50 = vld [vmem:[#allocation4 + $0x54] sm:$0xff]  ;;  %v7011_v15 = vld [vmem:[%s11827_s3 + $0x230] sm:$0xf] }
 0x327   : > { %v2257_v55 = vadd.f32 %v8862_v54, %v2223_v30  ;;  %v2462_v9 = vmax.f32 %v2455_v38, %v2446_v62  ;;  %v1537_v54 = vadd.f32 %v9309_v32, %v8828_v28  ;;  %v1538_v30 = vadd.f32 %v9349_v52, %v8834_v36 }
 0x329   : > { %v2287_v49 = vmax.f32 %v2257_v55, 0.0  ;;  %2493 = vst.msk [vmem:[#allocation4 + $0x62] sm:$0x7f] %vm2488_vm2, %v2462_v9  ;;  %v1767_v47 = vadd.f32 %v1731_v41, %v1537_v54  ;;  %v9486_v41 = vadd.f32 %v2704_v48, %v2596_v11  ;;  %v1768_v55 = vadd.f32 %v1733_v39, %v1538_v30  ;;  %v6763_v39 = vld [vmem:[%s11827_s3 + $0xe0] sm:$0xf] }
 0x32a   : > { %v2350_v13 = vld [vmem:[#allocation2 + $0xb8] sm:$0xff]  ;;  %v1736_v19 = vpop.f32.mrf.mxu2  ;;  %v7887_v11 = vld [vmem:[%s11827_s3 + $0x204] sm:$0xf0] }
 0x32b   : > { %2318 = vst.msk [vmem:[#allocation2 + $0xc0] sm:$0xff] %vm2293_vm1, %v2287_v49  ;;  %v1996_v45 = vadd.f32 %v9311_v63, %v1767_v47  ;;  %v7003_v49 = vld [vmem:[%s11827_s3 + $0x220] sm:$0xf]  ;;  %v2379_v36 = vmax.f32 %v9367_v42, %v2350_v13  ;;  %v6995_v47 = vld [vmem:[%s11827_s3 + $0x210] sm:$0xf]  ;;  %v1540_v13 = vadd.f32 %v9416_v2, %v8851_v43 }
 0x32c   : > { %v2186_v25 = vpop.f32.mrf.mxu0  ;;  %v7889_v42 = vld [vmem:[%s11827_s3 + $0x214] sm:$0xf0] }
 0x32d   : > { %v2224_v23 = vadd.f32 %v2186_v25, %v1995_v3  ;;  %v7891_v3 = vld [vmem:[%s11827_s3 + $0x224] sm:$0xf0]  ;;  %v1997_v25 = vadd.f32 %v9352_v56, %v1768_v55 }
 0x32e   : > { %v7004_v18 = vor.u32 %v7891_v3, %v7003_v49 }
 0x32f   : > { %v2258_v10 = vadd.f32 %v9433_v29, %v2224_v23  ;;  %v2751_v23 = vld [vmem:[#allocation4 + $0x2] sm:$0xff] }
 0x330   : > { %v2521_v24 = vld [vmem:[#allocation4 + $0x61] sm:$0xff] }
 0x331   : > { %v9437_v28 = vld [vmem:[#allocation4 + $0x60] sm:$0xff]  ;;  %v2288_v33 = vmax.f32 %v2258_v10, 0.0  ;;  %v2525_v57 = vpack.c.bf16 %v2521_v24, %v2521_v24  ;;  %v9446_v44 = vpack.c.bf16 %v2521_v24, %v9314_v6  ;;  %v1539_v10 = vadd.f32 %v9403_v14, %v8843_v0 }
 0x332   : > { %v9439_v32 = vld [vmem:[#allocation4 + $0x62] sm:$0xff]  ;;  %v9443_v4 = vpack.c.bf16 %v9437_v28, %v9437_v28  ;;  %v9463_v6 = vpack.c.bf16 %v9437_v28, %v9316_v58  ;;  %v7893_v58 = vld [vmem:[%s11827_s3 + $0x234] sm:$0xf0]  ;;  %v6996_v24 = vor.u32 %v7889_v42, %v6995_v47 }
 0x333   : > { %v9448_v59 = vld [vmem:[#allocation4 + $0x64] sm:$0xff]  ;;  %2319 = vst.msk [vmem:[#allocation2 + $0xc8] sm:$0xff] %vm2293_vm1, %v2288_v33  ;;  %6644 = vmatmul.msk.bf16.gmra.mxu1 %vm2293_vm1, %v2525_v57  ;;  %6648 = vmatmul.msk.bf16.gmra.mxu2 %vm2293_vm1, %v2525_v57  ;;  %v9467_v63 = vpack.c.bf16 %v9439_v32, %v9453_v51  ;;  %v7012_v62 = vor.u32 %v7893_v58, %v7011_v15  ;;  %v9516_v33 = vld [vmem:[#allocation4 + $0x12] sm:$0xff]  ;;  %v6987_v14 = vld [vmem:[%s11827_s3 + $0x200] sm:$0xf]  ;;  %v1738_v58 = vpop.f32.mrf.mxu2 }
 0x334   : > { %v9451_v61 = vld [vmem:[#allocation2 + $0xc0] sm:$0xff]  ;;  %6684 = vmatmul.msk.bf16.gmra.mxu3 %vm2293_vm1, %v9443_v4  ;;  %6923 = vmatmul.msk.bf16.gmra.mxu0 %vm2293_vm1, %v9446_v44  ;;  %v2189_v12 = vpop.f32.mrf.mxu0  ;;  %v9481_v34 = vpack.c.bf16 %v9448_v59, %v9459_v50  ;;  %v2758_v0 = vpack.c.bf16 %v9516_v33, %v2751_v23  ;;  %v6988_v48 = vor.u32 %v7887_v11, %v6987_v14  ;;  %v6819_v14 = vld [vmem:[%s11827_s3 + $0x130] sm:$0xf] }
 0x335   : > { %v2392_v27 = vmax.f32 %v2378_v26, %v9451_v61  ;;  %v2225_v38 = vadd.f32 %v2189_v12, %v1996_v45  ;;  %3680 = vmatpush.bf16.msra.mxu0 %v7012_v62  ;;  %v7851_v26 = vld [vmem:[%s11827_s3 + $0xe4] sm:$0xf0]  ;;  %v1769_v45 = vadd.f32 %v1736_v19, %v1539_v10  ;;  %v1770_v3 = vadd.f32 %v1738_v58, %v1540_v13 }
 0x336   : > { %v6764_v57 = vor.u32 %v7851_v26, %v6763_v39  ;;  %v9549_v42 = vld [vmem:[#allocation4 + $0x22] sm:$0xff] }
 0x337   : > { %2406 = vst.msk [vmem:[#allocation3 + $0x50] sm:$0xff] %vm2293_vm1, %v2392_v27  ;;  %v2259_v9 = vadd.f32 %v9433_v29, %v2225_v38  ;;  %v1998_v15 = vadd.f32 %v9408_v40, %v1769_v45  ;;  %v6755_v40 = vld [vmem:[%s11827_s3 + $0xd0] sm:$0xf]  ;;  %v1999_v43 = vadd.f32 %v9428_v5, %v1770_v3  ;;  %v9554_v5 = vpack.c.bf16 %v9227_v53, %v9549_v42  ;;  %v6747_v53 = vld [vmem:[%s11827_s3 + $0xc0] sm:$0xf] }
 0x338   : > { %2970 = vmatpush.bf16.msra.mxu1 %v6764_v57  ;;  %v7859_v13 = vld [vmem:[%s11827_s3 + $0x124] sm:$0xf0]  ;;  %v6757_v3 = vld [vmem:[%s11827_s3 + $0xd8] sm:$0xf0] }
 0x339   : > { %v2289_v52 = vmax.f32 %v2259_v9, 0.0  ;;  %3681 = vmatpush.bf16.msra.mxu0 %v7004_v18 }
 0x33a   : > { %v9496_v54 = vld [vmem:[#allocation2 + $0xc8] sm:$0xff] }
 0x33b   : > { %v2393_v7 = vmax.f32 %v2379_v36, %v9496_v54  ;;  %2320 = vst.msk [vmem:[#allocation2 + $0xd0] sm:$0xff] %vm2293_vm1, %v2289_v52 }
 0x33c   : > { %v2191_v16 = vpop.f32.mrf.mxu0 }
 0x33d   : > { %2407 = vst.msk [vmem:[#allocation3 + $0x58] sm:$0xff] %vm2293_vm1, %v2393_v7  ;;  %v2226_v56 = vadd.f32 %v2191_v16, %v1997_v25  ;;  %3682 = vmatpush.bf16.msra.mxu0 %v6996_v24  ;;  %v9544_v25 = vpop.f32.mrf.mxu1  ;;  %v9546_v16 = vpop.f32.mrf.mxu3 }
 0x33f   : > { %v2260_v27 = vadd.f32 %v9433_v29, %v2226_v56 }
 0x341   : > { %v2290_v12 = vmax.f32 %v2260_v27, 0.0  ;;  %3683 = vmatpush.bf16.msra.mxu0 %v6988_v48  ;;  %v7850_v48 = vld [vmem:[%s11827_s3 + $0xe4] sm:$0xf] }
 0x342   : > { %v2351_v23 = vld [vmem:[#allocation2 + $0xd0] sm:$0xff] }
 0x343   : > { %2321 = vst.msk [vmem:[#allocation2 + $0xd8] sm:$0xff] %vm2293_vm1, %v2290_v12  ;;  %6685 = vmatmul.msk.bf16.vlgmr.msrb.gmra.mxu1 %vm2293_vm1, %v9043_v8  ;;  %6729 = vmatmul.msk.bf16.vlgmr.msra.gmra.mxu2 %vm2293_vm1, %v2758_v0  ;;  %v7849_v8 = vld [vmem:[%s11827_s3 + $0xd4] sm:$0xf0]  ;;  %v2380_v56 = vmax.f32 %v9451_v61, %v2351_v23  ;;  %v7852_v61 = vld [vmem:[%s11827_s3 + $0xf4] sm:$0xf] }
 0x344   : > { %6733 = vmatmul.msk.bf16.vlgmr.msra.gmra.mxu3 %vm2293_vm1, %v2758_v0  ;;  %v2194_v30 = vpop.f32.mrf.mxu0  ;;  %v2420_v38 = vld [vmem:[#allocation3 + $0x50] ss:$2 sm:$0x7f]  ;;  %v2434_v62 = vld [vmem:[#allocation3 + $0x51] ss:$2 sm:$0x7f]  ;;  %v6756_v18 = vor.u32 %v7849_v8, %v6755_v40 }
 0x345   : > { %v2227_v55 = vadd.f32 %v2194_v30, %v1998_v15  ;;  %v2456_v9 = vmax.f32 %v2420_v38, %v2434_v62  ;;  %v2448_v49 = vld [vmem:[#allocation3 + $0x52] ss:$2 sm:$0x7f]  ;;  %v6773_v0 = vld [vmem:[%s11827_s3 + $0xf8] sm:$0xf0] }
 0x346   : > { %2971 = vmatpush.bf16.msra.mxu1 %v6756_v18  ;;  %v6776_v11 = vor.u32 %v7852_v61, %v6773_v0  ;;  %v7861_v12 = vld [vmem:[%s11827_s3 + $0x134] sm:$0xf0]  ;;  %v6765_v15 = vld [vmem:[%s11827_s3 + $0xe8] sm:$0xf0]  ;;  %v6811_v62 = vld [vmem:[%s11827_s3 + $0x120] sm:$0xf] }
 0x347   : > { %v2261_v36 = vadd.f32 %v9433_v29, %v2227_v55  ;;  %v2463_v52 = vmax.f32 %v2456_v9, %v2448_v49  ;;  %v6820_v38 = vor.u32 %v7861_v12, %v6819_v14  ;;  %v6768_v9 = vor.u32 %v7850_v48, %v6765_v15  ;;  %v7848_v8 = vld [vmem:[%s11827_s3 + $0xd4] sm:$0xf]  ;;  %v7857_v18 = vld [vmem:[%s11827_s3 + $0x114] sm:$0xf0]  ;;  %v6795_v23 = vld [vmem:[%s11827_s3 + $0x100] sm:$0xf] }
 0x348   : > { %2997 = vmatpush.bf16.msrb.mxu2 %v6776_v11  ;;  %v6812_v49 = vor.u32 %v7859_v13, %v6811_v62  ;;  %v9650_v11 = vld [vmem:[#allocation4 + $0x43] sm:$0xff]  ;;  %v2761_v12 = vpack.c.bf16 %v9439_v32, %v9439_v32  ;;  %v3606_v48 = vld [vmem:[#allocation4 + $0x33] sm:$0xff] }
 0x349   : > { %v2291_v19 = vmax.f32 %v2261_v36, 0.0  ;;  %2494 = vst.msk [vmem:[#allocation4 + $0x72] sm:$0x7f] %vm2488_vm2, %v2463_v52  ;;  %3111 = vmatpush.bf16.msrb.mxu3 %v6820_v38  ;;  %v6803_v52 = vld [vmem:[%s11827_s3 + $0x110] sm:$0xf]  ;;  %v9655_v15 = vpack.c.bf16 %v9650_v11, %v3606_v48 }
 0x34a   : > { %v2352_v45 = vld [vmem:[#allocation2 + $0xd8] sm:$0xff]  ;;  %v7107_v38 = vld [vmem:[%s11827_s3 + $0x2b0] sm:$0xf] }
 0x34b   : > { %2322 = vst.msk [vmem:[#allocation2 + $0xe0] sm:$0xff] %vm2293_vm1, %v2291_v19  ;;  %v2381_v40 = vmax.f32 %v9496_v54, %v2352_v45  ;;  %v6760_v19 = vor.u32 %v7848_v8, %v6757_v3  ;;  %v7909_v62 = vld [vmem:[%s11827_s3 + $0x2b4] sm:$0xf0]  ;;  %v7091_v8 = vld [vmem:[%s11827_s3 + $0x290] sm:$0xf] }
 0x34c   : > { %v2196_v2 = vpop.f32.mrf.mxu0  ;;  %2998 = vmatpush.bf16.msrb.mxu2 %v6768_v9  ;;  %v7108_v13 = vor.u32 %v7909_v62, %v7107_v38  ;;  %v7099_v9 = vld [vmem:[%s11827_s3 + $0x2a0] sm:$0xf]  ;;  %v7905_v3 = vld [vmem:[%s11827_s3 + $0x294] sm:$0xf0] }
 0x34d   : > { %v2228_v7 = vadd.f32 %v2196_v2, %v1999_v43  ;;  %3112 = vmatpush.bf16.msrb.mxu3 %v6812_v49  ;;  %v6804_v43 = vor.u32 %v7857_v18, %v6803_v52  ;;  %v7846_v2 = vld [vmem:[%s11827_s3 + $0xc4] sm:$0xf]  ;;  %v7092_v52 = vor.u32 %v7905_v3, %v7091_v8  ;;  %v7869_v62 = vld [vmem:[%s11827_s3 + $0x174] sm:$0xf0] }
 0x34e   : > { %3964 = vmatpush.bf16.msrb.mxu0 %v7108_v13  ;;  %v3035_v18 = vld [vmem:[#allocation4 + $0x4] sm:$0xff]  ;;  %v7868_v13 = vld [vmem:[%s11827_s3 + $0x174] sm:$0xf] }
 0x34f   : > { %v2262_v47 = vadd.f32 %v9433_v29, %v2228_v7  ;;  %v7847_v29 = vld [vmem:[%s11827_s3 + $0xc4] sm:$0xf0]  ;;  %v6749_v7 = vld [vmem:[%s11827_s3 + $0xc8] sm:$0xf0] }
 0x350   : > { %v3326_v10 = vld [vmem:[#allocation4 + $0x71] sm:$0xff]  ;;  %v6748_v27 = vor.u32 %v7847_v29, %v6747_v53  ;;  %v2601_v58 = vpop.f32.mrf.mxu1  ;;  %2999 = vmatpush.bf16.msrb.mxu2 %v6760_v19 }
 0x351   : > { %v2292_v39 = vmax.f32 %v2262_v47, 0.0  ;;  %v9556_v26 = vpack.c.bf16 %v3326_v10, %v3326_v10  ;;  %v7855_v47 = vld [vmem:[%s11827_s3 + $0x104] sm:$0xf0]  ;;  %v3604_v10 = vld [vmem:[#allocation4 + $0x13] sm:$0xff]  ;;  %3113 = vmatpush.bf16.msrb.mxu3 %v6804_v43 }
 0x352   : > { %v2366_v24 = vld [vmem:[#allocation2 + $0xe0] sm:$0xff]  ;;  %2972 = vmatpush.bf16.msra.mxu1 %v6748_v27  ;;  %v9689_v43 = vld [vmem:[#allocation4 + $0x14] sm:$0xff] }
 0x353   : > { %v2394_v57 = vmax.f32 %v2380_v56, %v2366_v24  ;;  %2323 = vst.msk [vmem:[#allocation2 + $0xe8] sm:$0xff] %vm2293_vm1, %v2292_v39  ;;  %6686 = vmatmul.msk.bf16.gmra.mxu1 %vm2293_vm1, %v9166_v37  ;;  %6730 = vmatmul.msk.bf16.gmra.mxu2 %vm2293_vm1, %v9554_v5  ;;  %v9626_v56 = vld [vmem:[#allocation4 + $0x23] sm:$0xff]  ;;  %v9630_v39 = vpack.c.bf16 %v9453_v51, %v9236_v31  ;;  %v7860_v31 = vld [vmem:[%s11827_s3 + $0x134] sm:$0xf]  ;;  %v6821_v51 = vld [vmem:[%s11827_s3 + $0x138] sm:$0xf0] }
 0x354   : > { %6734 = vmatmul.msk.bf16.gmra.mxu3 %vm2293_vm1, %v9554_v5  ;;  %6924 = vmatmul.msk.bf16.gmra.mxu0 %vm2293_vm1, %v9556_v26  ;;  %v6752_v24 = vor.u32 %v7846_v2, %v6749_v7  ;;  %v9633_v53 = vpack.c.bf16 %v9626_v56, %v3604_v10  ;;  %v6824_v29 = vor.u32 %v7860_v31, %v6821_v51  ;;  %v9691_v2 = vld [vmem:[#allocation4 + $0x63] sm:$0xff]  ;;  %v7856_v31 = vld [vmem:[%s11827_s3 + $0x114] sm:$0xf]  ;;  %v6805_v51 = vld [vmem:[%s11827_s3 + $0x118] sm:$0xf0] }
 0x355   : > { %2408 = vst.msk [vmem:[#allocation3 + $0x60] sm:$0xff] %vm2293_vm1, %v2394_v57  ;;  %v6796_v57 = vor.u32 %v7855_v47, %v6795_v23  ;;  %v9694_v7 = vpack.c.bf16 %v9689_v43, %v3035_v18  ;;  %v7083_v23 = vld [vmem:[%s11827_s3 + $0x280] sm:$0xf]  ;;  %v7903_v47 = vld [vmem:[%s11827_s3 + $0x284] sm:$0xf0] }
 0x356   : > { %3000 = vmatpush.bf16.msrb.mxu2 %v6752_v24  ;;  %3139 = vmatpush.bf16.msrb.mxu1 %v6824_v29  ;;  %v3608_v24 = vld [vmem:[#allocation4 + $0x53] sm:$0xff]  ;;  %v6808_v29 = vor.u32 %v7856_v31, %v6805_v51  ;;  %v7867_v18 = vld [vmem:[%s11827_s3 + $0x164] sm:$0xf0] }
 0x357   : > { %v2709_v30 = vpop.f32.mrf.mxu3  ;;  %3114 = vmatpush.bf16.msrb.mxu3 %v6796_v57  ;;  %v7084_v57 = vor.u32 %v7903_v47, %v7083_v23  ;;  %v6861_v47 = vld [vmem:[%s11827_s3 + $0x168] sm:$0xf0]  ;;  %v7865_v31 = vld [vmem:[%s11827_s3 + $0x154] sm:$0xf0] }
 0x358   : > { %v9598_v55 = vadd.f32 %v2709_v30, %v2601_v58  ;;  %v7858_v58 = vld [vmem:[%s11827_s3 + $0x124] sm:$0xf]  ;;  %v6813_v30 = vld [vmem:[%s11827_s3 + $0x128] sm:$0xf0] }
 0x35a   : > { %v2367_v36 = vld [vmem:[#allocation2 + $0xe8] sm:$0xff] }
 0x35b   : > { %v2395_v54 = vmax.f32 %v2381_v40, %v2367_v36  ;;  %v7907_v40 = vld [vmem:[%s11827_s3 + $0x2a4] sm:$0xf0] }
 0x35c   : > { %v7100_v49 = vor.u32 %v7907_v40, %v7099_v9  ;;  %v2893_v36 = vld [vmem:[#allocation4 + $0x3] sm:$0xff]  ;;  %v6869_v9 = vld [vmem:[%s11827_s3 + $0x178] sm:$0xf0] }
 0x35d   : > { %2409 = vst.msk [vmem:[#allocation3 + $0x68] sm:$0xff] %vm2293_vm1, %v2395_v54  ;;  %v9687_v54 = vpop.f32.mrf.mxu2  ;;  %v2900_v19 = vpack.c.bf16 %v3604_v10, %v2893_v36  ;;  %v9703_v10 = vpack.c.bf16 %v9691_v2, %v3608_v24 }
 0x35e   : > { %3965 = vmatpush.bf16.msrb.mxu0 %v7100_v49  ;;  %v6872_v49 = vor.u32 %v7868_v13, %v6869_v9  ;;  %v7863_v13 = vld [vmem:[%s11827_s3 + $0x144] sm:$0xf0]  ;;  %v7862_v9 = vld [vmem:[%s11827_s3 + $0x144] sm:$0xf] }
 0x360   : > { %3282 = vmatpush.bf16.msra.mxu3 %v6872_v49 }
 0x362   : > { %3966 = vmatpush.bf16.msrb.mxu0 %v7092_v52  ;;  %v6859_v52 = vld [vmem:[%s11827_s3 + $0x160] sm:$0xf] }
 0x363   : > { %6687 = vmatmul.msk.bf16.gmra.mxu1 %vm2293_vm1, %v9323_v17  ;;  %6731 = vmatmul.msk.bf16.gmra.mxu2 %vm2293_vm1, %v9630_v39  ;;  %v6860_v23 = vor.u32 %v7867_v18, %v6859_v52 }
 0x364   : > { %6735 = vmatmul.msk.bf16.gmra.mxu3 %vm2293_vm1, %v9630_v39  ;;  %7017 = vmatmul.msk.bf16.vlgmr.msra.gmra.mxu0 %vm2293_vm1, %v9633_v53  ;;  %v2422_v61 = vld [vmem:[#allocation3 + $0x60] ss:$2 sm:$0x7f]  ;;  %v2436_v45 = vld [vmem:[#allocation3 + $0x61] ss:$2 sm:$0x7f] }
 0x365   : > { %v2457_v27 = vmax.f32 %v2422_v61, %v2436_v45  ;;  %v2450_v0 = vld [vmem:[#allocation3 + $0x62] ss:$2 sm:$0x7f]  ;;  %v9717_v61 = vpop.f32.mrf.mxu2  ;;  %v9719_v45 = vpop.f32.mrf.mxu1 }
 0x366   : > { %3967 = vmatpush.bf16.msrb.mxu0 %v7084_v57  ;;  %v6851_v57 = vld [vmem:[%s11827_s3 + $0x150] sm:$0xf] }
 0x367   : > { %v2464_v14 = vmax.f32 %v2457_v27, %v2450_v0  ;;  %v9721_v27 = vpop.f32.mrf.mxu3  ;;  %v3610_v0 = vld [vmem:[#allocation4 + $0x73] sm:$0xff] }
 0x368   : > { %v9732_v38 = vpack.c.bf16 %v3610_v0, %v3610_v0  ;;  %v6853_v0 = vld [vmem:[%s11827_s3 + $0x158] sm:$0xf0] }
 0x369   : > { %2495 = vst.msk [vmem:[#allocation4 + $0x82] sm:$0x7f] %vm2488_vm2, %v2464_v14  ;;  %v2901_v14 = vpack.c.bf16 %v3606_v48, %v9626_v56  ;;  %v7854_v56 = vld [vmem:[%s11827_s3 + $0x104] sm:$0xf]  ;;  %v6867_v48 = vld [vmem:[%s11827_s3 + $0x170] sm:$0xf] }
 0x36a   : > { %v6868_v40 = vor.u32 %v7869_v62, %v6867_v48  ;;  %v6843_v62 = vld [vmem:[%s11827_s3 + $0x140] sm:$0xf] }
 0x36b   : > { %v6844_v49 = vor.u32 %v7863_v13, %v6843_v62 }
 0x36c   : > { %3254 = vmatpush.bf16.msra.mxu2 %v6868_v40  ;;  %v9800_v40 = vpack.c.bf16 %v9459_v50, %v9244_v35  ;;  %v7876_v35 = vld [vmem:[%s11827_s3 + $0x1b4] sm:$0xf]  ;;  %v6917_v50 = vld [vmem:[%s11827_s3 + $0x1b8] sm:$0xf0] }
 0x36d   : > { %v6920_v52 = vor.u32 %v7876_v35, %v6917_v50  ;;  %v7187_v35 = vld [vmem:[%s11827_s3 + $0x310] sm:$0xf] }
 0x370   : > { %3255 = vmatpush.bf16.msra.mxu2 %v6860_v23 }
 0x373   : > { %6688 = vmatmul.msk.bf16.gmra.mxu1 %vm2293_vm1, %v9443_v4  ;;  %6732 = vmatmul.msk.bf16.gmra.mxu2 %vm2293_vm1, %v2761_v12  ;;  %v6816_v4 = vor.u32 %v7858_v58, %v6813_v30  ;;  %v9726_v58 = vpop.f32.mrf.mxu2 }
 0x374   : > { %6736 = vmatmul.msk.bf16.gmra.mxu3 %vm2293_vm1, %v2761_v12  ;;  %7018 = vmatmul.msk.bf16.gmra.mxu0 %vm2293_vm1, %v9655_v15  ;;  %v9724_v12 = vld [vmem:[#allocation4 + $0x24] sm:$0xff] }
 0x375   : > { %3140 = vmatpush.bf16.msrb.mxu1 %v6816_v4  ;;  %v9730_v30 = vpack.c.bf16 %v9242_v46, %v9724_v12  ;;  %v6797_v46 = vld [vmem:[%s11827_s3 + $0x108] sm:$0xf0] }
 0x376   : > { %v6800_v4 = vor.u32 %v7854_v56, %v6797_v46  ;;  %v6852_v46 = vor.u32 %v7865_v31, %v6851_v57  ;;  %v2903_v31 = vpack.c.bf16 %v9691_v2, %v9691_v2  ;;  %v6909_v2 = vld [vmem:[%s11827_s3 + $0x1a8] sm:$0xf0] }
 0x378   : > { %3256 = vmatpush.bf16.msra.mxu2 %v6852_v46  ;;  %v7925_v46 = vld [vmem:[%s11827_s3 + $0x334] sm:$0xf0] }
 0x379   : > { %3141 = vmatpush.bf16.msrb.mxu1 %v6808_v29  ;;  %v7864_v29 = vld [vmem:[%s11827_s3 + $0x154] sm:$0xf] }
 0x37a   : > { %v6856_v48 = vor.u32 %v7864_v29, %v6853_v0  ;;  %v7874_v29 = vld [vmem:[%s11827_s3 + $0x1a4] sm:$0xf] }
 0x37b   : > { %v9786_v56 = vpop.f32.mrf.mxu2  ;;  %v6912_v0 = vor.u32 %v7874_v29, %v6909_v2  ;;  %v3178_v29 = vld [vmem:[#allocation4 + $0x10] sm:$0xff] }
 0x37c   : > { %3257 = vmatpush.bf16.msra.mxu2 %v6844_v49 }
 0x37d   : > { %3142 = vmatpush.bf16.msrb.mxu1 %v6800_v4  ;;  %v2902_v4 = vpack.c.bf16 %v3608_v24, %v9650_v11  ;;  %v6845_v11 = vld [vmem:[%s11827_s3 + $0x148] sm:$0xf0] }
 0x37e   : > { %v6848_v24 = vor.u32 %v7862_v9, %v6845_v11  ;;  %v7195_v11 = vld [vmem:[%s11827_s3 + $0x320] sm:$0xf] }
 0x383   : > { %6777 = vmatmul.msk.bf16.vlgmr.msra.gmra.mxu1 %vm2293_vm1, %v2900_v19  ;;  %6781 = vmatmul.msk.bf16.vlgmr.msrb.gmra.mxu2 %vm2293_vm1, %v2900_v19  ;;  %v7866_v19 = vld [vmem:[%s11827_s3 + $0x164] sm:$0xf] }
 0x384   : > { %6825 = vmatmul.msk.bf16.vlgmr.msrb.gmra.mxu3 %vm2293_vm1, %v9694_v7  ;;  %7019 = vmatmul.msk.bf16.gmra.mxu0 %vm2293_vm1, %v9703_v10  ;;  %v6864_v51 = vor.u32 %v7866_v19, %v6861_v47 }
 0x385   : > { %3424 = vmatpush.bf16.msra.mxu1 %v6920_v52  ;;  %v7921_v52 = vld [vmem:[%s11827_s3 + $0x314] sm:$0xf0] }
 0x386   : > { %3283 = vmatpush.bf16.msra.mxu3 %v6864_v51  ;;  %v9833_v51 = vpack.c.bf16 %v9448_v59, %v9448_v59  ;;  %v7203_v59 = vld [vmem:[%s11827_s3 + $0x330] sm:$0xf] }
 0x389   : > { %3425 = vmatpush.bf16.msra.mxu1 %v6912_v0  ;;  %v9873_v0 = vld [vmem:[#allocation4 + $0x70] sm:$0xff] }
 0x38a   : > { %3284 = vmatpush.bf16.msra.mxu3 %v6856_v48 }
 0x38e   : > { %3285 = vmatpush.bf16.msra.mxu3 %v6848_v24  ;;  %v7923_v24 = vld [vmem:[%s11827_s3 + $0x324] sm:$0xf0] }
 0x38f   : > { %v7196_v50 = vor.u32 %v7923_v24, %v7195_v11  ;;  %v7919_v11 = vld [vmem:[%s11827_s3 + $0x304] sm:$0xf0]  ;;  %v9883_v24 = vpack.c.bf16 %v9873_v0, %v9437_v28  ;;  %v6901_v28 = vld [vmem:[%s11827_s3 + $0x198] sm:$0xf0] }
 0x390   : > { %v2606_v8 = vpop.f32.mrf.mxu1 }
 0x391   : > { %11857 = vst [vmem:[#allocation5_spill] sm:$0xff] %v9883_v24 }
 0x393   : > { %6778 = vmatmul.msk.bf16.gmra.mxu1 %vm2293_vm1, %v2901_v14  ;;  %6782 = vmatmul.msk.bf16.gmra.mxu2 %vm2293_vm1, %v2901_v14  ;;  %v9784_v14 = vpop.f32.mrf.mxu0 }
 0x394   : > { %6826 = vmatmul.msk.bf16.gmra.mxu3 %vm2293_vm1, %v9730_v30  ;;  %7020 = vmatmul.msk.bf16.gmra.mxu0 %vm2293_vm1, %v9732_v38 }
 0x397   : > { %v2714_v3 = vpop.f32.mrf.mxu3 }
 0x398   : > { %v9758_v36 = vadd.f32 %v2714_v3, %v2606_v8  ;;  %v9807_v8 = vpop.f32.mrf.mxu2  ;;  %v9821_v18 = vpop.f32.mrf.mxu1 }
 0x39b   : > { %v9819_v3 = vpop.f32.mrf.mxu0 }
 0x39f   : > { %v9827_v47 = vpop.f32.mrf.mxu3 }
 0x3a0   : > { %v9825_v23 = vpop.f32.mrf.mxu2 }
 0x3a3   : > { %6779 = vmatmul.msk.bf16.gmra.mxu1 %vm2293_vm1, %v2902_v4  ;;  %6783 = vmatmul.msk.bf16.gmra.mxu2 %vm2293_vm1, %v2902_v4  ;;  %v9823_v19 = vpop.f32.mrf.mxu0  ;;  %v7204_v4 = vor.u32 %v7925_v46, %v7203_v59 }
 0x3a4   : > { %6827 = vmatmul.msk.bf16.gmra.mxu3 %vm2293_vm1, %v9800_v40  ;;  %7113 = vmatmul.msk.bf16.vlgmr.msrb.gmra.mxu0 %vm2293_vm1, %v9166_v37 }
 0x3a5   : > { %4248 = vmatpush.bf16.msra.mxu0 %v7204_v4  ;;  %v8041_v4 = vld [vmem:[#allocation4 + $0x20] sm:$0xff] }
 0x3a9   : > { %4249 = vmatpush.bf16.msra.mxu0 %v7196_v50  ;;  %v7872_v50 = vld [vmem:[%s11827_s3 + $0x194] sm:$0xf] }
 0x3ab   : > { %v9855_v62 = vpop.f32.mrf.mxu0 }
 0x3b0   : > { %v2611_v57 = vpop.f32.mrf.mxu1 }
 0x3b3   : > { %6780 = vmatmul.msk.bf16.gmra.mxu1 %vm2293_vm1, %v2903_v31  ;;  %6784 = vmatmul.msk.bf16.gmra.mxu2 %vm2293_vm1, %v2903_v31  ;;  %v9871_v2 = vpop.f32.mrf.mxu0 }
 0x3b4   : > { %6828 = vmatmul.msk.bf16.gmra.mxu3 %vm2293_vm1, %v9833_v51  ;;  %7114 = vmatmul.msk.bf16.gmra.mxu0 %vm2293_vm1, %v9323_v17  ;;  %11856 = vst [vmem:[#allocation11_spill] sm:$0xff] %v9871_v2 }
 0x3b6   : > { %v9853_v48 = vpop.f32.mrf.mxu2 }
 0x3b7   : > { %v2719_v13 = vpop.f32.mrf.mxu3 }
 0x3b8   : > { %v9857_v9 = vadd.f32 %v2719_v13, %v2611_v57  ;;  %v2613_v49 = vpop.f32.mrf.mxu1  ;;  %v7188_v57 = vor.u32 %v7921_v52, %v7187_v35  ;;  %v3185_v13 = vpack.c.bf16 %v8041_v4, %v3178_v29  ;;  %v6904_v52 = vor.u32 %v7872_v50, %v6901_v28  ;;  %v6963_v28 = vld [vmem:[%s11827_s3 + $0x1f0] sm:$0xf] }
 0x3b9   : > { %v7179_v49 = vld [vmem:[%s11827_s3 + $0x300] sm:$0xf] }
 0x3ba   : > { %4250 = vmatpush.bf16.msra.mxu0 %v7188_v57  ;;  %v7180_v35 = vor.u32 %v7919_v11, %v7179_v49  ;;  %3426 = vmatpush.bf16.msra.mxu1 %v6904_v52 }
 0x3be   : > { %v2641_v31 = vpop.f32.mrf.mxu2  ;;  %4251 = vmatpush.bf16.msra.mxu0 %v7180_v35  ;;  %v3894_v35 = vld [vmem:[#allocation4 + $0x80] sm:$0xff] }
 0x3bf   : > { %v2721_v59 = vpop.f32.mrf.mxu3 }
 0x3c0   : > { %v2732_v46 = vpop.f32.mrf.mxu1 }
 0x3c1   : > { %v2733_v57 = vadd.f32 %v2732_v46, %v9687_v54 }
 0x3c3   : > { %6829 = vmatmul.msk.bf16.vlgmr.msrb.gmra.mxu1 %vm2293_vm1, %v9694_v7  ;;  %6873 = vmatmul.msk.bf16.vlgmr.msra.gmra.mxu2 %vm2293_vm1, %v3185_v13 }
 0x3c4   : > { %6877 = vmatmul.msk.bf16.vlgmr.msra.gmra.mxu3 %vm2293_vm1, %v3185_v13  ;;  %7115 = vmatmul.msk.bf16.gmra.mxu0 %vm2293_vm1, %v9883_v24  ;;  %v9903_v13 = vpop.f32.mrf.mxu0  ;;  %v6939_v24 = vld [vmem:[%s11827_s3 + $0x1c0] sm:$0xf] }
 0x3c5   : > { %11858 = vst [vmem:[#allocation9_spill] sm:$0xff] %v9903_v13  ;;  %v6955_v13 = vld [vmem:[%s11827_s3 + $0x1e0] sm:$0xf] }
 0x3c6   : > { %v2832_v7 = vpop.f32.mrf.mxu2 }
 0x3c7   : > { %v9899_v31 = vadd.f32 %v2832_v7, %v9486_v41  ;;  %v2860_v29 = vpop.f32.mrf.mxu3  ;;  %v9912_v41 = vpack.c.bf16 %v3894_v35, %v3894_v35  ;;  %v6965_v7 = vld [vmem:[%s11827_s3 + $0x1f8] sm:$0xf0] }
 0x3c8   : > { %v9901_v59 = vadd.f32 %v2860_v29, %v2733_v57  ;;  %v2734_v4 = vpop.f32.mrf.mxu1  ;;  %v7884_v57 = vld [vmem:[%s11827_s3 + $0x1f4] sm:$0xf] }
 0x3c9   : > { %v2735_v49 = vadd.f32 %v2734_v4, %v9717_v61  ;;  %11860 = vst [vmem:[#allocation8_spill] sm:$0xff] %v9912_v41  ;;  %v7870_v61 = vld [vmem:[%s11827_s3 + $0x184] sm:$0xf]  ;;  %v6968_v35 = vor.u32 %v7884_v57, %v6965_v7  ;;  %v7881_v57 = vld [vmem:[%s11827_s3 + $0x1d4] sm:$0xf0] }
 0x3cb   : > { %3566 = vmatpush.bf16.msrb.mxu3 %v6968_v35 }
 0x3ce   : > { %v9906_v11 = vpop.f32.mrf.mxu2 }
 0x3cf   : > { %v2862_v2 = vpop.f32.mrf.mxu3 }
 0x3d0   : > { %v9908_v50 = vadd.f32 %v2862_v2, %v2735_v49  ;;  %v2737_v54 = vpop.f32.mrf.mxu1  ;;  %v6893_v2 = vld [vmem:[%s11827_s3 + $0x188] sm:$0xf0] }
 0x3d1   : > { %v9910_v46 = vpop.f32.mrf.mxu0  ;;  %v6896_v52 = vor.u32 %v7870_v61, %v6893_v2  ;;  %v2738_v29 = vadd.f32 %v2737_v54, %v9726_v58  ;;  %v7883_v58 = vld [vmem:[%s11827_s3 + $0x1e4] sm:$0xf0] }
 0x3d2   : > { %11859 = vst [vmem:[#allocation10_spill] sm:$0xff] %v9910_v46 }
 0x3d3   : > { %6830 = vmatmul.msk.bf16.gmra.mxu1 %vm2293_vm1, %v9730_v30  ;;  %6874 = vmatmul.msk.bf16.gmra.mxu2 %vm2293_vm1, %v9248_v20 }
 0x3d4   : > { %6878 = vmatmul.msk.bf16.gmra.mxu3 %vm2293_vm1, %v9248_v20  ;;  %7116 = vmatmul.msk.bf16.gmra.mxu0 %vm2293_vm1, %v9912_v41  ;;  %v7885_v20 = vld [vmem:[%s11827_s3 + $0x1f4] sm:$0xf0] }
 0x3d5   : > { %v6964_v49 = vor.u32 %v7885_v20, %v6963_v28  ;;  %3427 = vmatpush.bf16.msra.mxu1 %v6896_v52  ;;  %v6956_v28 = vor.u32 %v7883_v58, %v6955_v13  ;;  %v6957_v52 = vld [vmem:[%s11827_s3 + $0x1e8] sm:$0xf0]  ;;  %v6947_v20 = vld [vmem:[%s11827_s3 + $0x1d0] sm:$0xf]  ;;  %v6949_v13 = vld [vmem:[%s11827_s3 + $0x1d8] sm:$0xf0] }
 0x3d6   : > { %v2837_v4 = vpop.f32.mrf.mxu2 }
 0x3d7   : > { %v9942_v46 = vadd.f32 %v2837_v4, %v9598_v55  ;;  %v2865_v61 = vpop.f32.mrf.mxu3  ;;  %3538 = vmatpush.bf16.msrb.mxu2 %v6964_v49  ;;  %v7882_v55 = vld [vmem:[%s11827_s3 + $0x1e4] sm:$0xf]  ;;  %v6948_v4 = vor.u32 %v7881_v57, %v6947_v20  ;;  %v6941_v20 = vld [vmem:[%s11827_s3 + $0x1c8] sm:$0xf0] }
 0x3d8   : > { %v9944_v2 = vadd.f32 %v2865_v61, %v2738_v29  ;;  %v2739_v41 = vpop.f32.mrf.mxu1  ;;  %v6960_v7 = vor.u32 %v7882_v55, %v6957_v52  ;;  %v7880_v29 = vld [vmem:[%s11827_s3 + $0x1d4] sm:$0xf] }
 0x3d9   : > { %v3418_v54 = vpop.f32.mrf.mxu0  ;;  %v6952_v49 = vor.u32 %v7880_v29, %v6949_v13  ;;  %v2740_v35 = vadd.f32 %v2739_v41, %v9786_v56  ;;  %v7878_v56 = vld [vmem:[%s11827_s3 + $0x1c4] sm:$0xf] }
 0x3da   : > { %3567 = vmatpush.bf16.msrb.mxu3 %v6960_v7  ;;  %v6944_v57 = vor.u32 %v7878_v56, %v6941_v20  ;;  %v7013_v7 = vld [vmem:[%s11827_s3 + $0x238] sm:$0xf0] }
 0x3db   : > { %3539 = vmatpush.bf16.msrb.mxu2 %v6956_v28  ;;  %v7879_v28 = vld [vmem:[%s11827_s3 + $0x1c4] sm:$0xf0] }
 0x3dc   : > { %v6940_v41 = vor.u32 %v7879_v28, %v6939_v24  ;;  %v7892_v24 = vld [vmem:[%s11827_s3 + $0x234] sm:$0xf] }
 0x3dd   : > { %v7016_v29 = vor.u32 %v7892_v24, %v7013_v7  ;;  %v7941_v7 = vld [vmem:[%s11827_s3 + $0x3b4] sm:$0xf0] }
 0x3de   : > { %v9971_v61 = vpop.f32.mrf.mxu2  ;;  %3568 = vmatpush.bf16.msrb.mxu3 %v6952_v49 }
 0x3df   : > { %v2867_v58 = vpop.f32.mrf.mxu3  ;;  %3540 = vmatpush.bf16.msrb.mxu2 %v6948_v4  ;;  %3708 = vmatpush.bf16.msrb.mxu1 %v7016_v29 }
 0x3e0   : > { %v9973_v54 = vadd.f32 %v2867_v58, %v2740_v35  ;;  %v2742_v55 = vpop.f32.mrf.mxu1 }
 0x3e1   : > { %v9975_v52 = vpop.f32.mrf.mxu0  ;;  %v2743_v13 = vadd.f32 %v2742_v55, %v9807_v8 }
 0x3e2   : > { %3569 = vmatpush.bf16.msrb.mxu3 %v6944_v57 }
 0x3e3   : > { %6831 = vmatmul.msk.bf16.gmra.mxu1 %vm2293_vm1, %v9800_v40  ;;  %6875 = vmatmul.msk.bf16.gmra.mxu2 %vm2293_vm1, %v9463_v6 }
 0x3e4   : > { %6879 = vmatmul.msk.bf16.gmra.mxu3 %vm2293_vm1, %v9463_v6  ;;  %7209 = vmatmul.msk.bf16.vlgmr.msra.gmra.mxu0 %vm2293_vm1, %v9554_v5 }
 0x3e5   : > { %3541 = vmatpush.bf16.msrb.mxu2 %v6940_v41 }
 0x3e6   : > { %v2842_v4 = vpop.f32.mrf.mxu2 }
 0x3e7   : > { %v10005_v49 = vadd.f32 %v2842_v4, %v9758_v36  ;;  %v2870_v6 = vpop.f32.mrf.mxu3  ;;  %v3188_v36 = vpack.c.bf16 %v9873_v0, %v9873_v0  ;;  %v7299_v0 = vld [vmem:[%s11827_s3 + $0x3b0] sm:$0xf] }
 0x3e8   : > { %v10007_v35 = vadd.f32 %v2870_v6, %v2743_v13  ;;  %v2744_v58 = vpop.f32.mrf.mxu1  ;;  %v7300_v13 = vor.u32 %v7941_v7, %v7299_v0  ;;  %v10058_v7 = vld [vmem:[#allocation4 + $0x72] sm:$0xff] }
 0x3e9   : > { %v2745_v28 = vadd.f32 %v2744_v58, %v9825_v23  ;;  %v10010_v56 = vpop.f32.mrf.mxu0  ;;  %v7890_v23 = vld [vmem:[%s11827_s3 + $0x224] sm:$0xf] }
 0x3ea   : > { %4532 = vmatpush.bf16.msrb.mxu0 %v7300_v13 }
 0x3ee   : > { %v10012_v20 = vpop.f32.mrf.mxu2 }
 0x3ef   : > { %v2872_v41 = vpop.f32.mrf.mxu3 }
 0x3f0   : > { %v10014_v57 = vadd.f32 %v2872_v41, %v2745_v28  ;;  %v2747_v24 = vpop.f32.mrf.mxu1 }
 0x3f1   : > { %v2748_v8 = vadd.f32 %v2747_v24, %v9853_v48  ;;  %v10017_v55 = vpop.f32.mrf.mxu0  ;;  %v7005_v48 = vld [vmem:[%s11827_s3 + $0x228] sm:$0xf0]  ;;  %v7291_v24 = vld [vmem:[%s11827_s3 + $0x3a0] sm:$0xf] }
 0x3f3   : > { %6832 = vmatmul.msk.bf16.gmra.mxu1 %vm2293_vm1, %v9833_v51  ;;  %6876 = vmatmul.msk.bf16.gmra.mxu2 %vm2293_vm1, %v3188_v36  ;;  %v7008_v51 = vor.u32 %v7890_v23, %v7005_v48 }
 0x3f4   : > { %6880 = vmatmul.msk.bf16.gmra.mxu3 %vm2293_vm1, %v3188_v36  ;;  %7210 = vmatmul.msk.bf16.gmra.mxu0 %vm2293_vm1, %v9630_v39  ;;  %v7939_v36 = vld [vmem:[%s11827_s3 + $0x3a4] sm:$0xf0] }
 0x3f5   : > { %3709 = vmatpush.bf16.msrb.mxu1 %v7008_v51  ;;  %v7292_v23 = vor.u32 %v7939_v36, %v7291_v24  ;;  %v7275_v24 = vld [vmem:[%s11827_s3 + $0x380] sm:$0xf]  ;;  %v7935_v36 = vld [vmem:[%s11827_s3 + $0x384] sm:$0xf0] }
 0x3f6   : > { %v2847_v29 = vpop.f32.mrf.mxu2 }
 0x3f7   : > { %v10040_v4 = vadd.f32 %v2847_v29, %v9857_v9  ;;  %v2875_v6 = vpop.f32.mrf.mxu3  ;;  %v7283_v9 = vld [vmem:[%s11827_s3 + $0x390] sm:$0xf]  ;;  %4533 = vmatpush.bf16.msrb.mxu0 %v7292_v23  ;;  %v7276_v23 = vor.u32 %v7935_v36, %v7275_v24 }
 0x3f8   : > { %v10042_v58 = vadd.f32 %v2875_v6, %v2748_v8  ;;  %v2749_v28 = vpop.f32.mrf.mxu1  ;;  %v7937_v8 = vld [vmem:[%s11827_s3 + $0x394] sm:$0xf0] }
 0x3f9   : > { %v10044_v41 = vpop.f32.mrf.mxu0  ;;  %v7284_v48 = vor.u32 %v7937_v8, %v7283_v9  ;;  %v3469_v28 = vpack.c.bf16 %v9549_v42, %v9516_v33  ;;  %v10073_v9 = vpack.c.bf16 %v10058_v7, %v9439_v32  ;;  %v7888_v33 = vld [vmem:[%s11827_s3 + $0x214] sm:$0xf]  ;;  %v6997_v32 = vld [vmem:[%s11827_s3 + $0x218] sm:$0xf0]  ;;  %v2707_v42 = vadd.f32 %v9546_v16, %v9544_v25  ;;  %v4178_v16 = vld [vmem:[#allocation4 + $0x82] sm:$0xff] }
 0x3fb   : > { %4534 = vmatpush.bf16.msrb.mxu0 %v7284_v48  ;;  %v2881_v8 = vadd.f32 %v9906_v11, %v2707_v42 }
 0x3fe   : > { %v2849_v0 = vpop.f32.mrf.mxu2 }
 0x3ff   : > { %v2877_v51 = vpop.f32.mrf.mxu3  ;;  %4535 = vmatpush.bf16.msrb.mxu0 %v7276_v23 }
 0x400   : > { %v2974_v29 = vpop.f32.mrf.mxu1 }
 0x401   : > { %v3021_v13 = vadd.f32 %v2974_v29, %v9899_v31  ;;  %v10061_v6 = vpop.f32.mrf.mxu0 }
 0x402   : > { %11861 = vst [vmem:[#allocation6_spill] sm:$0xff] %v10061_v6 }
 0x403   : > { %6925 = vmatmul.msk.bf16.vlgmr.msra.gmra.mxu1 %vm2293_vm1, %v9183_v1  ;;  %6969 = vmatmul.msk.bf16.vlgmr.msrb.gmra.mxu2 %vm2293_vm1, %v3469_v28  ;;  %v7000_v1 = vor.u32 %v7888_v33, %v6997_v32  ;;  %v10105_v32 = vpack.c.bf16 %v4178_v16, %v4178_v16  ;;  %v7051_v16 = vld [vmem:[%s11827_s3 + $0x260] sm:$0xf] }
 0x404   : > { %6973 = vmatmul.msk.bf16.vlgmr.msrb.gmra.mxu3 %vm2293_vm1, %v3469_v28  ;;  %7211 = vmatmul.msk.bf16.gmra.mxu0 %vm2293_vm1, %v10073_v9 }
 0x405   : > { %3710 = vmatpush.bf16.msrb.mxu1 %v7000_v1  ;;  %v7900_v1 = vld [vmem:[%s11827_s3 + $0x274] sm:$0xf] }
 0x406   : > { %v3002_v31 = vpop.f32.mrf.mxu2 }
 0x407   : > { %v10091_v48 = vadd.f32 %v3002_v31, %v9901_v59  ;;  %v3116_v0 = vpop.f32.mrf.mxu3  ;;  %v7061_v31 = vld [vmem:[%s11827_s3 + $0x278] sm:$0xf0] }
 0x408   : > { %v10093_v51 = vadd.f32 %v3116_v0, %v3021_v13  ;;  %v2976_v29 = vpop.f32.mrf.mxu1  ;;  %v2712_v13 = vadd.f32 %v9721_v27, %v9719_v45 }
 0x409   : > { %v3023_v28 = vadd.f32 %v2976_v29, %v2881_v8  ;;  %v10095_v24 = vpop.f32.mrf.mxu0  ;;  %v7064_v29 = vor.u32 %v7900_v1, %v7061_v31  ;;  %v7045_v1 = vld [vmem:[%s11827_s3 + $0x258] sm:$0xf0] }
 0x40b   : > { %3850 = vmatpush.bf16.msra.mxu3 %v7064_v29 }
 0x40e   : > { %v3004_v36 = vpop.f32.mrf.mxu2 }
 0x40f   : > { %v10098_v6 = vadd.f32 %v3004_v36, %v9908_v50  ;;  %v3118_v25 = vpop.f32.mrf.mxu3  ;;  %v7886_v50 = vld [vmem:[%s11827_s3 + $0x204] sm:$0xf] }
 0x410   : > { %v10100_v23 = vadd.f32 %v3118_v25, %v3023_v28  ;;  %v2979_v11 = vpop.f32.mrf.mxu1  ;;  %v2885_v28 = vadd.f32 %v9971_v61, %v2712_v13  ;;  %v7897_v13 = vld [vmem:[%s11827_s3 + $0x254] sm:$0xf0] }
 0x411   : > { %v3025_v59 = vadd.f32 %v2979_v11, %v9942_v46  ;;  %v10103_v33 = vpop.f32.mrf.mxu0  ;;  %v6989_v46 = vld [vmem:[%s11827_s3 + $0x208] sm:$0xf0]  ;;  %v7899_v11 = vld [vmem:[%s11827_s3 + $0x264] sm:$0xf0] }
 0x412   : > { %v6992_v42 = vor.u32 %v7886_v50, %v6989_v46  ;;  %v7052_v46 = vor.u32 %v7899_v11, %v7051_v16 }
 0x413   : > { %6926 = vmatmul.msk.bf16.gmra.mxu1 %vm2293_vm1, %v9240_v60  ;;  %6970 = vmatmul.msk.bf16.gmra.mxu2 %vm2293_vm1, %v9252_v21  ;;  %v7059_v60 = vld [vmem:[%s11827_s3 + $0x270] sm:$0xf] }
 0x414   : > { %6974 = vmatmul.msk.bf16.gmra.mxu3 %vm2293_vm1, %v9252_v21  ;;  %7212 = vmatmul.msk.bf16.gmra.mxu0 %vm2293_vm1, %v10105_v32  ;;  %v7901_v21 = vld [vmem:[%s11827_s3 + $0x274] sm:$0xf0] }
 0x415   : > { %v7060_v0 = vor.u32 %v7901_v21, %v7059_v60  ;;  %3711 = vmatpush.bf16.msrb.mxu1 %v6992_v42  ;;  %v7043_v60 = vld [vmem:[%s11827_s3 + $0x250] sm:$0xf]  ;;  %v7896_v21 = vld [vmem:[%s11827_s3 + $0x254] sm:$0xf] }
 0x416   : > { %v3007_v8 = vpop.f32.mrf.mxu2  ;;  %v7044_v31 = vor.u32 %v7897_v13, %v7043_v60  ;;  %v7109_v60 = vld [vmem:[%s11827_s3 + $0x2b8] sm:$0xf0] }
 0x417   : > { %v10137_v45 = vadd.f32 %v3007_v8, %v9944_v2  ;;  %v3121_v27 = vpop.f32.mrf.mxu3  ;;  %3822 = vmatpush.bf16.msra.mxu2 %v7060_v0  ;;  %v7898_v2 = vld [vmem:[%s11827_s3 + $0x264] sm:$0xf]  ;;  %v7048_v8 = vor.u32 %v7896_v21, %v7045_v1 }
 0x418   : > { %v10139_v36 = vadd.f32 %v3121_v27, %v3025_v59  ;;  %v2981_v25 = vpop.f32.mrf.mxu1  ;;  %v7053_v59 = vld [vmem:[%s11827_s3 + $0x268] sm:$0xf0] }
 0x419   : > { %v3027_v61 = vadd.f32 %v2981_v25, %v2885_v28  ;;  %v3702_v50 = vpop.f32.mrf.mxu0  ;;  %v7056_v42 = vor.u32 %v7898_v2, %v7053_v59  ;;  %v7035_v2 = vld [vmem:[%s11827_s3 + $0x240] sm:$0xf]  ;;  %v7908_v59 = vld [vmem:[%s11827_s3 + $0x2b4] sm:$0xf] }
 0x41a   : > { %v7895_v50 = vld [vmem:[%s11827_s3 + $0x244] sm:$0xf0]  ;;  %v7112_v13 = vor.u32 %v7908_v59, %v7109_v60 }
 0x41b   : > { %3823 = vmatpush.bf16.msra.mxu2 %v7052_v46  ;;  %3851 = vmatpush.bf16.msra.mxu3 %v7056_v42  ;;  %v7037_v46 = vld [vmem:[%s11827_s3 + $0x248] sm:$0xf0] }
 0x41c   : > { %3992 = vmatpush.bf16.msra.mxu1 %v7112_v13 }
 0x41e   : > { %v3009_v0 = vpop.f32.mrf.mxu2 }
 0x41f   : > { %v10166_v29 = vadd.f32 %v3009_v0, %v9973_v54  ;;  %v3123_v28 = vpop.f32.mrf.mxu3  ;;  %3824 = vmatpush.bf16.msra.mxu2 %v7044_v31  ;;  %3852 = vmatpush.bf16.msra.mxu3 %v7048_v8  ;;  %v7894_v54 = vld [vmem:[%s11827_s3 + $0x244] sm:$0xf] }
 0x420   : > { %v10168_v27 = vadd.f32 %v3123_v28, %v3027_v61  ;;  %v2984_v25 = vpop.f32.mrf.mxu1  ;;  %v7036_v61 = vor.u32 %v7895_v50, %v7035_v2 }
 0x421   : > { %v3029_v16 = vadd.f32 %v2984_v25, %v10005_v49  ;;  %v10171_v11 = vpop.f32.mrf.mxu0  ;;  %v7040_v49 = vor.u32 %v7894_v54, %v7037_v46  ;;  %v7957_v54 = vld [vmem:[%s11827_s3 + $0x434] sm:$0xf0] }
 0x423   : > { %6927 = vmatmul.msk.bf16.gmra.mxu1 %vm2293_vm1, %v9446_v44  ;;  %6971 = vmatmul.msk.bf16.gmra.mxu2 %vm2293_vm1, %v9467_v63  ;;  %v2717_v44 = vadd.f32 %v9827_v47, %v9821_v18 }
 0x424   : > { %6975 = vmatmul.msk.bf16.gmra.mxu3 %vm2293_vm1, %v9467_v63  ;;  %7305 = vmatmul.msk.bf16.vlgmr.msrb.gmra.mxu0 %vm2293_vm1, %v9730_v30 }
 0x425   : > { %3825 = vmatpush.bf16.msra.mxu2 %v7036_v61  ;;  %3853 = vmatpush.bf16.msra.mxu3 %v7040_v49  ;;  %v2889_v63 = vadd.f32 %v10012_v20, %v2717_v44 }
 0x426   : > { %v3012_v42 = vpop.f32.mrf.mxu2 }
 0x427   : > { %v10203_v21 = vadd.f32 %v3012_v42, %v10007_v35  ;;  %v3126_v1 = vpop.f32.mrf.mxu3  ;;  %v7387_v42 = vld [vmem:[%s11827_s3 + $0x420] sm:$0xf] }
 0x428   : > { %v10205_v31 = vadd.f32 %v3126_v1, %v3029_v16  ;;  %v2986_v8 = vpop.f32.mrf.mxu1  ;;  %v3472_v16 = vpack.c.bf16 %v10058_v7, %v10058_v7  ;;  %v7395_v7 = vld [vmem:[%s11827_s3 + $0x430] sm:$0xf] }
 0x429   : > { %v3031_v0 = vadd.f32 %v2986_v8, %v2889_v63  ;;  %v10207_v28 = vpop.f32.mrf.mxu0  ;;  %v7396_v46 = vor.u32 %v7957_v54, %v7395_v7  ;;  %v7955_v63 = vld [vmem:[%s11827_s3 + $0x424] sm:$0xf0]  ;;  %v7953_v8 = vld [vmem:[%s11827_s3 + $0x414] sm:$0xf0]  ;;  %v7371_v7 = vld [vmem:[%s11827_s3 + $0x400] sm:$0xf] }
 0x42a   : > { %v7388_v1 = vor.u32 %v7955_v63, %v7387_v42  ;;  %v8042_v54 = vld [vmem:[#allocation4 + $0x64] sm:$0xff] }
 0x42b   : > { %4817 = vmatpush.bf16.msra.mxu0 %v7396_v46 }
 0x42e   : > { %v3014_v25 = vpop.f32.mrf.mxu2 }
 0x42f   : > { %v10210_v18 = vadd.f32 %v3014_v25, %v10014_v57  ;;  %v3128_v47 = vpop.f32.mrf.mxu3  ;;  %v7906_v57 = vld [vmem:[%s11827_s3 + $0x2a4] sm:$0xf]  ;;  %4818 = vmatpush.bf16.msra.mxu0 %v7388_v1 }
 0x430   : > { %v10212_v2 = vadd.f32 %v3128_v47, %v3031_v0  ;;  %v2989_v50 = vpop.f32.mrf.mxu1 }
 0x431   : > { %v3033_v20 = vadd.f32 %v2989_v50, %v10040_v4  ;;  %v10215_v35 = vpop.f32.mrf.mxu0  ;;  %v7101_v4 = vld [vmem:[%s11827_s3 + $0x2a8] sm:$0xf0]  ;;  %v10256_v50 = vld [vmem:[#allocation4 + $0x74] sm:$0xff] }
 0x433   : > { %6928 = vmatmul.msk.bf16.gmra.mxu1 %vm2293_vm1, %v9556_v26  ;;  %6972 = vmatmul.msk.bf16.gmra.mxu2 %vm2293_vm1, %v3472_v16  ;;  %v7104_v26 = vor.u32 %v7906_v57, %v7101_v4  ;;  %v3753_v4 = vpack.c.bf16 %v9724_v12, %v9689_v43  ;;  %v7904_v43 = vld [vmem:[%s11827_s3 + $0x294] sm:$0xf]  ;;  %v7093_v12 = vld [vmem:[%s11827_s3 + $0x298] sm:$0xf0] }
 0x434   : > { %6976 = vmatmul.msk.bf16.gmra.mxu3 %vm2293_vm1, %v3472_v16  ;;  %7306 = vmatmul.msk.bf16.gmra.mxu0 %vm2293_vm1, %v9800_v40 }
 0x435   : > { %3993 = vmatpush.bf16.msra.mxu1 %v7104_v26  ;;  %v7951_v26 = vld [vmem:[%s11827_s3 + $0x404] sm:$0xf0] }
 0x436   : > { %v3017_v61 = vpop.f32.mrf.mxu2  ;;  %v7372_v46 = vor.u32 %v7951_v26, %v7371_v7  ;;  %v7916_v26 = vld [vmem:[%s11827_s3 + $0x2f4] sm:$0xf] }
 0x437   : > { %v10238_v49 = vadd.f32 %v3017_v61, %v10042_v58  ;;  %v3131_v59 = vpop.f32.mrf.mxu3  ;;  %v7379_v58 = vld [vmem:[%s11827_s3 + $0x410] sm:$0xf]  ;;  %v10270_v61 = vpack.c.bf16 %v10256_v50, %v8042_v54  ;;  %v7157_v54 = vld [vmem:[%s11827_s3 + $0x2f8] sm:$0xf0] }
 0x438   : > { %v10240_v60 = vadd.f32 %v3131_v59, %v3033_v20  ;;  %v2991_v44 = vpop.f32.mrf.mxu1  ;;  %v7380_v0 = vor.u32 %v7953_v8, %v7379_v58 }
 0x439   : > { %v10242_v13 = vpop.f32.mrf.mxu0 }
 0x43a   : > { %4819 = vmatpush.bf16.msra.mxu0 %v7380_v0 }
 0x43e   : > { %v3019_v25 = vpop.f32.mrf.mxu2  ;;  %4820 = vmatpush.bf16.msra.mxu0 %v7372_v46 }
 0x43f   : > { %v3133_v47 = vpop.f32.mrf.mxu3 }
 0x440   : > { %v3144_v20 = vpop.f32.mrf.mxu1  ;;  %v4462_v47 = vld [vmem:[#allocation4 + $0x84] sm:$0xff] }
 0x441   : > { %v3164_v16 = vadd.f32 %v3144_v20, %v10091_v48  ;;  %v10259_v57 = vpop.f32.mrf.mxu0  ;;  %v7096_v48 = vor.u32 %v7904_v43, %v7093_v12  ;;  %v7160_v12 = vor.u32 %v7916_v26, %v7157_v54 }
 0x443   : > { %7021 = vmatmul.msk.bf16.vlgmr.msrb.gmra.mxu1 %vm2293_vm1, %v9633_v53  ;;  %7065 = vmatmul.msk.bf16.vlgmr.msra.gmra.mxu2 %vm2293_vm1, %v3753_v4 }
 0x444   : > { %7069 = vmatmul.msk.bf16.vlgmr.msra.gmra.mxu3 %vm2293_vm1, %v3753_v4  ;;  %7307 = vmatmul.msk.bf16.gmra.mxu0 %vm2293_vm1, %v10270_v61 }
 0x445   : > { %3994 = vmatpush.bf16.msra.mxu1 %v7096_v48  ;;  %4134 = vmatpush.bf16.msrb.mxu3 %v7160_v12  ;;  %v10361_v12 = vld [vmem:[#allocation4 + $0x41] sm:$0xff] }
 0x446   : > { %v3259_v59 = vpop.f32.mrf.mxu2 }
 0x447   : > { %v10285_v53 = vadd.f32 %v3259_v59, %v10093_v51  ;;  %v3287_v44 = vpop.f32.mrf.mxu3 }
 0x448   : > { %v10287_v42 = vadd.f32 %v3287_v44, %v3164_v16  ;;  %v3146_v63 = vpop.f32.mrf.mxu1  ;;  %v10300_v16 = vpack.c.bf16 %v4462_v47, %v4462_v47 }
 0x449   : > { %v3166_v58 = vadd.f32 %v3146_v63, %v10098_v6  ;;  %v10290_v1 = vpop.f32.mrf.mxu0  ;;  %v7902_v6 = vld [vmem:[%s11827_s3 + $0x284] sm:$0xf] }
 0x44e   : > { %v3261_v8 = vpop.f32.mrf.mxu2 }
 0x44f   : > { %v10293_v0 = vadd.f32 %v3261_v8, %v10100_v23  ;;  %v3289_v25 = vpop.f32.mrf.mxu3  ;;  %v7085_v23 = vld [vmem:[%s11827_s3 + $0x288] sm:$0xf0]  ;;  %v7915_v8 = vld [vmem:[%s11827_s3 + $0x2e4] sm:$0xf0] }
 0x450   : > { %v10295_v20 = vadd.f32 %v3289_v25, %v3166_v58  ;;  %v3149_v4 = vpop.f32.mrf.mxu1  ;;  %v7147_v58 = vld [vmem:[%s11827_s3 + $0x2e0] sm:$0xf] }
 0x451   : > { %v3168_v51 = vadd.f32 %v3149_v4, %v10137_v45  ;;  %v10298_v7 = vpop.f32.mrf.mxu0  ;;  %v7088_v45 = vor.u32 %v7902_v6, %v7085_v23  ;;  %v7148_v4 = vor.u32 %v7915_v8, %v7147_v58  ;;  %v7139_v6 = vld [vmem:[%s11827_s3 + $0x2d0] sm:$0xf]  ;;  %v7913_v23 = vld [vmem:[%s11827_s3 + $0x2d4] sm:$0xf0] }
 0x452   : > { %v10365_v58 = vld [vmem:[#allocation4 + $0x31] sm:$0xff] }
 0x453   : > { %7022 = vmatmul.msk.bf16.gmra.mxu1 %vm2293_vm1, %v9655_v15  ;;  %7066 = vmatmul.msk.bf16.gmra.mxu2 %vm2293_vm1, %v9258_v22  ;;  %v7155_v15 = vld [vmem:[%s11827_s3 + $0x2f0] sm:$0xf] }
 0x454   : > { %7070 = vmatmul.msk.bf16.gmra.mxu3 %vm2293_vm1, %v9258_v22  ;;  %7308 = vmatmul.msk.bf16.gmra.mxu0 %vm2293_vm1, %v10300_v16  ;;  %v7917_v22 = vld [vmem:[%s11827_s3 + $0x2f4] sm:$0xf0] }
 0x455   : > { %v7156_v43 = vor.u32 %v7917_v22, %v7155_v15  ;;  %3995 = vmatpush.bf16.msra.mxu1 %v7088_v45  ;;  %v7912_v45 = vld [vmem:[%s11827_s3 + $0x2d4] sm:$0xf]  ;;  %v7140_v22 = vor.u32 %v7913_v23, %v7139_v6 }
 0x456   : > { %v3264_v46 = vpop.f32.mrf.mxu2  ;;  %v7924_v23 = vld [vmem:[%s11827_s3 + $0x334] sm:$0xf] }
 0x457   : > { %v10329_v48 = vadd.f32 %v3264_v46, %v10139_v36  ;;  %v3292_v59 = vpop.f32.mrf.mxu3  ;;  %4106 = vmatpush.bf16.msrb.mxu2 %v7156_v43  ;;  %v7914_v36 = vld [vmem:[%s11827_s3 + $0x2e4] sm:$0xf] }
 0x458   : > { %v10331_v44 = vadd.f32 %v3292_v59, %v3168_v51  ;;  %v3151_v63 = vpop.f32.mrf.mxu1  ;;  %v7149_v51 = vld [vmem:[%s11827_s3 + $0x2e8] sm:$0xf0] }
 0x459   : > { %v3170_v25 = vadd.f32 %v3151_v63, %v10166_v29  ;;  %v3986_v47 = vpop.f32.mrf.mxu0  ;;  %v7152_v15 = vor.u32 %v7914_v36, %v7149_v51  ;;  %v7141_v29 = vld [vmem:[%s11827_s3 + $0x2d8] sm:$0xf0] }
 0x45a   : > { %v7144_v26 = vor.u32 %v7912_v45, %v7141_v29  ;;  %v7131_v47 = vld [vmem:[%s11827_s3 + $0x2c0] sm:$0xf] }
 0x45b   : > { %4107 = vmatpush.bf16.msrb.mxu2 %v7148_v4  ;;  %4135 = vmatpush.bf16.msrb.mxu3 %v7152_v15  ;;  %v10381_v4 = vpack.c.bf16 %v10361_v12, %v10365_v58  ;;  %v7205_v15 = vld [vmem:[%s11827_s3 + $0x338] sm:$0xf0] }
 0x45e   : > { %v3266_v54 = vpop.f32.mrf.mxu2 }
 0x45f   : > { %v10359_v46 = vadd.f32 %v3266_v54, %v10168_v27  ;;  %v3294_v43 = vpop.f32.mrf.mxu3  ;;  %4108 = vmatpush.bf16.msrb.mxu2 %v7140_v22  ;;  %4136 = vmatpush.bf16.msrb.mxu3 %v7144_v26  ;;  %v7911_v27 = vld [vmem:[%s11827_s3 + $0x2c4] sm:$0xf0] }
 0x460   : > { %v10363_v59 = vadd.f32 %v3294_v43, %v3170_v25  ;;  %v3154_v63 = vpop.f32.mrf.mxu1  ;;  %v7910_v25 = vld [vmem:[%s11827_s3 + $0x2c4] sm:$0xf]  ;;  %v7132_v51 = vor.u32 %v7911_v27, %v7131_v47 }
 0x461   : > { %v3172_v8 = vadd.f32 %v3154_v63, %v10203_v21  ;;  %v10368_v36 = vpop.f32.mrf.mxu0  ;;  %v7133_v21 = vld [vmem:[%s11827_s3 + $0x2c8] sm:$0xf0] }
 0x462   : > { %v7136_v6 = vor.u32 %v7910_v25, %v7133_v21  ;;  %v10411_v25 = vld [vmem:[#allocation4 + $0x61] sm:$0xff] }
 0x463   : > { %7023 = vmatmul.msk.bf16.gmra.mxu1 %vm2293_vm1, %v9703_v10  ;;  %7067 = vmatmul.msk.bf16.gmra.mxu2 %vm2293_vm1, %v9481_v34  ;;  %v7208_v10 = vor.u32 %v7924_v23, %v7205_v15  ;;  %v7973_v15 = vld [vmem:[%s11827_s3 + $0x4b4] sm:$0xf0] }
 0x464   : > { %7071 = vmatmul.msk.bf16.gmra.mxu3 %vm2293_vm1, %v9481_v34  ;;  %7401 = vmatmul.msk.bf16.vlgmr.msra.gmra.mxu0 %vm2293_vm1, %v10381_v4 }
 0x465   : > { %4109 = vmatpush.bf16.msrb.mxu2 %v7132_v51  ;;  %4137 = vmatpush.bf16.msrb.mxu3 %v7136_v6 }
 0x466   : > { %v3269_v45 = vpop.f32.mrf.mxu2  ;;  %4276 = vmatpush.bf16.msrb.mxu1 %v7208_v10 }
 0x467   : > { %v10401_v29 = vadd.f32 %v3269_v45, %v10205_v31  ;;  %v3297_v22 = vpop.f32.mrf.mxu3 }
 0x468   : > { %v10403_v34 = vadd.f32 %v3297_v22, %v3172_v8  ;;  %v3156_v26 = vpop.f32.mrf.mxu1  ;;  %v3756_v8 = vpack.c.bf16 %v10256_v50, %v10256_v50 }
 0x469   : > { %v3174_v54 = vadd.f32 %v3156_v26, %v10210_v18  ;;  %v10406_v43 = vpop.f32.mrf.mxu0  ;;  %v10420_v18 = vld [vmem:[#allocation4 + $0x51] sm:$0xff] }
 0x46a   : > { %v10424_v23 = vpack.c.bf16 %v10411_v25, %v10420_v18 }
 0x46e   : > { %v3271_v63 = vpop.f32.mrf.mxu2 }
 0x46f   : > { %v10409_v47 = vadd.f32 %v3271_v63, %v10212_v2  ;;  %v3299_v27 = vpop.f32.mrf.mxu3  ;;  %v7922_v2 = vld [vmem:[%s11827_s3 + $0x324] sm:$0xf] }
 0x470   : > { %v10413_v51 = vadd.f32 %v3299_v27, %v3174_v54  ;;  %v3159_v31 = vpop.f32.mrf.mxu1 }
 0x471   : > { %v3176_v21 = vadd.f32 %v3159_v31, %v10238_v49  ;;  %v10416_v6 = vpop.f32.mrf.mxu0  ;;  %v7197_v49 = vld [vmem:[%s11827_s3 + $0x328] sm:$0xf0]  ;;  %v7483_v31 = vld [vmem:[%s11827_s3 + $0x4a0] sm:$0xf] }
 0x472   : > { %11862 = vst [vmem:[#allocation12_spill] sm:$0xff] %v10416_v6  ;;  %v7200_v50 = vor.u32 %v7922_v2, %v7197_v49 }
 0x473   : > { %7024 = vmatmul.msk.bf16.gmra.mxu1 %vm2293_vm1, %v9732_v38  ;;  %7068 = vmatmul.msk.bf16.gmra.mxu2 %vm2293_vm1, %v3756_v8  ;;  %v7491_v38 = vld [vmem:[%s11827_s3 + $0x4b0] sm:$0xf] }
 0x474   : > { %7072 = vmatmul.msk.bf16.gmra.mxu3 %vm2293_vm1, %v3756_v8  ;;  %7402 = vmatmul.msk.bf16.gmra.mxu0 %vm2293_vm1, %v10424_v23  ;;  %v7492_v45 = vor.u32 %v7973_v15, %v7491_v38  ;;  %v7971_v8 = vld [vmem:[%s11827_s3 + $0x4a4] sm:$0xf0] }
 0x475   : > { %4277 = vmatpush.bf16.msrb.mxu1 %v7200_v50  ;;  %v7484_v2 = vor.u32 %v7971_v8, %v7483_v31  ;;  %v10463_v15 = vld [vmem:[#allocation4 + $0x81] sm:$0xff]  ;;  %v10469_v31 = vld [vmem:[#allocation4 + $0x71] sm:$0xff] }
 0x476   : > { %v3274_v10 = vpop.f32.mrf.mxu2  ;;  %5101 = vmatpush.bf16.msrb.mxu0 %v7492_v45  ;;  %v4030_v45 = vld [vmem:[#allocation4 + $0x21] sm:$0xff] }
 0x477   : > { %v10445_v22 = vadd.f32 %v3274_v10, %v10240_v60  ;;  %v3302_v26 = vpop.f32.mrf.mxu3  ;;  %v7475_v60 = vld [vmem:[%s11827_s3 + $0x490] sm:$0xf]  ;;  %v7467_v8 = vld [vmem:[%s11827_s3 + $0x480] sm:$0xf] }
 0x478   : > { %v10447_v54 = vadd.f32 %v3302_v26, %v3176_v21  ;;  %v3161_v63 = vpop.f32.mrf.mxu1  ;;  %v7969_v21 = vld [vmem:[%s11827_s3 + $0x494] sm:$0xf0] }
 0x479   : > { %v10449_v27 = vpop.f32.mrf.mxu0  ;;  %v7476_v49 = vor.u32 %v7969_v21, %v7475_v60  ;;  %v7967_v60 = vld [vmem:[%s11827_s3 + $0x484] sm:$0xf0] }
 0x47a   : > { %11863 = vst [vmem:[#allocation7_spill] sm:$0xff] %v10449_v27  ;;  %5102 = vmatpush.bf16.msrb.mxu0 %v7484_v2  ;;  %v4037_v27 = vpack.c.bf16 %v10365_v58, %v4030_v45  ;;  %v10479_v2 = vpack.c.bf16 %v10463_v15, %v10469_v31  ;;  %v7468_v21 = vor.u32 %v7967_v60, %v7467_v8  ;;  %v7189_v58 = vld [vmem:[%s11827_s3 + $0x318] sm:$0xf0] }
 0x47c   : > { %11865 = vst [vmem:[#allocation14_spill] sm:$0xff] %v10479_v2 }
 0x47e   : > { %v3276_v50 = vpop.f32.mrf.mxu2  ;;  %5103 = vmatpush.bf16.msrb.mxu0 %v7476_v49  ;;  %v3448_v49 = vadd.f32 %v9784_v14, %v10285_v53 }
 0x47f   : > { %v3304_v38 = vpop.f32.mrf.mxu3 }
 0x480   : > { %v3429_v10 = vpop.f32.mrf.mxu1 }
 0x481   : > { %v3449_v26 = vadd.f32 %v3429_v10, %v10287_v42  ;;  %v10466_v63 = vpop.f32.mrf.mxu0  ;;  %v7920_v42 = vld [vmem:[%s11827_s3 + $0x314] sm:$0xf] }
 0x482   : > { %11864 = vst [vmem:[#allocation13_spill] sm:$0xff] %v10466_v63  ;;  %5104 = vmatpush.bf16.msrb.mxu0 %v7468_v21  ;;  %v3450_v63 = vadd.f32 %v9819_v3, %v10293_v0  ;;  %v7918_v3 = vld [vmem:[%s11827_s3 + $0x304] sm:$0xf]  ;;  %v7181_v0 = vld [vmem:[%s11827_s3 + $0x308] sm:$0xf0] }
 0x483   : > { %7117 = vmatmul.msk.bf16.vlgmr.msra.gmra.mxu1 %vm2293_vm1, %v9166_v37  ;;  %7161 = vmatmul.msk.bf16.vlgmr.msrb.gmra.mxu2 %vm2293_vm1, %v4037_v27  ;;  %v7192_v37 = vor.u32 %v7920_v42, %v7189_v58 }
 0x484   : > { %7165 = vmatmul.msk.bf16.vlgmr.msrb.gmra.mxu3 %vm2293_vm1, %v4037_v27  ;;  %7403 = vmatmul.msk.bf16.gmra.mxu0 %vm2293_vm1, %v10479_v2  ;;  %v4747_v2 = vld [vmem:[#allocation4 + $0x91] sm:$0xff] }
 0x485   : > { %4278 = vmatpush.bf16.msrb.mxu1 %v7192_v37  ;;  %v10508_v58 = vpack.c.bf16 %v4747_v2, %v4747_v2 }
 0x486   : > { %v3543_v50 = vpop.f32.mrf.mxu2 }
 0x487   : > { %v10495_v38 = vadd.f32 %v3543_v50, %v3448_v49  ;;  %v3571_v27 = vpop.f32.mrf.mxu3 }
 0x488   : > { %v10497_v10 = vadd.f32 %v3571_v27, %v3449_v26  ;;  %v3431_v45 = vpop.f32.mrf.mxu1 }
 0x489   : > { %v3451_v8 = vadd.f32 %v3431_v45, %v10295_v20  ;;  %v10500_v60 = vpop.f32.mrf.mxu0  ;;  %v4038_v20 = vpack.c.bf16 %v10420_v18, %v10361_v12  ;;  %v7184_v12 = vor.u32 %v7918_v3, %v7181_v0  ;;  %v7932_v18 = vld [vmem:[%s11827_s3 + $0x374] sm:$0xf]  ;;  %v7245_v0 = vld [vmem:[%s11827_s3 + $0x368] sm:$0xf0] }
 0x48b   : > { %4279 = vmatpush.bf16.msrb.mxu1 %v7184_v12 }
 0x48e   : > { %v3545_v6 = vpop.f32.mrf.mxu2 }
 0x48f   : > { %v10504_v14 = vadd.f32 %v3545_v6, %v3450_v63  ;;  %v3573_v53 = vpop.f32.mrf.mxu3  ;;  %v7933_v6 = vld [vmem:[%s11827_s3 + $0x374] sm:$0xf0]  ;;  %v7253_v63 = vld [vmem:[%s11827_s3 + $0x378] sm:$0xf0] }
 0x490   : > { %v10506_v21 = vadd.f32 %v3573_v53, %v3451_v8  ;;  %v3434_v42 = vpop.f32.mrf.mxu1  ;;  %v7256_v50 = vor.u32 %v7932_v18, %v7253_v63  ;;  %v7243_v8 = vld [vmem:[%s11827_s3 + $0x360] sm:$0xf]  ;;  %v7931_v53 = vld [vmem:[%s11827_s3 + $0x364] sm:$0xf0] }
 0x491   : > { %v3453_v26 = vadd.f32 %v3434_v42, %v10331_v44  ;;  %v10511_v49 = vpop.f32.mrf.mxu0  ;;  %v7251_v44 = vld [vmem:[%s11827_s3 + $0x370] sm:$0xf]  ;;  %v7930_v42 = vld [vmem:[%s11827_s3 + $0x364] sm:$0xf] }
 0x492   : > { %v7252_v37 = vor.u32 %v7933_v6, %v7251_v44  ;;  %4418 = vmatpush.bf16.msra.mxu3 %v7256_v50  ;;  %v7235_v44 = vld [vmem:[%s11827_s3 + $0x350] sm:$0xf]  ;;  %v7248_v12 = vor.u32 %v7930_v42, %v7245_v0  ;;  %v7928_v6 = vld [vmem:[%s11827_s3 + $0x354] sm:$0xf]  ;;  %v7926_v0 = vld [vmem:[%s11827_s3 + $0x344] sm:$0xf] }
 0x493   : > { %7118 = vmatmul.msk.bf16.gmra.mxu1 %vm2293_vm1, %v9323_v17  ;;  %7162 = vmatmul.msk.bf16.gmra.mxu2 %vm2293_vm1, %v4038_v20  ;;  %v3452_v17 = vadd.f32 %v9823_v19, %v10329_v48  ;;  %v10578_v42 = vld [vmem:[#allocation4 + $0x33] sm:$0xff] }
 0x494   : > { %7166 = vmatmul.msk.bf16.gmra.mxu3 %vm2293_vm1, %v4038_v20  ;;  %7404 = vmatmul.msk.bf16.gmra.mxu0 %vm2293_vm1, %v10508_v58 }
 0x495   : > { %4390 = vmatpush.bf16.msra.mxu2 %v7252_v37 }
 0x496   : > { %v3548_v2 = vpop.f32.mrf.mxu2  ;;  %4419 = vmatpush.bf16.msra.mxu3 %v7248_v12  ;;  %v7940_v12 = vld [vmem:[%s11827_s3 + $0x3b4] sm:$0xf] }
 0x497   : > { %v10541_v27 = vadd.f32 %v3548_v2, %v3452_v17  ;;  %v3576_v45 = vpop.f32.mrf.mxu3  ;;  %v7929_v17 = vld [vmem:[%s11827_s3 + $0x354] sm:$0xf0]  ;;  %v3454_v2 = vadd.f32 %v9855_v62, %v10359_v46  ;;  %v4039_v62 = vpack.c.bf16 %v10469_v31, %v10411_v25  ;;  %v7227_v46 = vld [vmem:[%s11827_s3 + $0x340] sm:$0xf]  ;;  %v7229_v25 = vld [vmem:[%s11827_s3 + $0x348] sm:$0xf0] }
 0x498   : > { %v10543_v19 = vadd.f32 %v3576_v45, %v3453_v26  ;;  %v3436_v48 = vpop.f32.mrf.mxu1  ;;  %v7244_v26 = vor.u32 %v7931_v53, %v7243_v8  ;;  %v7236_v18 = vor.u32 %v7929_v17, %v7235_v44  ;;  %v11866_v31 = vld [vmem:[#allocation5_spill] sm:$0xff]  ;;  %v7232_v17 = vor.u32 %v7926_v0, %v7229_v25 }
 0x499   : > { %v3455_v20 = vadd.f32 %v3436_v48, %v10363_v59  ;;  %v4270_v3 = vpop.f32.mrf.mxu0  ;;  %v7237_v59 = vld [vmem:[%s11827_s3 + $0x358] sm:$0xf0]  ;;  %v10574_v48 = vld [vmem:[#allocation4 + $0x43] sm:$0xff]  ;;  %v11868_v0 = vld [vmem:[#allocation9_spill] sm:$0xff] }
 0x49a   : > { %4391 = vmatpush.bf16.msra.mxu2 %v7244_v26  ;;  %v7240_v63 = vor.u32 %v7928_v6, %v7237_v59  ;;  %v7301_v6 = vld [vmem:[%s11827_s3 + $0x3b8] sm:$0xf0]  ;;  %v11867_v59 = vld [vmem:[#allocation11_spill] sm:$0xff]  ;;  %v3458_v25 = vadd.f32 %v11868_v0, %v10409_v47  ;;  %v7989_v0 = vld [vmem:[%s11827_s3 + $0x534] sm:$0xf0] }
 0x49c   : > { %4420 = vmatpush.bf16.msra.mxu3 %v7240_v63  ;;  %v7304_v63 = vor.u32 %v7940_v12, %v7301_v6 }
 0x49e   : > { %v3550_v37 = vpop.f32.mrf.mxu2  ;;  %4392 = vmatpush.bf16.msra.mxu2 %v7236_v18  ;;  %v3456_v18 = vadd.f32 %v11867_v59, %v10401_v29  ;;  %4560 = vmatpush.bf16.msra.mxu1 %v7304_v63  ;;  %v11871_v63 = vld [vmem:[#allocation8_spill] sm:$0xff] }
 0x49f   : > { %v10572_v50 = vadd.f32 %v3550_v37, %v3454_v2  ;;  %v3578_v45 = vpop.f32.mrf.mxu3 }
 0x4a0   : > { %v10576_v8 = vadd.f32 %v3578_v45, %v3455_v20  ;;  %v3439_v53 = vpop.f32.mrf.mxu1  ;;  %v7927_v20 = vld [vmem:[%s11827_s3 + $0x344] sm:$0xf0]  ;;  %4421 = vmatpush.bf16.msra.mxu3 %v7232_v17 }
 0x4a1   : > { %v3457_v3 = vadd.f32 %v3439_v53, %v10403_v34  ;;  %v10581_v26 = vpop.f32.mrf.mxu0  ;;  %v10596_v34 = vpack.c.bf16 %v10574_v48, %v10578_v42  ;;  %v7228_v44 = vor.u32 %v7927_v20, %v7227_v46  ;;  %v10626_v17 = vld [vmem:[#allocation4 + $0x63] sm:$0xff] }
 0x4a3   : > { %7119 = vmatmul.msk.bf16.gmra.mxu1 %vm2293_vm1, %v11866_v31  ;;  %7163 = vmatmul.msk.bf16.gmra.mxu2 %vm2293_vm1, %v4039_v62 }
 0x4a4   : > { %7167 = vmatmul.msk.bf16.gmra.mxu3 %vm2293_vm1, %v4039_v62  ;;  %7497 = vmatmul.msk.bf16.vlgmr.msrb.gmra.mxu0 %vm2293_vm1, %v10596_v34 }
 0x4a5   : > { %4393 = vmatpush.bf16.msra.mxu2 %v7228_v44 }
 0x4a6   : > { %v3553_v2 = vpop.f32.mrf.mxu2 }
 0x4a7   : > { %v10615_v37 = vadd.f32 %v3553_v2, %v3456_v18  ;;  %v3581_v45 = vpop.f32.mrf.mxu3  ;;  %v10635_v18 = vld [vmem:[#allocation4 + $0x53] sm:$0xff] }
 0x4a8   : > { %v10617_v53 = vadd.f32 %v3581_v45, %v3457_v3  ;;  %v3441_v62 = vpop.f32.mrf.mxu1  ;;  %v10639_v47 = vpack.c.bf16 %v10626_v17, %v10635_v18  ;;  %v11872_v2 = vld [vmem:[#allocation10_spill] sm:$0xff] }
 0x4a9   : > { %v3459_v46 = vadd.f32 %v3441_v62, %v10413_v51  ;;  %v10620_v20 = vpop.f32.mrf.mxu0  ;;  %v4040_v51 = vpack.c.bf16 %v10463_v15, %v10463_v15  ;;  %v7293_v15 = vld [vmem:[%s11827_s3 + $0x3a8] sm:$0xf0]  ;;  %v3460_v45 = vadd.f32 %v11872_v2, %v10445_v22  ;;  %v7571_v2 = vld [vmem:[%s11827_s3 + $0x510] sm:$0xf] }
 0x4aa   : > { %11870 = vst [vmem:[#allocation11_spill] sm:$0xff] %v10639_v47 }
 0x4ae   : > { %v3555_v31 = vpop.f32.mrf.mxu2 }
 0x4af   : > { %v10624_v29 = vadd.f32 %v3555_v31, %v3458_v25  ;;  %v3583_v44 = vpop.f32.mrf.mxu3 }
 0x4b0   : > { %v10628_v12 = vadd.f32 %v3583_v44, %v3459_v46  ;;  %v3444_v6 = vpop.f32.mrf.mxu1  ;;  %v7587_v46 = vld [vmem:[%s11827_s3 + $0x530] sm:$0xf] }
 0x4b1   : > { %v3461_v3 = vadd.f32 %v3444_v6, %v10447_v54  ;;  %v10631_v59 = vpop.f32.mrf.mxu0  ;;  %v7938_v54 = vld [vmem:[%s11827_s3 + $0x3a4] sm:$0xf]  ;;  %v7588_v31 = vor.u32 %v7989_v0, %v7587_v46 }
 0x4b2   : > { %11869 = vst [vmem:[#allocation5_spill] sm:$0xff] %v10631_v59  ;;  %v7296_v62 = vor.u32 %v7938_v54, %v7293_v15  ;;  %v7579_v54 = vld [vmem:[%s11827_s3 + $0x520] sm:$0xf]  ;;  %v7987_v15 = vld [vmem:[%s11827_s3 + $0x524] sm:$0xf0] }
 0x4b3   : > { %7120 = vmatmul.msk.bf16.gmra.mxu1 %vm2293_vm1, %v11871_v63  ;;  %7164 = vmatmul.msk.bf16.gmra.mxu2 %vm2293_vm1, %v4040_v51 }
 0x4b4   : > { %7168 = vmatmul.msk.bf16.gmra.mxu3 %vm2293_vm1, %v4040_v51  ;;  %7498 = vmatmul.msk.bf16.gmra.mxu0 %vm2293_vm1, %v10639_v47 }
 0x4b5   : > { %4561 = vmatpush.bf16.msra.mxu1 %v7296_v62  ;;  %5386 = vmatpush.bf16.msra.mxu0 %v7588_v31 }
 0x4b6   : > { %v3558_v25 = vpop.f32.mrf.mxu2 }
 0x4b7   : > { %v10661_v44 = vadd.f32 %v3558_v25, %v3460_v45  ;;  %v3586_v6 = vpop.f32.mrf.mxu3  ;;  %v7580_v45 = vor.u32 %v7987_v15, %v7579_v54  ;;  %v10679_v25 = vld [vmem:[#allocation4 + $0x83] sm:$0xff]  ;;  %v10685_v54 = vld [vmem:[#allocation4 + $0x73] sm:$0xff] }
 0x4b8   : > { %v10663_v51 = vadd.f32 %v3586_v6, %v3461_v3  ;;  %v3446_v63 = vpop.f32.mrf.mxu1  ;;  %v7985_v3 = vld [vmem:[%s11827_s3 + $0x514] sm:$0xf0]  ;;  %v4314_v6 = vld [vmem:[#allocation4 + $0x23] sm:$0xff] }
 0x4b9   : > { %v10665_v22 = vpop.f32.mrf.mxu0  ;;  %5387 = vmatpush.bf16.msra.mxu0 %v7580_v45  ;;  %v7572_v62 = vor.u32 %v7985_v3, %v7571_v2  ;;  %v4321_v59 = vpack.c.bf16 %v10578_v42, %v4314_v6  ;;  %v7563_v15 = vld [vmem:[%s11827_s3 + $0x500] sm:$0xf]  ;;  %v7983_v2 = vld [vmem:[%s11827_s3 + $0x504] sm:$0xf0]  ;;  %v10695_v45 = vpack.c.bf16 %v10679_v25, %v10685_v54  ;;  %v7285_v42 = vld [vmem:[%s11827_s3 + $0x398] sm:$0xf0] }
 0x4ba   : > { %11873 = vst [vmem:[#allocation9_spill] sm:$0xff] %v10665_v22  ;;  %v7564_v3 = vor.u32 %v7983_v2, %v7563_v15 }
 0x4bb   : > { %11875 = vst [vmem:[#allocation10_spill] sm:$0xff] %v10695_v45 }
 0x4bd   : > { %5388 = vmatpush.bf16.msra.mxu0 %v7572_v62  ;;  %v3732_v62 = vadd.f32 %v9975_v52, %v10495_v38 }
 0x4be   : > { %v3560_v46 = vpop.f32.mrf.mxu2 }
 0x4bf   : > { %v3588_v0 = vpop.f32.mrf.mxu3 }
 0x4c0   : > { %v3713_v31 = vpop.f32.mrf.mxu1 }
 0x4c1   : > { %v3733_v63 = vadd.f32 %v3713_v31, %v10497_v10  ;;  %v10682_v22 = vpop.f32.mrf.mxu0  ;;  %v7936_v10 = vld [vmem:[%s11827_s3 + $0x394] sm:$0xf]  ;;  %5389 = vmatpush.bf16.msra.mxu0 %v7564_v3 }
 0x4c2   : > { %11874 = vst [vmem:[#allocation8_spill] sm:$0xff] %v10682_v22  ;;  %v3734_v22 = vadd.f32 %v10010_v56, %v10504_v14  ;;  %v7934_v56 = vld [vmem:[%s11827_s3 + $0x384] sm:$0xf]  ;;  %v7277_v14 = vld [vmem:[%s11827_s3 + $0x388] sm:$0xf0] }
 0x4c3   : > { %7213 = vmatmul.msk.bf16.vlgmr.msrb.gmra.mxu1 %vm2293_vm1, %v9554_v5  ;;  %7257 = vmatmul.msk.bf16.vlgmr.msra.gmra.mxu2 %vm2293_vm1, %v4321_v59  ;;  %v7288_v5 = vor.u32 %v7936_v10, %v7285_v42 }
 0x4c4   : > { %7261 = vmatmul.msk.bf16.vlgmr.msra.gmra.mxu3 %vm2293_vm1, %v4321_v59  ;;  %7499 = vmatmul.msk.bf16.gmra.mxu0 %vm2293_vm1, %v10695_v45  ;;  %v5031_v45 = vld [vmem:[#allocation4 + $0x93] sm:$0xff] }
 0x4c5   : > { %4562 = vmatpush.bf16.msra.mxu1 %v7288_v5  ;;  %v10724_v42 = vpack.c.bf16 %v5031_v45, %v5031_v45 }
 0x4c6   : > { %v3827_v46 = vpop.f32.mrf.mxu2 }
 0x4c7   : > { %v10711_v0 = vadd.f32 %v3827_v46, %v3732_v62  ;;  %v3855_v59 = vpop.f32.mrf.mxu3 }
 0x4c8   : > { %v10713_v31 = vadd.f32 %v3855_v59, %v3733_v63  ;;  %v3715_v6 = vpop.f32.mrf.mxu1 }
 0x4c9   : > { %v3735_v15 = vadd.f32 %v3715_v6, %v10506_v21  ;;  %v10716_v2 = vpop.f32.mrf.mxu0  ;;  %v4322_v21 = vpack.c.bf16 %v10635_v18, %v10574_v48  ;;  %v7280_v48 = vor.u32 %v7934_v56, %v7277_v14  ;;  %v7949_v18 = vld [vmem:[%s11827_s3 + $0x3f4] sm:$0xf0]  ;;  %v7341_v14 = vld [vmem:[%s11827_s3 + $0x3e8] sm:$0xf0] }
 0x4cb   : > { %4563 = vmatpush.bf16.msra.mxu1 %v7280_v48 }
 0x4ce   : > { %v3829_v47 = vpop.f32.mrf.mxu2 }
 0x4cf   : > { %v10720_v52 = vadd.f32 %v3829_v47, %v3734_v22  ;;  %v3857_v38 = vpop.f32.mrf.mxu3  ;;  %v7948_v47 = vld [vmem:[%s11827_s3 + $0x3f4] sm:$0xf]  ;;  %v7349_v22 = vld [vmem:[%s11827_s3 + $0x3f8] sm:$0xf0] }
 0x4d0   : > { %v10722_v3 = vadd.f32 %v3857_v38, %v3735_v15  ;;  %v3718_v10 = vpop.f32.mrf.mxu1  ;;  %v7352_v46 = vor.u32 %v7948_v47, %v7349_v22  ;;  %v7339_v15 = vld [vmem:[%s11827_s3 + $0x3e0] sm:$0xf]  ;;  %v7947_v38 = vld [vmem:[%s11827_s3 + $0x3e4] sm:$0xf0] }
 0x4d1   : > { %v3737_v63 = vadd.f32 %v3718_v10, %v10543_v19  ;;  %v10727_v62 = vpop.f32.mrf.mxu0  ;;  %v7347_v19 = vld [vmem:[%s11827_s3 + $0x3f0] sm:$0xf]  ;;  %v7946_v10 = vld [vmem:[%s11827_s3 + $0x3e4] sm:$0xf] }
 0x4d2   : > { %v7348_v5 = vor.u32 %v7949_v18, %v7347_v19  ;;  %4703 = vmatpush.bf16.msrb.mxu3 %v7352_v46  ;;  %v7331_v19 = vld [vmem:[%s11827_s3 + $0x3d0] sm:$0xf]  ;;  %v7344_v48 = vor.u32 %v7946_v10, %v7341_v14  ;;  %v7944_v18 = vld [vmem:[%s11827_s3 + $0x3d4] sm:$0xf]  ;;  %v10794_v10 = vld [vmem:[#allocation4 + $0x40] sm:$0xff] }
 0x4d3   : > { %7214 = vmatmul.msk.bf16.gmra.mxu1 %vm2293_vm1, %v9630_v39  ;;  %7258 = vmatmul.msk.bf16.gmra.mxu2 %vm2293_vm1, %v4322_v21  ;;  %v3736_v39 = vadd.f32 %v10017_v55, %v10541_v27  ;;  %v7942_v14 = vld [vmem:[%s11827_s3 + $0x3c4] sm:$0xf] }
 0x4d4   : > { %7262 = vmatmul.msk.bf16.gmra.mxu3 %vm2293_vm1, %v4322_v21  ;;  %7500 = vmatmul.msk.bf16.gmra.mxu0 %vm2293_vm1, %v10724_v42 }
 0x4d5   : > { %4675 = vmatpush.bf16.msrb.mxu2 %v7348_v5 }
 0x4d6   : > { %v3832_v45 = vpop.f32.mrf.mxu2  ;;  %4704 = vmatpush.bf16.msrb.mxu3 %v7344_v48  ;;  %v7397_v48 = vld [vmem:[%s11827_s3 + $0x438] sm:$0xf0] }
 0x4d7   : > { %v10757_v59 = vadd.f32 %v3832_v45, %v3736_v39  ;;  %v3860_v6 = vpop.f32.mrf.mxu3  ;;  %v7945_v39 = vld [vmem:[%s11827_s3 + $0x3d4] sm:$0xf0]  ;;  %v3738_v45 = vadd.f32 %v10044_v41, %v10572_v50  ;;  %v4323_v41 = vpack.c.bf16 %v10685_v54, %v10626_v17  ;;  %v7323_v50 = vld [vmem:[%s11827_s3 + $0x3c0] sm:$0xf]  ;;  %v7325_v17 = vld [vmem:[%s11827_s3 + $0x3c8] sm:$0xf0] }
 0x4d8   : > { %v10759_v55 = vadd.f32 %v3860_v6, %v3737_v63  ;;  %v3720_v27 = vpop.f32.mrf.mxu1  ;;  %v7340_v63 = vor.u32 %v7947_v38, %v7339_v15  ;;  %v7332_v47 = vor.u32 %v7945_v39, %v7331_v19  ;;  %v7328_v54 = vor.u32 %v7942_v14, %v7325_v17  ;;  %v7956_v39 = vld [vmem:[%s11827_s3 + $0x434] sm:$0xf] }
 0x4d9   : > { %v3739_v21 = vadd.f32 %v3720_v27, %v10576_v8  ;;  %v4554_v56 = vpop.f32.mrf.mxu0  ;;  %v7333_v8 = vld [vmem:[%s11827_s3 + $0x3d8] sm:$0xf0]  ;;  %v10790_v27 = vld [vmem:[#allocation4 + $0x50] sm:$0xff] }
 0x4da   : > { %4676 = vmatpush.bf16.msrb.mxu2 %v7340_v63  ;;  %v7336_v22 = vor.u32 %v7944_v18, %v7333_v8  ;;  %v11876_v18 = vld [vmem:[#allocation6_spill] sm:$0xff] }
 0x4db   : > { %v3740_v8 = vadd.f32 %v11876_v18, %v10615_v37 }
 0x4dc   : > { %4705 = vmatpush.bf16.msrb.mxu3 %v7336_v22 }
 0x4de   : > { %v3834_v5 = vpop.f32.mrf.mxu2  ;;  %4677 = vmatpush.bf16.msrb.mxu2 %v7332_v47 }
 0x4df   : > { %v10788_v46 = vadd.f32 %v3834_v5, %v3738_v45  ;;  %v3862_v6 = vpop.f32.mrf.mxu3 }
 0x4e0   : > { %v10792_v15 = vadd.f32 %v3862_v6, %v3739_v21  ;;  %v3723_v38 = vpop.f32.mrf.mxu1  ;;  %v7943_v21 = vld [vmem:[%s11827_s3 + $0x3c4] sm:$0xf0]  ;;  %4706 = vmatpush.bf16.msrb.mxu3 %v7328_v54 }
 0x4e1   : > { %v3741_v56 = vadd.f32 %v3723_v38, %v10617_v53  ;;  %v10797_v63 = vpop.f32.mrf.mxu0  ;;  %v10812_v53 = vpack.c.bf16 %v10790_v27, %v10794_v10  ;;  %v7324_v19 = vor.u32 %v7943_v21, %v7323_v50  ;;  %v3742_v50 = vadd.f32 %v10095_v24, %v10624_v29  ;;  %v7954_v29 = vld [vmem:[%s11827_s3 + $0x424] sm:$0xf] }
 0x4e3   : > { %7215 = vmatmul.msk.bf16.gmra.mxu1 %vm2293_vm1, %v10073_v9  ;;  %7259 = vmatmul.msk.bf16.gmra.mxu2 %vm2293_vm1, %v4323_v41  ;;  %v7400_v9 = vor.u32 %v7956_v39, %v7397_v48  ;;  %v10851_v48 = vld [vmem:[#allocation4 + $0x60] sm:$0xff] }
 0x4e4   : > { %7263 = vmatmul.msk.bf16.gmra.mxu3 %vm2293_vm1, %v4323_v41  ;;  %7593 = vmatmul.msk.bf16.vlgmr.msra.gmra.mxu0 %vm2293_vm1, %v10812_v53 }
 0x4e5   : > { %4678 = vmatpush.bf16.msrb.mxu2 %v7324_v19  ;;  %4845 = vmatpush.bf16.msrb.mxu1 %v7400_v9  ;;  %v10842_v19 = vld [vmem:[#allocation4 + $0x70] sm:$0xff] }
 0x4e6   : > { %v3837_v47 = vpop.f32.mrf.mxu2  ;;  %v10855_v24 = vpack.c.bf16 %v10842_v19, %v10851_v48 }
 0x4e7   : > { %v10831_v22 = vadd.f32 %v3837_v47, %v3740_v8  ;;  %v3865_v45 = vpop.f32.mrf.mxu3  ;;  %v8005_v8 = vld [vmem:[%s11827_s3 + $0x5b4] sm:$0xf0] }
 0x4e8   : > { %v10833_v5 = vadd.f32 %v3865_v45, %v3741_v56  ;;  %v3725_v6 = vpop.f32.mrf.mxu1 }
 0x4e9   : > { %v3743_v38 = vadd.f32 %v3725_v6, %v10628_v12  ;;  %v10836_v41 = vpop.f32.mrf.mxu0  ;;  %v4324_v12 = vpack.c.bf16 %v10679_v25, %v10679_v25  ;;  %v3744_v25 = vadd.f32 %v10103_v33, %v10661_v44  ;;  %v7675_v44 = vld [vmem:[%s11827_s3 + $0x5a0] sm:$0xf] }
 0x4ee   : > { %v3839_v21 = vpop.f32.mrf.mxu2 }
 0x4ef   : > { %v10840_v37 = vadd.f32 %v3839_v21, %v3742_v50  ;;  %v3867_v14 = vpop.f32.mrf.mxu3  ;;  %v8003_v21 = vld [vmem:[%s11827_s3 + $0x5a4] sm:$0xf0] }
 0x4f0   : > { %v10844_v17 = vadd.f32 %v3867_v14, %v3743_v38  ;;  %v3728_v54 = vpop.f32.mrf.mxu1  ;;  %v7667_v14 = vld [vmem:[%s11827_s3 + $0x590] sm:$0xf] }
 0x4f1   : > { %v3745_v56 = vadd.f32 %v3728_v54, %v10663_v51  ;;  %v10847_v39 = vpop.f32.mrf.mxu0  ;;  %v7389_v51 = vld [vmem:[%s11827_s3 + $0x428] sm:$0xf0]  ;;  %v7676_v54 = vor.u32 %v8003_v21, %v7675_v44  ;;  %v7999_v44 = vld [vmem:[%s11827_s3 + $0x584] sm:$0xf0] }
 0x4f2   : > { %v7392_v18 = vor.u32 %v7954_v29, %v7389_v51 }
 0x4f3   : > { %7216 = vmatmul.msk.bf16.gmra.mxu1 %vm2293_vm1, %v10105_v32  ;;  %7260 = vmatmul.msk.bf16.gmra.mxu2 %vm2293_vm1, %v4324_v12  ;;  %v7683_v32 = vld [vmem:[%s11827_s3 + $0x5b0] sm:$0xf] }
 0x4f4   : > { %7264 = vmatmul.msk.bf16.gmra.mxu3 %vm2293_vm1, %v4324_v12  ;;  %7594 = vmatmul.msk.bf16.gmra.mxu0 %vm2293_vm1, %v10855_v24  ;;  %v7684_v47 = vor.u32 %v8005_v8, %v7683_v32  ;;  %v4599_v8 = vld [vmem:[#allocation4 + $0x30] sm:$0xff] }
 0x4f5   : > { %4846 = vmatpush.bf16.msrb.mxu1 %v7392_v18  ;;  %v10897_v18 = vld [vmem:[#allocation4 + $0x90] sm:$0xff] }
 0x4f6   : > { %v3842_v9 = vpop.f32.mrf.mxu2  ;;  %5670 = vmatpush.bf16.msrb.mxu0 %v7684_v47 }
 0x4f7   : > { %v10877_v45 = vadd.f32 %v3842_v9, %v3744_v25  ;;  %v3870_v6 = vpop.f32.mrf.mxu3  ;;  %v10895_v25 = vld [vmem:[#allocation4 + $0x80] sm:$0xff] }
 0x4f8   : > { %v10879_v38 = vadd.f32 %v3870_v6, %v3745_v56  ;;  %v3730_v50 = vpop.f32.mrf.mxu1  ;;  %v8001_v56 = vld [vmem:[%s11827_s3 + $0x594] sm:$0xf0]  ;;  %v4606_v6 = vpack.c.bf16 %v10794_v10, %v4599_v8  ;;  %v10911_v21 = vpack.c.bf16 %v10897_v18, %v10895_v25  ;;  %v7381_v10 = vld [vmem:[%s11827_s3 + $0x418] sm:$0xf0] }
 0x4f9   : > { %v10881_v33 = vpop.f32.mrf.mxu0  ;;  %v7668_v12 = vor.u32 %v8001_v56, %v7667_v14  ;;  %v7659_v50 = vld [vmem:[%s11827_s3 + $0x580] sm:$0xf] }
 0x4fa   : > { %5671 = vmatpush.bf16.msrb.mxu0 %v7676_v54  ;;  %v7660_v14 = vor.u32 %v7999_v44, %v7659_v50  ;;  %v4016_v54 = vadd.f32 %v10171_v11, %v10711_v0  ;;  %v4018_v50 = vadd.f32 %v10207_v28, %v10720_v52  ;;  %v5316_v44 = vld [vmem:[#allocation4 + $0xa0] sm:$0xff]  ;;  %v7373_v52 = vld [vmem:[%s11827_s3 + $0x408] sm:$0xf0] }
 0x4fb   : > { %v7950_v28 = vld [vmem:[%s11827_s3 + $0x404] sm:$0xf] }
 0x4fe   : > { %v3844_v29 = vpop.f32.mrf.mxu2  ;;  %5672 = vmatpush.bf16.msrb.mxu0 %v7668_v12 }
 0x4ff   : > { %v3872_v51 = vpop.f32.mrf.mxu3 }
 0x500   : > { %v3997_v32 = vpop.f32.mrf.mxu1 }
 0x501   : > { %v4017_v9 = vadd.f32 %v3997_v32, %v10713_v31  ;;  %v10900_v47 = vpop.f32.mrf.mxu0  ;;  %v7952_v31 = vld [vmem:[%s11827_s3 + $0x414] sm:$0xf] }
 0x502   : > { %11877 = vst [vmem:[#allocation6_spill] sm:$0xff] %v10900_v47  ;;  %5673 = vmatpush.bf16.msrb.mxu0 %v7660_v14 }
 0x503   : > { %7309 = vmatmul.msk.bf16.vlgmr.msra.gmra.mxu1 %vm2293_vm1, %v9730_v30  ;;  %7353 = vmatmul.msk.bf16.vlgmr.msrb.gmra.mxu2 %vm2293_vm1, %v4606_v6  ;;  %v7384_v30 = vor.u32 %v7952_v31, %v7381_v10  ;;  %v10940_v10 = vpack.c.bf16 %v5316_v44, %v5316_v44  ;;  %v7435_v44 = vld [vmem:[%s11827_s3 + $0x460] sm:$0xf] }
 0x504   : > { %7357 = vmatmul.msk.bf16.vlgmr.msrb.gmra.mxu3 %vm2293_vm1, %v4606_v6  ;;  %7595 = vmatmul.msk.bf16.gmra.mxu0 %vm2293_vm1, %v10911_v21 }
 0x505   : > { %4847 = vmatpush.bf16.msrb.mxu1 %v7384_v30  ;;  %v7445_v30 = vld [vmem:[%s11827_s3 + $0x478] sm:$0xf0] }
 0x506   : > { %v4111_v56 = vpop.f32.mrf.mxu2 }
 0x507   : > { %v10927_v12 = vadd.f32 %v4111_v56, %v4016_v54  ;;  %v4139_v29 = vpop.f32.mrf.mxu3 }
 0x508   : > { %v10929_v51 = vadd.f32 %v4139_v29, %v4017_v9  ;;  %v3999_v32 = vpop.f32.mrf.mxu1 }
 0x509   : > { %v4019_v8 = vadd.f32 %v3999_v32, %v10722_v3  ;;  %v10932_v6 = vpop.f32.mrf.mxu0  ;;  %v4607_v3 = vpack.c.bf16 %v10851_v48, %v10790_v27  ;;  %v7376_v27 = vor.u32 %v7950_v28, %v7373_v52  ;;  %v7965_v48 = vld [vmem:[%s11827_s3 + $0x474] sm:$0xf0]  ;;  %v7437_v52 = vld [vmem:[%s11827_s3 + $0x468] sm:$0xf0] }
 0x50b   : > { %4848 = vmatpush.bf16.msrb.mxu1 %v7376_v27 }
 0x50e   : > { %v4113_v47 = vpop.f32.mrf.mxu2 }
 0x50f   : > { %v10936_v11 = vadd.f32 %v4113_v47, %v4018_v50  ;;  %v4141_v0 = vpop.f32.mrf.mxu3  ;;  %v7964_v47 = vld [vmem:[%s11827_s3 + $0x474] sm:$0xf] }
 0x510   : > { %v10938_v14 = vadd.f32 %v4141_v0, %v4019_v8  ;;  %v4002_v31 = vpop.f32.mrf.mxu1  ;;  %v7448_v32 = vor.u32 %v7964_v47, %v7445_v30  ;;  %v7963_v0 = vld [vmem:[%s11827_s3 + $0x464] sm:$0xf0] }
 0x511   : > { %v4021_v9 = vadd.f32 %v4002_v31, %v10759_v55  ;;  %v10943_v54 = vpop.f32.mrf.mxu0  ;;  %v7443_v55 = vld [vmem:[%s11827_s3 + $0x470] sm:$0xf]  ;;  %v7962_v31 = vld [vmem:[%s11827_s3 + $0x464] sm:$0xf] }
 0x512   : > { %v7444_v29 = vor.u32 %v7965_v48, %v7443_v55  ;;  %4987 = vmatpush.bf16.msra.mxu3 %v7448_v32  ;;  %v7427_v55 = vld [vmem:[%s11827_s3 + $0x450] sm:$0xf]  ;;  %v7440_v27 = vor.u32 %v7962_v31, %v7437_v52  ;;  %v7960_v48 = vld [vmem:[%s11827_s3 + $0x454] sm:$0xf]  ;;  %v11010_v31 = vld [vmem:[#allocation4 + $0x42] sm:$0xff] }
 0x513   : > { %7310 = vmatmul.msk.bf16.gmra.mxu1 %vm2293_vm1, %v9800_v40  ;;  %7354 = vmatmul.msk.bf16.gmra.mxu2 %vm2293_vm1, %v4607_v3  ;;  %v4020_v40 = vadd.f32 %v10215_v35, %v10757_v59  ;;  %v7958_v52 = vld [vmem:[%s11827_s3 + $0x444] sm:$0xf] }
 0x514   : > { %7358 = vmatmul.msk.bf16.gmra.mxu3 %vm2293_vm1, %v4607_v3  ;;  %7596 = vmatmul.msk.bf16.gmra.mxu0 %vm2293_vm1, %v10940_v10 }
 0x515   : > { %4959 = vmatpush.bf16.msra.mxu2 %v7444_v29 }
 0x516   : > { %v4116_v56 = vpop.f32.mrf.mxu2  ;;  %4988 = vmatpush.bf16.msra.mxu3 %v7440_v27  ;;  %v7493_v27 = vld [vmem:[%s11827_s3 + $0x4b8] sm:$0xf0] }
 0x517   : > { %v10973_v8 = vadd.f32 %v4116_v56, %v4020_v40  ;;  %v4144_v50 = vpop.f32.mrf.mxu3  ;;  %v7961_v40 = vld [vmem:[%s11827_s3 + $0x454] sm:$0xf0]  ;;  %v4022_v56 = vadd.f32 %v10242_v13, %v10788_v46  ;;  %v4608_v13 = vpack.c.bf16 %v10895_v25, %v10842_v19  ;;  %v7419_v46 = vld [vmem:[%s11827_s3 + $0x440] sm:$0xf]  ;;  %v7421_v19 = vld [vmem:[%s11827_s3 + $0x448] sm:$0xf0] }
 0x518   : > { %v10975_v35 = vadd.f32 %v4144_v50, %v4021_v9  ;;  %v4004_v59 = vpop.f32.mrf.mxu1  ;;  %v7436_v9 = vor.u32 %v7963_v0, %v7435_v44  ;;  %v7428_v47 = vor.u32 %v7961_v40, %v7427_v55  ;;  %v7424_v25 = vor.u32 %v7958_v52, %v7421_v19  ;;  %v7972_v40 = vld [vmem:[%s11827_s3 + $0x4b4] sm:$0xf] }
 0x519   : > { %v4023_v3 = vadd.f32 %v4004_v59, %v10792_v15  ;;  %v4839_v28 = vpop.f32.mrf.mxu0  ;;  %v7429_v15 = vld [vmem:[%s11827_s3 + $0x458] sm:$0xf0]  ;;  %v11006_v59 = vld [vmem:[#allocation4 + $0x52] sm:$0xff] }
 0x51a   : > { %4960 = vmatpush.bf16.msra.mxu2 %v7436_v9  ;;  %v7432_v30 = vor.u32 %v7960_v48, %v7429_v15  ;;  %v4024_v48 = vadd.f32 %v10259_v57, %v10831_v22  ;;  %v11060_v52 = vld [vmem:[#allocation4 + $0x72] sm:$0xff] }
 0x51c   : > { %4989 = vmatpush.bf16.msra.mxu3 %v7432_v30 }
 0x51e   : > { %v4118_v29 = vpop.f32.mrf.mxu2  ;;  %4961 = vmatpush.bf16.msra.mxu2 %v7428_v47 }
 0x51f   : > { %v11004_v32 = vadd.f32 %v4118_v29, %v4022_v56  ;;  %v4146_v50 = vpop.f32.mrf.mxu3 }
 0x520   : > { %v11008_v44 = vadd.f32 %v4146_v50, %v4023_v3  ;;  %v4007_v0 = vpop.f32.mrf.mxu1  ;;  %v7959_v3 = vld [vmem:[%s11827_s3 + $0x444] sm:$0xf0]  ;;  %4990 = vmatpush.bf16.msra.mxu3 %v7424_v25 }
 0x521   : > { %v4025_v28 = vadd.f32 %v4007_v0, %v10833_v5  ;;  %v11013_v9 = vpop.f32.mrf.mxu0  ;;  %v11028_v5 = vpack.c.bf16 %v11006_v59, %v11010_v31  ;;  %v7420_v55 = vor.u32 %v7959_v3, %v7419_v46  ;;  %v4609_v3 = vpack.c.bf16 %v10897_v18, %v10897_v18  ;;  %v11067_v25 = vld [vmem:[#allocation4 + $0x62] sm:$0xff] }
 0x522   : > { %v4028_v18 = vadd.f32 %v10298_v7, %v10877_v45  ;;  %v7771_v45 = vld [vmem:[%s11827_s3 + $0x620] sm:$0xf] }
 0x523   : > { %7311 = vmatmul.msk.bf16.gmra.mxu1 %vm2293_vm1, %v10270_v61  ;;  %7355 = vmatmul.msk.bf16.gmra.mxu2 %vm2293_vm1, %v4608_v13  ;;  %v7496_v61 = vor.u32 %v7972_v40, %v7493_v27  ;;  %v8021_v27 = vld [vmem:[%s11827_s3 + $0x634] sm:$0xf0] }
 0x524   : > { %7359 = vmatmul.msk.bf16.gmra.mxu3 %vm2293_vm1, %v4608_v13  ;;  %7689 = vmatmul.msk.bf16.vlgmr.msrb.gmra.mxu0 %vm2293_vm1, %v11028_v5  ;;  %v4026_v13 = vadd.f32 %v10290_v1, %v10840_v37  ;;  %v11071_v1 = vpack.c.bf16 %v11060_v52, %v11067_v25  ;;  %v7970_v37 = vld [vmem:[%s11827_s3 + $0x4a4] sm:$0xf] }
 0x525   : > { %4962 = vmatpush.bf16.msra.mxu2 %v7420_v55  ;;  %5129 = vmatpush.bf16.msra.mxu1 %v7496_v61 }
 0x526   : > { %v4121_v15 = vpop.f32.mrf.mxu2 }
 0x527   : > { %v11047_v47 = vadd.f32 %v4121_v15, %v4024_v48  ;;  %v4149_v30 = vpop.f32.mrf.mxu3 }
 0x528   : > { %v11049_v56 = vadd.f32 %v4149_v30, %v4025_v28  ;;  %v4009_v29 = vpop.f32.mrf.mxu1 }
 0x529   : > { %v4027_v50 = vadd.f32 %v4009_v29, %v10844_v17  ;;  %v11052_v0 = vpop.f32.mrf.mxu0 }
 0x52e   : > { %v4123_v46 = vpop.f32.mrf.mxu2 }
 0x52f   : > { %v11056_v57 = vadd.f32 %v4123_v46, %v4026_v13  ;;  %v4151_v22 = vpop.f32.mrf.mxu3  ;;  %v8019_v13 = vld [vmem:[%s11827_s3 + $0x624] sm:$0xf0]  ;;  %v7763_v46 = vld [vmem:[%s11827_s3 + $0x610] sm:$0xf] }
 0x530   : > { %v11062_v55 = vadd.f32 %v4151_v22, %v4027_v50  ;;  %v4012_v28 = vpop.f32.mrf.mxu1  ;;  %v7772_v22 = vor.u32 %v8019_v13, %v7771_v45 }
 0x531   : > { %v4029_v19 = vadd.f32 %v4012_v28, %v10879_v38  ;;  %v11065_v17 = vpop.f32.mrf.mxu0  ;;  %v7485_v38 = vld [vmem:[%s11827_s3 + $0x4a8] sm:$0xf0] }
 0x532   : > { %v7488_v40 = vor.u32 %v7970_v37, %v7485_v38  ;;  %v11111_v38 = vld [vmem:[#allocation4 + $0x82] sm:$0xff] }
 0x533   : > { %7312 = vmatmul.msk.bf16.gmra.mxu1 %vm2293_vm1, %v10300_v16  ;;  %7356 = vmatmul.msk.bf16.gmra.mxu2 %vm2293_vm1, %v4609_v3  ;;  %v7779_v16 = vld [vmem:[%s11827_s3 + $0x630] sm:$0xf] }
 0x534   : > { %7360 = vmatmul.msk.bf16.gmra.mxu3 %vm2293_vm1, %v4609_v3  ;;  %7690 = vmatmul.msk.bf16.gmra.mxu0 %vm2293_vm1, %v11071_v1  ;;  %v7780_v61 = vor.u32 %v8021_v27, %v7779_v16  ;;  %v8017_v3 = vld [vmem:[%s11827_s3 + $0x614] sm:$0xf0] }
 0x535   : > { %5130 = vmatpush.bf16.msra.mxu1 %v7488_v40  ;;  %v7764_v28 = vor.u32 %v8017_v3, %v7763_v46  ;;  %v4883_v16 = vld [vmem:[#allocation4 + $0x32] sm:$0xff]  ;;  %v4300_v46 = vadd.f32 %v10368_v36, %v10927_v12 }
 0x536   : > { %v4126_v48 = vpop.f32.mrf.mxu2  ;;  %5954 = vmatpush.bf16.msra.mxu0 %v7780_v61  ;;  %v4890_v61 = vpack.c.bf16 %v11010_v31, %v4883_v16  ;;  %v7477_v31 = vld [vmem:[%s11827_s3 + $0x498] sm:$0xf0] }
 0x537   : > { %v11093_v15 = vadd.f32 %v4126_v48, %v4028_v18  ;;  %v4154_v30 = vpop.f32.mrf.mxu3  ;;  %v11113_v18 = vld [vmem:[#allocation4 + $0x92] sm:$0xff] }
 0x538   : > { %v11095_v29 = vadd.f32 %v4154_v30, %v4029_v19  ;;  %v4014_v50 = vpop.f32.mrf.mxu1  ;;  %v7755_v30 = vld [vmem:[%s11827_s3 + $0x600] sm:$0xf]  ;;  %v11127_v45 = vpack.c.bf16 %v11113_v18, %v11111_v38 }
 0x539   : > { %v11097_v7 = vpop.f32.mrf.mxu0  ;;  %v8015_v50 = vld [vmem:[%s11827_s3 + $0x604] sm:$0xf0] }
 0x53a   : > { %5955 = vmatpush.bf16.msra.mxu0 %v7772_v22  ;;  %v7756_v13 = vor.u32 %v8015_v50, %v7755_v30  ;;  %v5600_v30 = vld [vmem:[#allocation4 + $0xa2] sm:$0xff] }
 0x53e   : > { %v4128_v19 = vpop.f32.mrf.mxu2  ;;  %5956 = vmatpush.bf16.msra.mxu0 %v7764_v28 }
 0x53f   : > { %v4156_v37 = vpop.f32.mrf.mxu3 }
 0x540   : > { %v4281_v40 = vpop.f32.mrf.mxu1 }
 0x541   : > { %v4301_v27 = vadd.f32 %v4281_v40, %v10929_v51  ;;  %v11116_v48 = vpop.f32.mrf.mxu0  ;;  %v7968_v51 = vld [vmem:[%s11827_s3 + $0x494] sm:$0xf] }
 0x542   : > { %5957 = vmatpush.bf16.msra.mxu0 %v7756_v13 }
 0x543   : > { %7405 = vmatmul.msk.bf16.vlgmr.msrb.gmra.mxu1 %vm2293_vm1, %v10381_v4  ;;  %7449 = vmatmul.msk.bf16.vlgmr.msra.gmra.mxu2 %vm2293_vm1, %v4890_v61  ;;  %v7480_v4 = vor.u32 %v7968_v51, %v7477_v31  ;;  %v11156_v31 = vpack.c.bf16 %v5600_v30, %v5600_v30 }
 0x544   : > { %7453 = vmatmul.msk.bf16.vlgmr.msra.gmra.mxu3 %vm2293_vm1, %v4890_v61  ;;  %7691 = vmatmul.msk.bf16.gmra.mxu0 %vm2293_vm1, %v11127_v45  ;;  %v4302_v61 = vadd.f32 %v10406_v43, %v10936_v11  ;;  %v7966_v43 = vld [vmem:[%s11827_s3 + $0x484] sm:$0xf]  ;;  %v7469_v11 = vld [vmem:[%s11827_s3 + $0x488] sm:$0xf0] }
 0x545   : > { %5131 = vmatpush.bf16.msra.mxu1 %v7480_v4  ;;  %v7981_v4 = vld [vmem:[%s11827_s3 + $0x4f4] sm:$0xf0] }
 0x546   : > { %v4395_v22 = vpop.f32.mrf.mxu2 }
 0x547   : > { %v11143_v3 = vadd.f32 %v4395_v22, %v4300_v46  ;;  %v4423_v28 = vpop.f32.mrf.mxu3  ;;  %v7980_v22 = vld [vmem:[%s11827_s3 + $0x4f4] sm:$0xf] }
 0x548   : > { %v11145_v19 = vadd.f32 %v4423_v28, %v4301_v27  ;;  %v4283_v37 = vpop.f32.mrf.mxu1  ;;  %v7541_v28 = vld [vmem:[%s11827_s3 + $0x4f8] sm:$0xf0] }
 0x549   : > { %v4303_v40 = vadd.f32 %v4283_v37, %v10938_v14  ;;  %v11148_v16 = vpop.f32.mrf.mxu0  ;;  %v4891_v14 = vpack.c.bf16 %v11067_v25, %v11006_v59  ;;  %v7472_v25 = vor.u32 %v7966_v43, %v7469_v11  ;;  %v7978_v43 = vld [vmem:[%s11827_s3 + $0x4e4] sm:$0xf] }
 0x54b   : > { %5132 = vmatpush.bf16.msra.mxu1 %v7472_v25  ;;  %v7977_v25 = vld [vmem:[%s11827_s3 + $0x4d4] sm:$0xf0] }
 0x54e   : > { %v4397_v50 = vpop.f32.mrf.mxu2 }
 0x54f   : > { %v11152_v36 = vadd.f32 %v4397_v50, %v4302_v61  ;;  %v4425_v12 = vpop.f32.mrf.mxu3  ;;  %v7544_v61 = vor.u32 %v7980_v22, %v7541_v28  ;;  %v7976_v22 = vld [vmem:[%s11827_s3 + $0x4d4] sm:$0xf] }
 0x550   : > { %v11154_v13 = vadd.f32 %v4425_v12, %v4303_v40  ;;  %v4286_v51 = vpop.f32.mrf.mxu1 }
 0x551   : > { %v4305_v27 = vadd.f32 %v4286_v51, %v10975_v35  ;;  %v11159_v46 = vpop.f32.mrf.mxu0  ;;  %v7539_v35 = vld [vmem:[%s11827_s3 + $0x4f0] sm:$0xf]  ;;  %5271 = vmatpush.bf16.msrb.mxu3 %v7544_v61  ;;  %v7531_v51 = vld [vmem:[%s11827_s3 + $0x4e0] sm:$0xf] }
 0x552   : > { %v7540_v40 = vor.u32 %v7981_v4, %v7539_v35 }
 0x553   : > { %7406 = vmatmul.msk.bf16.gmra.mxu1 %vm2293_vm1, %v10424_v23  ;;  %7450 = vmatmul.msk.bf16.gmra.mxu2 %vm2293_vm1, %v4891_v14  ;;  %v11878_v23 = vld [vmem:[#allocation12_spill] sm:$0xff] }
 0x554   : > { %7454 = vmatmul.msk.bf16.gmra.mxu3 %vm2293_vm1, %v4891_v14  ;;  %7692 = vmatmul.msk.bf16.gmra.mxu0 %vm2293_vm1, %v11156_v31  ;;  %v4304_v59 = vadd.f32 %v11878_v23, %v10973_v8  ;;  %v7979_v14 = vld [vmem:[%s11827_s3 + $0x4e4] sm:$0xf0]  ;;  %v7533_v23 = vld [vmem:[%s11827_s3 + $0x4e8] sm:$0xf0] }
 0x555   : > { %5243 = vmatpush.bf16.msrb.mxu2 %v7540_v40  ;;  %v7536_v4 = vor.u32 %v7978_v43, %v7533_v23  ;;  %v11879_v40 = vld [vmem:[#allocation7_spill] sm:$0xff] }
 0x556   : > { %v4400_v37 = vpop.f32.mrf.mxu2  ;;  %v4306_v61 = vadd.f32 %v11879_v40, %v11004_v32  ;;  %v11226_v23 = vld [vmem:[#allocation4 + $0x44] sm:$0xff]  ;;  %v4892_v32 = vpack.c.bf16 %v11111_v38, %v11060_v52  ;;  %v7517_v52 = vld [vmem:[%s11827_s3 + $0x4c8] sm:$0xf0]  ;;  %v11881_v38 = vld [vmem:[#allocation14_spill] sm:$0xff] }
 0x557   : > { %v11189_v30 = vadd.f32 %v4400_v37, %v4304_v59  ;;  %v4428_v50 = vpop.f32.mrf.mxu3  ;;  %v7523_v59 = vld [vmem:[%s11827_s3 + $0x4d0] sm:$0xf]  ;;  %5272 = vmatpush.bf16.msrb.mxu3 %v7536_v4  ;;  %v7974_v4 = vld [vmem:[%s11827_s3 + $0x4c4] sm:$0xf] }
 0x558   : > { %v11191_v8 = vadd.f32 %v4428_v50, %v4305_v27  ;;  %v4288_v12 = vpop.f32.mrf.mxu1  ;;  %v7532_v27 = vor.u32 %v7979_v14, %v7531_v51  ;;  %v7524_v28 = vor.u32 %v7977_v25, %v7523_v59  ;;  %v11222_v14 = vld [vmem:[#allocation4 + $0x54] sm:$0xff]  ;;  %v7515_v25 = vld [vmem:[%s11827_s3 + $0x4c0] sm:$0xf] }
 0x559   : > { %v4307_v11 = vadd.f32 %v4288_v12, %v11008_v44  ;;  %v5123_v35 = vpop.f32.mrf.mxu0  ;;  %v7525_v44 = vld [vmem:[%s11827_s3 + $0x4d8] sm:$0xf0]  ;;  %v11882_v40 = vld [vmem:[#allocation13_spill] sm:$0xff] }
 0x55a   : > { %5244 = vmatpush.bf16.msrb.mxu2 %v7532_v27  ;;  %v7528_v37 = vor.u32 %v7976_v22, %v7525_v44  ;;  %v7520_v44 = vor.u32 %v7974_v4, %v7517_v52 }
 0x55c   : > { %5273 = vmatpush.bf16.msrb.mxu3 %v7528_v37  ;;  %v7589_v37 = vld [vmem:[%s11827_s3 + $0x538] sm:$0xf0] }
 0x55e   : > { %v4402_v50 = vpop.f32.mrf.mxu2  ;;  %5245 = vmatpush.bf16.msrb.mxu2 %v7524_v28  ;;  %v7988_v28 = vld [vmem:[%s11827_s3 + $0x534] sm:$0xf] }
 0x55f   : > { %v11220_v12 = vadd.f32 %v4402_v50, %v4306_v61  ;;  %v4430_v51 = vpop.f32.mrf.mxu3  ;;  %v4308_v61 = vadd.f32 %v11882_v40, %v11047_v47  ;;  %v7592_v50 = vor.u32 %v7988_v28, %v7589_v37  ;;  %v11276_v28 = vld [vmem:[#allocation4 + $0x74] sm:$0xff] }
 0x560   : > { %v11224_v43 = vadd.f32 %v4430_v51, %v4307_v11  ;;  %v4291_v35 = vpop.f32.mrf.mxu1  ;;  %v7975_v11 = vld [vmem:[%s11827_s3 + $0x4c4] sm:$0xf0]  ;;  %5274 = vmatpush.bf16.msrb.mxu3 %v7520_v44  ;;  %v4893_v44 = vpack.c.bf16 %v11113_v18, %v11113_v18 }
 0x561   : > { %v4309_v27 = vadd.f32 %v4291_v35, %v11049_v56  ;;  %v11229_v59 = vpop.f32.mrf.mxu0  ;;  %v11244_v56 = vpack.c.bf16 %v11222_v14, %v11226_v23  ;;  %v7516_v22 = vor.u32 %v7975_v11, %v7515_v25  ;;  %5414 = vmatpush.bf16.msrb.mxu1 %v7592_v50 }
 0x562   : > { %11880 = vst [vmem:[#allocation12_spill] sm:$0xff] %v11229_v59 }
 0x563   : > { %7407 = vmatmul.msk.bf16.gmra.mxu1 %vm2293_vm1, %v11881_v38  ;;  %7451 = vmatmul.msk.bf16.gmra.mxu2 %vm2293_vm1, %v4892_v32  ;;  %v4310_v38 = vadd.f32 %v10500_v60, %v11056_v57  ;;  %v7986_v60 = vld [vmem:[%s11827_s3 + $0x524] sm:$0xf]  ;;  %v7581_v57 = vld [vmem:[%s11827_s3 + $0x528] sm:$0xf0] }
 0x564   : > { %7455 = vmatmul.msk.bf16.gmra.mxu3 %vm2293_vm1, %v4892_v32  ;;  %7785 = vmatmul.msk.bf16.vlgmr.msra.gmra.mxu0 %vm2293_vm1, %v11244_v56  ;;  %v7584_v18 = vor.u32 %v7986_v60, %v7581_v57 }
 0x565   : > { %5246 = vmatpush.bf16.msrb.mxu2 %v7516_v22 }
 0x566   : > { %v4405_v51 = vpop.f32.mrf.mxu2  ;;  %5415 = vmatpush.bf16.msrb.mxu1 %v7584_v18 }
 0x567   : > { %v11263_v35 = vadd.f32 %v4405_v51, %v4308_v61  ;;  %v4433_v32 = vpop.f32.mrf.mxu3  ;;  %v5880_v61 = vld [vmem:[#allocation4 + $0x64] sm:$0xff] }
 0x568   : > { %v11265_v25 = vadd.f32 %v4433_v32, %v4309_v27  ;;  %v4293_v11 = vpop.f32.mrf.mxu1  ;;  %v11284_v50 = vpack.c.bf16 %v11276_v28, %v5880_v61 }
 0x569   : > { %v4311_v4 = vadd.f32 %v4293_v11, %v11062_v55  ;;  %v11268_v52 = vpop.f32.mrf.mxu0 }
 0x56a   : > { %11883 = vst [vmem:[#allocation7_spill] sm:$0xff] %v11268_v52  ;;  %v5167_v52 = vld [vmem:[#allocation4 + $0x34] sm:$0xff] }
 0x56b   : > { %v5174_v60 = vpack.c.bf16 %v11226_v23, %v5167_v52  ;;  %v7573_v23 = vld [vmem:[%s11827_s3 + $0x518] sm:$0xf0]  ;;  %v4584_v52 = vadd.f32 %v10581_v26, %v11143_v3 }
 0x56e   : > { %v4407_v59 = vpop.f32.mrf.mxu2 }
 0x56f   : > { %v11272_v47 = vadd.f32 %v4407_v59, %v4310_v38  ;;  %v4435_v22 = vpop.f32.mrf.mxu3 }
 0x570   : > { %v11278_v37 = vadd.f32 %v4435_v22, %v4311_v4  ;;  %v4296_v27 = vpop.f32.mrf.mxu1 }
 0x571   : > { %v4313_v40 = vadd.f32 %v4296_v27, %v11095_v29  ;;  %v11281_v55 = vpop.f32.mrf.mxu0  ;;  %v4312_v29 = vadd.f32 %v10511_v49, %v11093_v15  ;;  %v11308_v27 = vld [vmem:[#allocation4 + $0x94] sm:$0xff] }
 0x572   : > { %11884 = vst [vmem:[#allocation14_spill] sm:$0xff] %v11281_v55 }
 0x573   : > { %7408 = vmatmul.msk.bf16.gmra.mxu1 %vm2293_vm1, %v10508_v58  ;;  %7452 = vmatmul.msk.bf16.gmra.mxu2 %vm2293_vm1, %v4893_v44 }
 0x574   : > { %7456 = vmatmul.msk.bf16.gmra.mxu3 %vm2293_vm1, %v4893_v44  ;;  %7786 = vmatmul.msk.bf16.gmra.mxu0 %vm2293_vm1, %v11284_v50  ;;  %v11306_v44 = vld [vmem:[#allocation4 + $0x84] sm:$0xff] }
 0x576   : > { %v4410_v58 = vpop.f32.mrf.mxu2 }
 0x577   : > { %v11300_v59 = vadd.f32 %v4410_v58, %v4312_v29  ;;  %v4438_v51 = vpop.f32.mrf.mxu3 }
 0x578   : > { %v11302_v32 = vadd.f32 %v4438_v51, %v4313_v40  ;;  %v4298_v11 = vpop.f32.mrf.mxu1  ;;  %v11316_v40 = vpack.c.bf16 %v11308_v27, %v11306_v44 }
 0x579   : > { %v11304_v4 = vpop.f32.mrf.mxu0 }
 0x57e   : > { %v4412_v38 = vpop.f32.mrf.mxu2 }
 0x57f   : > { %v4440_v22 = vpop.f32.mrf.mxu3  ;;  %v4586_v38 = vadd.f32 %v10620_v20, %v11152_v36  ;;  %v7982_v20 = vld [vmem:[%s11827_s3 + $0x504] sm:$0xf]  ;;  %v7565_v36 = vld [vmem:[%s11827_s3 + $0x508] sm:$0xf0] }
 0x580   : > { %v4565_v55 = vpop.f32.mrf.mxu1 }
 0x581   : > { %v4585_v49 = vadd.f32 %v4565_v55, %v11145_v19  ;;  %v11311_v15 = vpop.f32.mrf.mxu0  ;;  %v7984_v19 = vld [vmem:[%s11827_s3 + $0x514] sm:$0xf] }
 0x582   : > { %v7576_v55 = vor.u32 %v7984_v19, %v7573_v23 }
 0x583   : > { %7501 = vmatmul.msk.bf16.vlgmr.msra.gmra.mxu1 %vm2293_vm1, %v10596_v34  ;;  %7545 = vmatmul.msk.bf16.vlgmr.msrb.gmra.mxu2 %vm2293_vm1, %v5174_v60 }
 0x584   : > { %7549 = vmatmul.msk.bf16.vlgmr.msrb.gmra.mxu3 %vm2293_vm1, %v5174_v60  ;;  %7787 = vmatmul.msk.bf16.gmra.mxu0 %vm2293_vm1, %v11316_v40 }
 0x585   : > { %5416 = vmatpush.bf16.msrb.mxu1 %v7576_v55  ;;  %v11886_v55 = vld [vmem:[#allocation11_spill] sm:$0xff] }
 0x586   : > { %v4680_v34 = vpop.f32.mrf.mxu2 }
 0x587   : > { %v11332_v57 = vadd.f32 %v4680_v34, %v4584_v52  ;;  %v4708_v29 = vpop.f32.mrf.mxu3  ;;  %v7997_v34 = vld [vmem:[%s11827_s3 + $0x574] sm:$0xf0] }
 0x588   : > { %v11334_v18 = vadd.f32 %v4708_v29, %v4585_v49  ;;  %v4567_v58 = vpop.f32.mrf.mxu1  ;;  %v5175_v49 = vpack.c.bf16 %v5880_v61, %v11222_v14  ;;  %v7568_v61 = vor.u32 %v7982_v20, %v7565_v36  ;;  %v7996_v29 = vld [vmem:[%s11827_s3 + $0x574] sm:$0xf]  ;;  %v7995_v20 = vld [vmem:[%s11827_s3 + $0x564] sm:$0xf0]  ;;  %v7994_v36 = vld [vmem:[%s11827_s3 + $0x564] sm:$0xf] }
 0x589   : > { %v4587_v51 = vadd.f32 %v4567_v58, %v11154_v13  ;;  %v11337_v11 = vpop.f32.mrf.mxu0  ;;  %v7635_v13 = vld [vmem:[%s11827_s3 + $0x570] sm:$0xf]  ;;  %v7637_v58 = vld [vmem:[%s11827_s3 + $0x578] sm:$0xf0] }
 0x58a   : > { %5417 = vmatpush.bf16.msrb.mxu1 %v7568_v61  ;;  %v7619_v61 = vld [vmem:[%s11827_s3 + $0x550] sm:$0xf] }
 0x58e   : > { %v4682_v22 = vpop.f32.mrf.mxu2 }
 0x58f   : > { %v11341_v60 = vadd.f32 %v4682_v22, %v4586_v38  ;;  %v4710_v26 = vpop.f32.mrf.mxu3  ;;  %v7636_v38 = vor.u32 %v7997_v34, %v7635_v13  ;;  %v7640_v22 = vor.u32 %v7996_v29, %v7637_v58  ;;  %v7993_v34 = vld [vmem:[%s11827_s3 + $0x554] sm:$0xf0]  ;;  %v7992_v58 = vld [vmem:[%s11827_s3 + $0x554] sm:$0xf] }
 0x590   : > { %v11343_v3 = vadd.f32 %v4710_v26, %v4587_v51  ;;  %v4570_v19 = vpop.f32.mrf.mxu1 }
 0x591   : > { %v4589_v23 = vadd.f32 %v4570_v19, %v11191_v8  ;;  %v11346_v52 = vpop.f32.mrf.mxu0  ;;  %v11887_v8 = vld [vmem:[#allocation5_spill] sm:$0xff]  ;;  %5528 = vmatpush.bf16.msra.mxu2 %v7636_v38  ;;  %5556 = vmatpush.bf16.msra.mxu3 %v7640_v22 }
 0x592   : > { %11885 = vst [vmem:[#allocation13_spill] sm:$0xff] %v11346_v52  ;;  %v4588_v14 = vadd.f32 %v11887_v8, %v11189_v30  ;;  %v11888_v22 = vld [vmem:[#allocation9_spill] sm:$0xff] }
 0x593   : > { %7502 = vmatmul.msk.bf16.gmra.mxu1 %vm2293_vm1, %v11886_v55  ;;  %7546 = vmatmul.msk.bf16.gmra.mxu2 %vm2293_vm1, %v5175_v49  ;;  %v7627_v55 = vld [vmem:[%s11827_s3 + $0x560] sm:$0xf] }
 0x594   : > { %7550 = vmatmul.msk.bf16.gmra.mxu3 %vm2293_vm1, %v5175_v49 }
 0x596   : > { %v4685_v51 = vpop.f32.mrf.mxu2 }
 0x597   : > { %v11373_v26 = vadd.f32 %v4685_v51, %v4588_v14  ;;  %v4713_v19 = vpop.f32.mrf.mxu3  ;;  %v7629_v14 = vld [vmem:[%s11827_s3 + $0x568] sm:$0xf0]  ;;  %v7620_v51 = vor.u32 %v7993_v34, %v7619_v61  ;;  %v7991_v61 = vld [vmem:[%s11827_s3 + $0x544] sm:$0xf0] }
 0x598   : > { %v11375_v30 = vadd.f32 %v4713_v19, %v4589_v23  ;;  %v4572_v49 = vpop.f32.mrf.mxu1  ;;  %v7628_v23 = vor.u32 %v7995_v20, %v7627_v55  ;;  %v7632_v29 = vor.u32 %v7994_v36, %v7629_v14  ;;  %v4590_v19 = vadd.f32 %v11888_v22, %v11220_v12  ;;  %v7611_v12 = vld [vmem:[%s11827_s3 + $0x540] sm:$0xf] }
 0x599   : > { %v4591_v13 = vadd.f32 %v4572_v49, %v11224_v43  ;;  %v5408_v8 = vpop.f32.mrf.mxu0  ;;  %v7621_v43 = vld [vmem:[%s11827_s3 + $0x558] sm:$0xf0]  ;;  %v7612_v34 = vor.u32 %v7991_v61, %v7611_v12  ;;  %v4594_v61 = vadd.f32 %v10716_v2, %v11272_v47  ;;  %v8002_v2 = vld [vmem:[%s11827_s3 + $0x5a4] sm:$0xf]  ;;  %v7677_v47 = vld [vmem:[%s11827_s3 + $0x5a8] sm:$0xf0] }
 0x59a   : > { %5529 = vmatpush.bf16.msra.mxu2 %v7628_v23  ;;  %5557 = vmatpush.bf16.msra.mxu3 %v7632_v29  ;;  %v7624_v38 = vor.u32 %v7992_v58, %v7621_v43  ;;  %v5176_v23 = vpack.c.bf16 %v11306_v44, %v11276_v28  ;;  %v11889_v29 = vld [vmem:[#allocation10_spill] sm:$0xff]  ;;  %v8004_v44 = vld [vmem:[%s11827_s3 + $0x5b4] sm:$0xf]  ;;  %v11890_v43 = vld [vmem:[#allocation8_spill] sm:$0xff] }
 0x59b   : > { %v7685_v58 = vld [vmem:[%s11827_s3 + $0x5b8] sm:$0xf0] }
 0x59e   : > { %v4687_v49 = vpop.f32.mrf.mxu2  ;;  %5530 = vmatpush.bf16.msra.mxu2 %v7620_v51  ;;  %5558 = vmatpush.bf16.msra.mxu3 %v7624_v38  ;;  %v4592_v51 = vadd.f32 %v11890_v43, %v11263_v35  ;;  %v7688_v38 = vor.u32 %v8004_v44, %v7685_v58 }
 0x59f   : > { %v11404_v55 = vadd.f32 %v4687_v49, %v4590_v19  ;;  %v4715_v20 = vpop.f32.mrf.mxu3 }
 0x5a0   : > { %v11406_v36 = vadd.f32 %v4715_v20, %v4591_v13  ;;  %v4575_v8 = vpop.f32.mrf.mxu1  ;;  %v7990_v13 = vld [vmem:[%s11827_s3 + $0x544] sm:$0xf]  ;;  %5698 = vmatpush.bf16.msra.mxu1 %v7688_v38 }
 0x5a1   : > { %v4593_v14 = vadd.f32 %v4575_v8, %v11265_v25  ;;  %v11409_v52 = vpop.f32.mrf.mxu0  ;;  %v7613_v25 = vld [vmem:[%s11827_s3 + $0x548] sm:$0xf0] }
 0x5a2   : > { %v7616_v28 = vor.u32 %v7990_v13, %v7613_v25  ;;  %5531 = vmatpush.bf16.msra.mxu2 %v7612_v34  ;;  %v5177_v25 = vpack.c.bf16 %v11308_v27, %v11308_v27 }
 0x5a3   : > { %7503 = vmatmul.msk.bf16.gmra.mxu1 %vm2293_vm1, %v11889_v29  ;;  %7547 = vmatmul.msk.bf16.gmra.mxu2 %vm2293_vm1, %v5176_v23 }
 0x5a4   : > { %7551 = vmatmul.msk.bf16.gmra.mxu3 %vm2293_vm1, %v5176_v23 }
 0x5a5   : > { %5559 = vmatpush.bf16.msra.mxu3 %v7616_v28 }
 0x5a6   : > { %v4690_v22 = vpop.f32.mrf.mxu2 }
 0x5a7   : > { %v11437_v19 = vadd.f32 %v4690_v22, %v4592_v51  ;;  %v4718_v49 = vpop.f32.mrf.mxu3 }
 0x5a8   : > { %v11439_v20 = vadd.f32 %v4718_v49, %v4593_v14  ;;  %v4577_v8 = vpop.f32.mrf.mxu1  ;;  %v5453_v49 = vld [vmem:[#allocation4 + $0x51] sm:$0xff] }
 0x5a9   : > { %v4595_v23 = vadd.f32 %v4577_v8, %v11278_v37  ;;  %v11442_v12 = vpop.f32.mrf.mxu0  ;;  %v4596_v37 = vadd.f32 %v10727_v62, %v11300_v59  ;;  %v8000_v59 = vld [vmem:[%s11827_s3 + $0x594] sm:$0xf] }
 0x5ae   : > { %v4692_v13 = vpop.f32.mrf.mxu2 }
 0x5af   : > { %v11446_v34 = vadd.f32 %v4692_v13, %v4594_v61  ;;  %v4720_v35 = vpop.f32.mrf.mxu3  ;;  %v5452_v61 = vld [vmem:[#allocation4 + $0x41] sm:$0xff] }
 0x5b0   : > { %v11450_v29 = vadd.f32 %v4720_v35, %v4595_v23  ;;  %v4580_v28 = vpop.f32.mrf.mxu1  ;;  %v5459_v62 = vpack.c.bf16 %v5453_v49, %v5452_v61 }
 0x5b1   : > { %v4597_v14 = vadd.f32 %v4580_v28, %v11302_v32  ;;  %v11453_v44 = vpop.f32.mrf.mxu0  ;;  %v7680_v32 = vor.u32 %v8002_v2, %v7677_v47 }
 0x5b3   : > { %7504 = vmatmul.msk.bf16.gmra.mxu1 %vm2293_vm1, %v10724_v42  ;;  %7548 = vmatmul.msk.bf16.gmra.mxu2 %vm2293_vm1, %v5177_v25 }
 0x5b4   : > { %7552 = vmatmul.msk.bf16.gmra.mxu3 %vm2293_vm1, %v5177_v25  ;;  %5699 = vmatpush.bf16.msra.mxu1 %v7680_v32  ;;  %v7669_v25 = vld [vmem:[%s11827_s3 + $0x598] sm:$0xf0] }
 0x5b5   : > { %v7672_v28 = vor.u32 %v8000_v59, %v7669_v25  ;;  %v8013_v59 = vld [vmem:[%s11827_s3 + $0x5f4] sm:$0xf0]  ;;  %v8012_v25 = vld [vmem:[%s11827_s3 + $0x5f4] sm:$0xf] }
 0x5b6   : > { %v4695_v27 = vpop.f32.mrf.mxu2 }
 0x5b7   : > { %v11467_v58 = vadd.f32 %v4695_v27, %v4596_v37  ;;  %v4723_v42 = vpop.f32.mrf.mxu3 }
 0x5b8   : > { %v11469_v43 = vadd.f32 %v4723_v42, %v4597_v14  ;;  %v4582_v51 = vpop.f32.mrf.mxu1  ;;  %5700 = vmatpush.bf16.msra.mxu1 %v7672_v28  ;;  %v4871_v42 = vadd.f32 %v10836_v41, %v11341_v60  ;;  %v7998_v41 = vld [vmem:[%s11827_s3 + $0x584] sm:$0xf]  ;;  %v7661_v60 = vld [vmem:[%s11827_s3 + $0x588] sm:$0xf0] }
 0x5b9   : > { %v11471_v38 = vpop.f32.mrf.mxu0 }
 0x5be   : > { %v4697_v22 = vpop.f32.mrf.mxu2 }
 0x5bf   : > { %v4725_v8 = vpop.f32.mrf.mxu3  ;;  %v5455_v22 = vld [vmem:[#allocation4 + $0x71] sm:$0xff] }
 0x5c0   : > { %v4850_v23 = vpop.f32.mrf.mxu1 }
 0x5c1   : > { %v4870_v13 = vadd.f32 %v4850_v23, %v11334_v18  ;;  %v11474_v35 = vpop.f32.mrf.mxu0  ;;  %v4869_v18 = vadd.f32 %v10797_v63, %v11332_v57  ;;  %v5454_v23 = vld [vmem:[#allocation4 + $0x61] sm:$0xff] }
 0x5c3   : > { %7597 = vmatmul.msk.bf16.vlgmr.msrb.gmra.mxu1 %vm2293_vm1, %v10812_v53  ;;  %7641 = vmatmul.msk.bf16.vlgmr.msra.gmra.mxu2 %vm2293_vm1, %v5459_v62 }
 0x5c4   : > { %7645 = vmatmul.msk.bf16.vlgmr.msra.gmra.mxu3 %vm2293_vm1, %v5459_v62  ;;  %v5460_v62 = vpack.c.bf16 %v5455_v22, %v5454_v23  ;;  %v8010_v22 = vld [vmem:[%s11827_s3 + $0x5e4] sm:$0xf] }
 0x5c6   : > { %v4964_v14 = vpop.f32.mrf.mxu2 }
 0x5c7   : > { %v11488_v2 = vadd.f32 %v4964_v14, %v4869_v18  ;;  %v4992_v53 = vpop.f32.mrf.mxu3  ;;  %v7733_v18 = vld [vmem:[%s11827_s3 + $0x5f8] sm:$0xf0] }
 0x5c8   : > { %v11490_v47 = vadd.f32 %v4992_v53, %v4870_v13  ;;  %v4852_v37 = vpop.f32.mrf.mxu1  ;;  %v7736_v53 = vor.u32 %v8012_v25, %v7733_v18  ;;  %v5456_v18 = vld [vmem:[#allocation4 + $0x81] sm:$0xff] }
 0x5c9   : > { %v4872_v32 = vadd.f32 %v4852_v37, %v11343_v3  ;;  %v11493_v27 = vpop.f32.mrf.mxu0  ;;  %v7731_v3 = vld [vmem:[%s11827_s3 + $0x5f0] sm:$0xf] }
 0x5ca   : > { %v7732_v14 = vor.u32 %v8013_v59, %v7731_v3  ;;  %5840 = vmatpush.bf16.msrb.mxu3 %v7736_v53  ;;  %v8008_v3 = vld [vmem:[%s11827_s3 + $0x5d4] sm:$0xf]  ;;  %v4875_v59 = vadd.f32 %v10881_v33, %v11404_v55  ;;  %v8007_v33 = vld [vmem:[%s11827_s3 + $0x5c4] sm:$0xf0]  ;;  %v8006_v55 = vld [vmem:[%s11827_s3 + $0x5c4] sm:$0xf] }
 0x5cc   : > { %5812 = vmatpush.bf16.msrb.mxu2 %v7732_v14 }
 0x5ce   : > { %v4966_v51 = vpop.f32.mrf.mxu2 }
 0x5cf   : > { %v11497_v49 = vadd.f32 %v4966_v51, %v4871_v42  ;;  %v4994_v63 = vpop.f32.mrf.mxu3  ;;  %v7723_v42 = vld [vmem:[%s11827_s3 + $0x5e0] sm:$0xf]  ;;  %v8011_v51 = vld [vmem:[%s11827_s3 + $0x5e4] sm:$0xf0] }
 0x5d0   : > { %v11499_v57 = vadd.f32 %v4994_v63, %v4872_v32  ;;  %v4855_v8 = vpop.f32.mrf.mxu1  ;;  %v7724_v23 = vor.u32 %v8011_v51, %v7723_v42 }
 0x5d1   : > { %v4874_v61 = vadd.f32 %v4855_v8, %v11375_v30  ;;  %v11502_v13 = vpop.f32.mrf.mxu0  ;;  %v4873_v30 = vadd.f32 %v10847_v39, %v11373_v26 }
 0x5d2   : > { %5813 = vmatpush.bf16.msrb.mxu2 %v7724_v23  ;;  %v8020_v23 = vld [vmem:[%s11827_s3 + $0x634] sm:$0xf] }
 0x5d3   : > { %7598 = vmatmul.msk.bf16.gmra.mxu1 %vm2293_vm1, %v10855_v24  ;;  %7642 = vmatmul.msk.bf16.gmra.mxu2 %vm2293_vm1, %v5460_v62  ;;  %v7664_v24 = vor.u32 %v7998_v41, %v7661_v60  ;;  %v8009_v41 = vld [vmem:[%s11827_s3 + $0x5d4] sm:$0xf0] }
 0x5d4   : > { %7646 = vmatmul.msk.bf16.gmra.mxu3 %vm2293_vm1, %v5460_v62  ;;  %v7715_v62 = vld [vmem:[%s11827_s3 + $0x5d0] sm:$0xf] }
 0x5d5   : > { %5701 = vmatpush.bf16.msra.mxu1 %v7664_v24 }
 0x5d6   : > { %v4969_v28 = vpop.f32.mrf.mxu2 }
 0x5d7   : > { %v11528_v37 = vadd.f32 %v4969_v28, %v4873_v30  ;;  %v4997_v32 = vpop.f32.mrf.mxu3  ;;  %v7716_v30 = vor.u32 %v8009_v41, %v7715_v62  ;;  %v5457_v28 = vld [vmem:[#allocation4 + $0x91] sm:$0xff] }
 0x5d8   : > { %v11530_v39 = vadd.f32 %v4997_v32, %v4874_v61  ;;  %v4857_v26 = vpop.f32.mrf.mxu1  ;;  %v7725_v61 = vld [vmem:[%s11827_s3 + $0x5e8] sm:$0xf0]  ;;  %v5461_v51 = vpack.c.bf16 %v5457_v28, %v5456_v18  ;;  %v11891_v62 = vld [vmem:[#allocation6_spill] sm:$0xff]  ;;  %v4879_v18 = vadd.f32 %v10932_v6, %v11446_v34  ;;  %v8018_v6 = vld [vmem:[%s11827_s3 + $0x624] sm:$0xf] }
 0x5d9   : > { %v4876_v63 = vadd.f32 %v4857_v26, %v11406_v36  ;;  %v5692_v8 = vpop.f32.mrf.mxu0  ;;  %v7728_v60 = vor.u32 %v8010_v22, %v7725_v61  ;;  %v7717_v36 = vld [vmem:[%s11827_s3 + $0x5d8] sm:$0xf0]  ;;  %5814 = vmatpush.bf16.msrb.mxu2 %v7716_v30  ;;  %v7707_v22 = vld [vmem:[%s11827_s3 + $0x5c0] sm:$0xf]  ;;  %v4877_v41 = vadd.f32 %v11891_v62, %v11437_v19  ;;  %v7773_v34 = vld [vmem:[%s11827_s3 + $0x628] sm:$0xf0] }
 0x5da   : > { %v7720_v24 = vor.u32 %v8008_v3, %v7717_v36  ;;  %v7709_v8 = vld [vmem:[%s11827_s3 + $0x5c8] sm:$0xf0]  ;;  %v7781_v61 = vld [vmem:[%s11827_s3 + $0x638] sm:$0xf0] }
 0x5db   : > { %5841 = vmatpush.bf16.msrb.mxu3 %v7728_v60  ;;  %v7784_v60 = vor.u32 %v8020_v23, %v7781_v61  ;;  %v5737_v23 = vld [vmem:[#allocation4 + $0x53] sm:$0xff] }
 0x5dd   : > { %5982 = vmatpush.bf16.msrb.mxu1 %v7784_v60 }
 0x5de   : > { %v4971_v25 = vpop.f32.mrf.mxu2 }
 0x5df   : > { %v11559_v14 = vadd.f32 %v4971_v25, %v4875_v59  ;;  %v4999_v53 = vpop.f32.mrf.mxu3  ;;  %5842 = vmatpush.bf16.msrb.mxu3 %v7720_v24  ;;  %v5458_v25 = vld [vmem:[#allocation4 + $0xa1] sm:$0xff] }
 0x5e0   : > { %v11561_v32 = vadd.f32 %v4999_v53, %v4876_v63  ;;  %v4860_v26 = vpop.f32.mrf.mxu1  ;;  %v7708_v63 = vor.u32 %v8007_v33, %v7707_v22 }
 0x5e1   : > { %v4878_v42 = vadd.f32 %v4860_v26, %v11439_v20  ;;  %v7712_v20 = vor.u32 %v8006_v55, %v7709_v8  ;;  %v5462_v26 = vpack.c.bf16 %v5458_v25, %v5458_v25 }
 0x5e2   : > { %5815 = vmatpush.bf16.msrb.mxu2 %v7708_v63 }
 0x5e3   : > { %7599 = vmatmul.msk.bf16.gmra.mxu1 %vm2293_vm1, %v10911_v21  ;;  %7643 = vmatmul.msk.bf16.gmra.mxu2 %vm2293_vm1, %v5461_v51 }
 0x5e4   : > { %7647 = vmatmul.msk.bf16.gmra.mxu3 %vm2293_vm1, %v5461_v51 }
 0x5e5   : > { %5843 = vmatpush.bf16.msrb.mxu3 %v7712_v20 }
 0x5e6   : > { %v4974_v21 = vpop.f32.mrf.mxu2 }
 0x5e7   : > { %v11588_v3 = vadd.f32 %v4974_v21, %v4877_v41  ;;  %v5002_v36 = vpop.f32.mrf.mxu3  ;;  %v5736_v41 = vld [vmem:[#allocation4 + $0x43] sm:$0xff] }
 0x5e8   : > { %v11590_v30 = vadd.f32 %v5002_v36, %v4878_v42  ;;  %v4862_v24 = vpop.f32.mrf.mxu1  ;;  %v7776_v42 = vor.u32 %v8018_v6, %v7773_v34  ;;  %v5743_v21 = vpack.c.bf16 %v5737_v23, %v5736_v41  ;;  %v5153_v36 = vadd.f32 %v11013_v9, %v11488_v2  ;;  %v5738_v34 = vld [vmem:[#allocation4 + $0x63] sm:$0xff] }
 0x5e9   : > { %v4880_v59 = vadd.f32 %v4862_v24, %v11450_v29  ;;  %v4881_v29 = vadd.f32 %v10943_v54, %v11467_v58  ;;  %v8016_v54 = vld [vmem:[%s11827_s3 + $0x614] sm:$0xf]  ;;  %v7765_v58 = vld [vmem:[%s11827_s3 + $0x618] sm:$0xf0]  ;;  %v5884_v23 = vld [vmem:[#allocation4 + $0xa4] sm:$0xff]  ;;  %v5159_v41 = vadd.f32 %v11097_v7, %v11559_v14  ;;  %v5161_v7 = vadd.f32 %v11116_v48, %v11588_v3 }
 0x5ea   : > { %5983 = vmatpush.bf16.msrb.mxu1 %v7776_v42 }
 0x5ee   : > { %v4976_v28 = vpop.f32.mrf.mxu2 }
 0x5ef   : > { %v11595_v53 = vadd.f32 %v4976_v28, %v4879_v18  ;;  %v5004_v19 = vpop.f32.mrf.mxu3 }
 0x5f0   : > { %v11597_v51 = vadd.f32 %v5004_v19, %v4880_v59  ;;  %v4865_v22 = vpop.f32.mrf.mxu1  ;;  %v5155_v19 = vadd.f32 %v11052_v0, %v11497_v49  ;;  %v8014_v0 = vld [vmem:[%s11827_s3 + $0x604] sm:$0xf]  ;;  %v7757_v49 = vld [vmem:[%s11827_s3 + $0x608] sm:$0xf0] }
 0x5f1   : > { %v4882_v33 = vadd.f32 %v4865_v22, %v11469_v43  ;;  %v5739_v22 = vld [vmem:[#allocation4 + $0x73] sm:$0xff] }
 0x5f2   : > { %v5744_v42 = vpack.c.bf16 %v5739_v22, %v5738_v34 }
 0x5f3   : > { %7600 = vmatmul.msk.bf16.gmra.mxu1 %vm2293_vm1, %v10940_v10  ;;  %7644 = vmatmul.msk.bf16.gmra.mxu2 %vm2293_vm1, %v5462_v26 }
 0x5f4   : > { %7648 = vmatmul.msk.bf16.gmra.mxu3 %vm2293_vm1, %v5462_v26 }
 0x5f6   : > { %v4979_v43 = vpop.f32.mrf.mxu2 }
 0x5f7   : > { %v11612_v55 = vadd.f32 %v4979_v43, %v4881_v29  ;;  %v5007_v10 = vpop.f32.mrf.mxu3 }
 0x5f8   : > { %v11614_v63 = vadd.f32 %v5007_v10, %v4882_v33  ;;  %v4867_v8 = vpop.f32.mrf.mxu1 }
 0x5f9   : > { %v5165_v3 = vadd.f32 %v11159_v46, %v11612_v55 }
 0x5fe   : > { %v4981_v20 = vpop.f32.mrf.mxu2 }
 0x5ff   : > { %v5009_v61 = vpop.f32.mrf.mxu3 }
 0x600   : > { %v5134_v62 = vpop.f32.mrf.mxu1 }
 0x601   : > { %v5154_v60 = vadd.f32 %v5134_v62, %v11490_v47  ;;  %v7768_v47 = vor.u32 %v8016_v54, %v7765_v58  ;;  %v11656_v62 = vpack.c.bf16 %v5884_v23, %v5884_v23 }
 0x603   : > { %7693 = vmatmul.msk.bf16.vlgmr.msra.gmra.mxu1 %vm2293_vm1, %v11028_v5  ;;  %7737 = vmatmul.msk.bf16.vlgmr.msrb.gmra.mxu2 %vm2293_vm1, %v5743_v21 }
 0x604   : > { %7741 = vmatmul.msk.bf16.vlgmr.msrb.gmra.mxu3 %vm2293_vm1, %v5743_v21  ;;  %5984 = vmatpush.bf16.msrb.mxu1 %v7768_v47 }
 0x605   : > { %7788 = vmatmul.msk.bf16.gmra.mxu0 %vm2293_vm1, %v11656_v62 }
 0x606   : > { %v5248_v24 = vpop.f32.mrf.mxu2 }
 0x607   : > { %v11629_v59 = vadd.f32 %v5248_v24, %v5153_v36  ;;  %v5276_v5 = vpop.f32.mrf.mxu3 }
 0x608   : > { %v11631_v25 = vadd.f32 %v5276_v5, %v5154_v60  ;;  %v5136_v18 = vpop.f32.mrf.mxu1  ;;  %v5741_v60 = vld [vmem:[#allocation4 + $0x93] sm:$0xff] }
 0x609   : > { %v5156_v28 = vadd.f32 %v5136_v18, %v11499_v57  ;;  %v5157_v57 = vadd.f32 %v11065_v17, %v11528_v37  ;;  %v5740_v37 = vld [vmem:[#allocation4 + $0x83] sm:$0xff] }
 0x60a   : > { %v5745_v24 = vpack.c.bf16 %v5741_v60, %v5740_v37 }
 0x60e   : > { %v5250_v26 = vpop.f32.mrf.mxu2 }
 0x60f   : > { %v11636_v33 = vadd.f32 %v5250_v26, %v5155_v19  ;;  %v5278_v6 = vpop.f32.mrf.mxu3  ;;  %v5163_v26 = vadd.f32 %v11148_v16, %v11595_v53 }
 0x610   : > { %v11638_v9 = vadd.f32 %v5278_v6, %v5156_v28  ;;  %v5139_v2 = vpop.f32.mrf.mxu1 }
 0x611   : > { %v5158_v29 = vadd.f32 %v5139_v2, %v11530_v39  ;;  %v7760_v39 = vor.u32 %v8014_v0, %v7757_v49 }
 0x613   : > { %7694 = vmatmul.msk.bf16.gmra.mxu1 %vm2293_vm1, %v11071_v1  ;;  %7738 = vmatmul.msk.bf16.gmra.mxu2 %vm2293_vm1, %v5744_v42 }
 0x614   : > { %7742 = vmatmul.msk.bf16.gmra.mxu3 %vm2293_vm1, %v5744_v42  ;;  %5985 = vmatpush.bf16.msrb.mxu1 %v7760_v39 }
 0x616   : > { %v5253_v43 = vpop.f32.mrf.mxu2 }
 0x617   : > { %v11653_v10 = vadd.f32 %v5253_v43, %v5157_v57  ;;  %v5281_v1 = vpop.f32.mrf.mxu3 }
 0x618   : > { %v5300_v8 = vadd.f32 %v5281_v1, %v5158_v29  ;;  %v5141_v20 = vpop.f32.mrf.mxu1 }
 0x619   : > { %v5160_v61 = vadd.f32 %v5141_v20, %v11561_v32 }
 0x61e   : > { %v5255_v17 = vpop.f32.mrf.mxu2 }
 0x61f   : > { %v11662_v21 = vadd.f32 %v5255_v17, %v5159_v41  ;;  %v5283_v54 = vpop.f32.mrf.mxu3 }
 0x620   : > { %v5302_v58 = vadd.f32 %v5283_v54, %v5160_v61  ;;  %v5144_v36 = vpop.f32.mrf.mxu1 }
 0x621   : > { %v5162_v47 = vadd.f32 %v5144_v36, %v11590_v30  ;;  %v5742_v30 = vld [vmem:[#allocation4 + $0xa3] sm:$0xff]  ;;  %v5959_v36 = vpop.f32.mrf.mxu0 }
 0x622   : > { %v5746_v2 = vpack.c.bf16 %v5742_v30, %v5742_v30 }
 0x623   : > { %7695 = vmatmul.msk.bf16.gmra.mxu1 %vm2293_vm1, %v11127_v45  ;;  %7739 = vmatmul.msk.bf16.gmra.mxu2 %vm2293_vm1, %v5745_v24 }
 0x624   : > { %7743 = vmatmul.msk.bf16.gmra.mxu3 %vm2293_vm1, %v5745_v24 }
 0x626   : > { %v5258_v14 = vpop.f32.mrf.mxu2 }
 0x627   : > { %v11671_v32 = vadd.f32 %v5258_v14, %v5161_v7  ;;  %v5286_v5 = vpop.f32.mrf.mxu3 }
 0x628   : > { %v5304_v18 = vadd.f32 %v5286_v5, %v5162_v47  ;;  %v5146_v28 = vpop.f32.mrf.mxu1 }
 0x629   : > { %v5164_v19 = vadd.f32 %v5146_v28, %v11597_v51  ;;  %v5961_v5 = vpop.f32.mrf.mxu0 }
 0x62e   : > { %v5260_v45 = vpop.f32.mrf.mxu2 }
 0x62f   : > { %v11676_v22 = vadd.f32 %v5260_v45, %v5163_v26  ;;  %v5288_v6 = vpop.f32.mrf.mxu3 }
 0x630   : > { %v5306_v34 = vadd.f32 %v5288_v6, %v5164_v19  ;;  %v5149_v29 = vpop.f32.mrf.mxu1 }
 0x631   : > { %v5166_v48 = vadd.f32 %v5149_v29, %v11614_v63  ;;  %v5964_v29 = vpop.f32.mrf.mxu0 }
 0x633   : > { %7696 = vmatmul.msk.bf16.gmra.mxu1 %vm2293_vm1, %v11156_v31  ;;  %7740 = vmatmul.msk.bf16.gmra.mxu2 %vm2293_vm1, %v5746_v2 }
 0x634   : > { %7744 = vmatmul.msk.bf16.gmra.mxu3 %vm2293_vm1, %v5746_v2 }
 0x636   : > { %v5263_v16 = vpop.f32.mrf.mxu2 }
 0x637   : > { %v11685_v53 = vadd.f32 %v5263_v16, %v5165_v3  ;;  %v5291_v51 = vpop.f32.mrf.mxu3 }
 0x638   : > { %v5308_v42 = vadd.f32 %v5291_v51, %v5166_v48  ;;  %v5151_v0 = vpop.f32.mrf.mxu1  ;;  %v11892_v51 = vld [vmem:[#allocation12_spill] sm:$0xff] }
 0x639   : > { %v5966_v16 = vpop.f32.mrf.mxu0  ;;  %v5438_v0 = vadd.f32 %v11892_v51, %v11629_v59 }
 0x63e   : > { %v5265_v49 = vpop.f32.mrf.mxu2 }
 0x63f   : > { %v5293_v57 = vpop.f32.mrf.mxu3 }
 0x640   : > { %v5419_v39 = vpop.f32.mrf.mxu1 }
 0x641   : > { %v5439_v63 = vadd.f32 %v5419_v39, %v11631_v25 }
 0x643   : > { %7789 = vmatmul.msk.bf16.vlgmr.msrb.gmra.mxu1 %vm2293_vm1, %v11244_v56 }
 0x646   : > { %v5533_v31 = vpop.f32.mrf.mxu2 }
 0x647   : > { %v5561_v43 = vpop.f32.mrf.mxu3 }
 0x648   : > { %v11690_v1 = vadd.f32 %v5561_v43, %v5439_v63  ;;  %v5421_v20 = vpop.f32.mrf.mxu1  ;;  %v5969_v63 = vpop.f32.mrf.mxu0 }
 0x649   : > { %v5441_v46 = vadd.f32 %v5421_v20, %v11638_v9  ;;  %v11893_v20 = vld [vmem:[#allocation7_spill] sm:$0xff] }
 0x64e   : > { %v5535_v55 = vpop.f32.mrf.mxu2 }
 0x64f   : > { %v5563_v23 = vpop.f32.mrf.mxu3 }
 0x650   : > { %v11693_v61 = vadd.f32 %v5563_v23, %v5441_v46  ;;  %v5424_v41 = vpop.f32.mrf.mxu1  ;;  %v5440_v46 = vadd.f32 %v11893_v20, %v11636_v33 }
 0x651   : > { %v5443_v17 = vadd.f32 %v5424_v41, %v5300_v8 }
 0x653   : > { %7790 = vmatmul.msk.bf16.gmra.mxu1 %vm2293_vm1, %v11284_v50 }
 0x656   : > { %v5538_v25 = vpop.f32.mrf.mxu2 }
 0x657   : > { %v5566_v37 = vpop.f32.mrf.mxu3 }
 0x658   : > { %v11697_v60 = vadd.f32 %v5566_v37, %v5443_v17  ;;  %v5426_v56 = vpop.f32.mrf.mxu1  ;;  %v5582_v17 = vadd.f32 %v5535_v55, %v5440_v46 }
 0x659   : > { %v5445_v54 = vadd.f32 %v5426_v56, %v5302_v58 }
 0x65a   : > { %v5724_v33 = vadd.f32 %v11442_v12, %v5582_v17 }
 0x65e   : > { %v11699_v47 = vpop.f32.mrf.mxu2 }
 0x65f   : > { %v5568_v24 = vpop.f32.mrf.mxu3 }
 0x660   : > { %v11701_v9 = vadd.f32 %v5568_v24, %v5445_v54  ;;  %v5429_v7 = vpop.f32.mrf.mxu1  ;;  %v11894_v24 = vld [vmem:[#allocation14_spill] sm:$0xff] }
 0x661   : > { %v5447_v14 = vadd.f32 %v5429_v7, %v5304_v18  ;;  %v5442_v7 = vadd.f32 %v11894_v24, %v11653_v10 }
 0x663   : > { %7791 = vmatmul.msk.bf16.gmra.mxu1 %vm2293_vm1, %v11316_v40 }
 0x666   : > { %v11705_v8 = vpop.f32.mrf.mxu2 }
 0x667   : > { %v5571_v50 = vpop.f32.mrf.mxu3 }
 0x668   : > { %v11707_v28 = vadd.f32 %v5571_v50, %v5447_v14  ;;  %v5431_v19 = vpop.f32.mrf.mxu1 }
 0x669   : > { %v5449_v30 = vadd.f32 %v5431_v19, %v5306_v34  ;;  %v5584_v19 = vadd.f32 %v5538_v25, %v5442_v7 }
 0x66e   : > { %v11709_v58 = vpop.f32.mrf.mxu2 }
 0x66f   : > { %v5573_v26 = vpop.f32.mrf.mxu3 }
 0x670   : > { %v11711_v45 = vadd.f32 %v5573_v26, %v5449_v30  ;;  %v5434_v6 = vpop.f32.mrf.mxu1 }
 0x671   : > { %v5451_v2 = vadd.f32 %v5434_v6, %v5308_v42  ;;  %v5580_v42 = vadd.f32 %v5533_v31, %v5438_v0 }
 0x673   : > { %7792 = vmatmul.msk.bf16.gmra.mxu1 %vm2293_vm1, %v11656_v62  ;;  %v11726_v62 = vld [vmem:[%s11828_s4] sm:$0x3]  ;;  %v5722_v39 = vadd.f32 %v11409_v52, %v5580_v42 }
 0x674   : > { %v11732_v41 = vperm.slane %v11726_v62, 0 }
 0x676   : > { %v11715_v40 = vpop.f32.mrf.mxu2 }
 0x677   : > { %v5576_v18 = vpop.f32.mrf.mxu3 }
 0x678   : > { %v11717_v48 = vadd.f32 %v5576_v18, %v5451_v2  ;;  %v5436_v3 = vpop.f32.mrf.mxu1  ;;  %v5726_v2 = vadd.f32 %v11453_v44, %v5584_v19  ;;  %v5444_v18 = vadd.f32 %v11304_v4, %v11662_v21  ;;  %v5446_v4 = vadd.f32 %v11311_v15, %v11671_v32 }
 0x679   : > { %v5448_v15 = vadd.f32 %v11337_v11, %v11676_v22 }
 0x67a   : > { %v5586_v25 = vadd.f32 %v11699_v47, %v5444_v18  ;;  %v5588_v47 = vadd.f32 %v11705_v8, %v5446_v4 }
 0x67c   : > { %v5728_v44 = vadd.f32 %v11471_v38, %v5586_v25  ;;  %v5730_v38 = vadd.f32 %v11474_v35, %v5588_v47  ;;  %v11895_v35 = vld [vmem:[#allocation13_spill] sm:$0xff] }
 0x67d   : > { %v5450_v7 = vadd.f32 %v11895_v35, %v11685_v53 }
 0x67e   : > { %v5550_v34 = vpop.f32.mrf.mxu2 }
 0x67f   : > { %v5578_v49 = vpop.f32.mrf.mxu3  ;;  %v5592_v19 = vadd.f32 %v11715_v40, %v5450_v7 }
 0x680   : > { %v11721_v57 = vpop.f32.mrf.mxu1 }
 0x686   : > { %v5817_v43 = vpop.f32.mrf.mxu2 }
 0x687   : > { %v5864_v23 = vadd.f32 %v5817_v43, %v5722_v39  ;;  %v11734_v59 = vpop.f32.mrf.mxu3 }
 0x688   : > { %v11737_v31 = vpop.f32.mrf.mxu1 }
 0x689   : > { %v6006_v37 = vadd.f32 %v5959_v36, %v5864_v23  ;;  %v5971_v36 = vpop.f32.mrf.mxu0 }
 0x68b   : > { %v6026_v56 = vadd.f32 %v11732_v41, %v6006_v37 }
 0x68d   : > { %v6040_v52 = vmax.f32 %v6026_v56, 0.0 }
 0x68e   : > { %v5819_v54 = vpop.f32.mrf.mxu2 }
 0x68f   : > { %6054 = vst [vmem:[%s11743_s15] sm:$0xff] %v6040_v52  ;;  %v5866_v14 = vadd.f32 %v5819_v54, %v5724_v33  ;;  %v11749_v55 = vpop.f32.mrf.mxu3  ;;  %v5590_v52 = vadd.f32 %v11709_v58, %v5448_v15 }
 0x690   : > { %v11751_v50 = vpop.f32.mrf.mxu1 }
 0x691   : > { %v6008_v30 = vadd.f32 %v5961_v5, %v5866_v14  ;;  %v5974_v51 = vpop.f32.mrf.mxu0  ;;  %v5732_v54 = vadd.f32 %v11493_v27, %v5590_v52  ;;  %v5727_v4 = vadd.f32 %v11751_v50, %v11697_v60 }
 0x693   : > { %v6028_v26 = vadd.f32 %v11732_v41, %v6008_v30 }
 0x695   : > { %v6042_v6 = vmax.f32 %v6028_v26, 0.0  ;;  %v5734_v26 = vadd.f32 %v11502_v13, %v5592_v19  ;;  %v6023_v13 = vperm.slane %v11726_v62, 1 }
 0x696   : > { %v5822_v12 = vpop.f32.mrf.mxu2 }
 0x697   : > { %6056 = vst [vmem:[%s11743_s15 + $0x10] sm:$0xff] %v6042_v6  ;;  %v5868_v10 = vadd.f32 %v5822_v12, %v5726_v2  ;;  %v11758_v3 = vpop.f32.mrf.mxu3 }
 0x698   : > { %v11760_v34 = vpop.f32.mrf.mxu1 }
 0x699   : > { %v6010_v5 = vadd.f32 %v5964_v29, %v5868_v10  ;;  %v5976_v20 = vpop.f32.mrf.mxu0  ;;  %v5723_v10 = vadd.f32 %v11721_v57, %v11690_v1 }
 0x69b   : > { %v6030_v0 = vadd.f32 %v11732_v41, %v6010_v5 }
 0x69d   : > { %v6044_v49 = vmax.f32 %v6030_v0, 0.0 }
 0x69e   : > { %v5824_v42 = vpop.f32.mrf.mxu2 }
 0x69f   : > { %6058 = vst [vmem:[%s11743_s15 + $0x20] sm:$0xff] %v6044_v49  ;;  %v5870_v21 = vadd.f32 %v5824_v42, %v5728_v44  ;;  %v11768_v39 = vpop.f32.mrf.mxu3 }
 0x6a0   : > { %v11770_v43 = vpop.f32.mrf.mxu1 }
 0x6a1   : > { %v6012_v29 = vadd.f32 %v5966_v16, %v5870_v21  ;;  %v5869_v21 = vadd.f32 %v11758_v3, %v5727_v4  ;;  %v5731_v3 = vadd.f32 %v11770_v43, %v11707_v28 }
 0x6a3   : > { %v6032_v46 = vadd.f32 %v11732_v41, %v6012_v29 }
 0x6a5   : > { %v6046_v23 = vmax.f32 %v6032_v46, 0.0 }
 0x6a6   : > { %v5827_v17 = vpop.f32.mrf.mxu2 }
 0x6a7   : > { %6060 = vst [vmem:[%s11743_s15 + $0x30] sm:$0xff] %v6046_v23  ;;  %v5872_v32 = vadd.f32 %v5827_v17, %v5730_v38  ;;  %v5855_v37 = vpop.f32.mrf.mxu3 }
 0x6a8   : > { %v5715_v56 = vpop.f32.mrf.mxu1  ;;  %v5873_v38 = vadd.f32 %v5855_v37, %v5731_v3 }
 0x6a9   : > { %v6014_v33 = vadd.f32 %v5969_v63, %v5872_v32 }
 0x6ab   : > { %v6034_v8 = vadd.f32 %v11732_v41, %v6014_v33 }
 0x6ad   : > { %v6048_v16 = vmax.f32 %v6034_v8, 0.0 }
 0x6ae   : > { %v5829_v24 = vpop.f32.mrf.mxu2 }
 0x6af   : > { %6062 = vst [vmem:[%s11743_s15 + $0x40] sm:$0xff] %v6048_v16  ;;  %v5874_v14 = vadd.f32 %v5829_v24, %v5732_v54  ;;  %v5857_v11 = vpop.f32.mrf.mxu3 }
 0x6b0   : > { %v5718_v22 = vpop.f32.mrf.mxu1 }
 0x6b1   : > { %v6016_v30 = vadd.f32 %v5971_v36, %v5874_v14  ;;  %v5865_v36 = vadd.f32 %v11734_v59, %v5723_v10  ;;  %v5735_v28 = vadd.f32 %v5718_v22, %v11717_v48 }
 0x6b3   : > { %v6036_v58 = vadd.f32 %v11732_v41, %v6016_v30 }
 0x6b5   : > { %v6050_v63 = vmax.f32 %v6036_v58, 0.0 }
 0x6b6   : > { %v5832_v6 = vpop.f32.mrf.mxu2 }
 0x6b7   : > { %6064 = vst [vmem:[%s11743_s15 + $0x50] sm:$0xff] %v6050_v63  ;;  %v5876_v27 = vadd.f32 %v5832_v6, %v5734_v26  ;;  %v5860_v2 = vpop.f32.mrf.mxu3 }
 0x6b8   : > { %v5720_v12 = vpop.f32.mrf.mxu1  ;;  %v5877_v16 = vadd.f32 %v5860_v2, %v5735_v28 }
 0x6b9   : > { %v6018_v53 = vadd.f32 %v5974_v51, %v5876_v27  ;;  %v5725_v51 = vadd.f32 %v11737_v31, %v11693_v61 }
 0x6bb   : > { %v6038_v18 = vadd.f32 %v11732_v41, %v6018_v53  ;;  %v5867_v41 = vadd.f32 %v11749_v55, %v5725_v51  ;;  %v5729_v55 = vadd.f32 %v11760_v34, %v11701_v9  ;;  %v5733_v34 = vadd.f32 %v5715_v56, %v11711_v45 }
 0x6bd   : > { %v6052_v40 = vmax.f32 %v6038_v18, 0.0  ;;  %v5871_v29 = vadd.f32 %v11768_v39, %v5729_v55  ;;  %v5875_v32 = vadd.f32 %v5857_v11, %v5733_v34 }
 0x6be   : > { %v5834_v25 = vpop.f32.mrf.mxu2 }
 0x6bf   : > { %6066 = vst [vmem:[%s11743_s15 + $0x60] sm:$0xff] %v6052_v40  ;;  %v5862_v5 = vpop.f32.mrf.mxu3 }
 0x6c0   : > { %v5987_v0 = vpop.f32.mrf.mxu1 }
 0x6c1   : > { %v6007_v49 = vadd.f32 %v5987_v0, %v5865_v36 }
 0x6c3   : > { %v6027_v44 = vadd.f32 %v6023_v13, %v6007_v49 }
 0x6c5   : > { %v6041_v42 = vmax.f32 %v6027_v44, 0.0 }
 0x6c7   : > { %6055 = vst.msk [vmem:[%s11743_s15 + $0x8] sm:$0xff] %vm2293_vm1, %v6041_v42 }
 0x6c8   : > { %v5989_v1 = vpop.f32.mrf.mxu1 }
 0x6c9   : > { %v6009_v57 = vadd.f32 %v5989_v1, %v5867_v41 }
 0x6cb   : > { %v6029_v59 = vadd.f32 %v6023_v13, %v6009_v57 }
 0x6cd   : > { %v6043_v62 = vmax.f32 %v6029_v59, 0.0 }
 0x6cf   : > { %6057 = vst.msk [vmem:[%s11743_s15 + $0x18] sm:$0xff] %vm2293_vm1, %v6043_v62 }
 0x6d0   : > { %v5992_v20 = vpop.f32.mrf.mxu1 }
 0x6d1   : > { %v6011_v61 = vadd.f32 %v5992_v20, %v5869_v21 }
 0x6d3   : > { %v6031_v31 = vadd.f32 %v6023_v13, %v6011_v61 }
 0x6d5   : > { %v6045_v47 = vmax.f32 %v6031_v31, 0.0 }
 0x6d7   : > { %6059 = vst.msk [vmem:[%s11743_s15 + $0x28] sm:$0xff] %vm2293_vm1, %v6045_v47 }
 0x6d8   : > { %v5994_v46 = vpop.f32.mrf.mxu1 }
 0x6d9   : > { %v6013_v60 = vadd.f32 %v5994_v46, %v5871_v29 }
 0x6db   : > { %v6033_v50 = vadd.f32 %v6023_v13, %v6013_v60 }
 0x6dd   : > { %v6047_v23 = vmax.f32 %v6033_v50, 0.0 }
 0x6df   : > { %6061 = vst.msk [vmem:[%s11743_s15 + $0x38] sm:$0xff] %vm2293_vm1, %v6047_v23 }
 0x6e0   : > { %v5997_v17 = vpop.f32.mrf.mxu1 }
 0x6e1   : > { %v6015_v15 = vadd.f32 %v5997_v17, %v5873_v38 }
 0x6e3   : > { %v6035_v9 = vadd.f32 %v6023_v13, %v6015_v15 }
 0x6e5   : > { %v6049_v39 = vmax.f32 %v6035_v9, 0.0 }
 0x6e7   : > { %6063 = vst.msk [vmem:[%s11743_s15 + $0x48] sm:$0xff] %vm2293_vm1, %v6049_v39 }
 0x6e8   : > { %v5999_v52 = vpop.f32.mrf.mxu1 }
 0x6e9   : > { %v6017_v33 = vadd.f32 %v5999_v52, %v5875_v32 }
 0x6eb   : > { %v6037_v8 = vadd.f32 %v6023_v13, %v6017_v33 }
 0x6ed   : > { %v6051_v43 = vmax.f32 %v6037_v8, 0.0 }
 0x6ef   : > { %6065 = vst.msk [vmem:[%s11743_s15 + $0x58] sm:$0xff] %vm2293_vm1, %v6051_v43 }
 0x6f0   : > { %v6002_v37 = vpop.f32.mrf.mxu1 }
 0x6f1   : > { %v6019_v54 = vadd.f32 %v6002_v37, %v5877_v16 }
 0x6f3   : > { %v6039_v24 = vadd.f32 %v6023_v13, %v6019_v54 }
 0x6f5   : > { %v6053_v35 = vmax.f32 %v6039_v24, 0.0 }
 0x6f7   : > { %6067 = vst.msk [vmem:[%s11743_s15 + $0x68] sm:$0xff] %vm2293_vm1, %v6053_v35 }
 0x6f8   : > { %v6004_v45 = vpop.f32.mrf.mxu1 }
 0x6f9 PF: > { %s15_s18 = sadd.s32 1, %s8049_s18  }
 0x6fa   : > { %p12_p4 = scmp.ge.s32.totalorder %s15_s18, 4  }
 0x6fc   :  { %14 = sbr.rel (!%p12_p4) target bundleno = 1 (0x1), region = 130 }

</bundles_post_ra>
